<compile_context>
chip_gen: v7x
topology: tpu7x:2x2x1
jax: 0.10.0
libtpu: 0.0.40
codegen_flags: <defaults>
</compile_context>

<pallas_src>
import functools

import jax
import jax.numpy as jnp
import numpy as np
from jax.experimental import pallas as pl
from jax.experimental.pallas import tpu as pltpu

NUM_CLASSES = 2
NUM_ANCHORS = 3
NB = 5 + NUM_CLASSES            # fields per anchor
YOLO_CH = NUM_ANCHORS * NB      # 21
CP = 128                        # lane-padded channel width carried everywhere

# Mini "block_list" (the [net] hyperparams block is omitted, matching
# block_list[1:] in the reference forward).
BLOCKS = [
    dict(type="convolutional", filters=16, size=3, stride=1, bn=1, activation="leaky"),       # 0
    dict(type="maxpool", size=2, stride=2),                                                    # 1
    dict(type="convolutional", filters=32, size=3, stride=1, bn=1, activation="leaky"),        # 2
    dict(type="convolutional", filters=16, size=1, stride=1, bn=1, activation="leaky"),        # 3
    dict(type="convolutional", filters=32, size=3, stride=1, bn=1, activation="leaky"),        # 4
    {"type": "shortcut", "from": "-3"},                                                        # 5
    dict(type="convolutional", filters=YOLO_CH, size=1, stride=1, bn=0, activation="linear"),  # 6
    dict(type="yolo", anchors=[(4.0, 5.0), (6.0, 8.0), (10.0, 12.0)]),                         # 7
    dict(type="route", layers="-3"),                                                           # 8
    dict(type="convolutional", filters=16, size=1, stride=1, bn=1, activation="leaky"),        # 9
    dict(type="upsample", stride=2),                                                           # 10
    dict(type="route", layers="-1, 0"),                                                        # 11
    dict(type="convolutional", filters=YOLO_CH, size=1, stride=1, bn=0, activation="linear"),  # 12
    dict(type="yolo", anchors=[(2.0, 2.0), (3.0, 4.0), (5.0, 6.0)]),                           # 13
]


# ------------------------------ tiling helpers ------------------------------

def _steps_for_rows(m):
    """Grid steps for a row-tiled matmul: ~4 steps, tile a multiple of 8."""
    for s in (4, 2, 1):
        if m % (s * 8) == 0:
            return s
    return 1


# ----------------------------- Pallas kernels ------------------------------

def _conv3x3_kernel(x_ref, w_ref, b_ref, *rest, th, wo, slope, pool):
    # 3x3 stride-1 conv on one h-tile of one image.
    #   x_ref : (1, hs+2, ws+2, CP) bf16  full padded image (constant over h-tiles)
    #   w_ref : (9*CP, CP) bf16           b_ref: (1, CP) f32
    #   o_ref : (1, th*wo, CP) bf16       [p_ref: (1, th*wo//4, CP) pooled epilogue]
    #   col_ref: VMEM scratch (th*wo, 9*CP) bf16 (lane-aligned im2col)
    k = 3
    if pool:
        o_ref, p_ref, col_ref = rest
    else:
        o_ref, col_ref = rest
    hbase = pl.multiple_of(pl.program_id(1) * th, th)

    # Build the im2col block: each tap occupies its own 128-lane column group,
    # so every scratch store is full-tile; the single dot below contracts over
    # K = 9*CP with bf16 operands and f32 accumulation (MXU fast path).
    for kh in range(k):
        for kw in range(k):
            tap = x_ref[0, pl.ds(hbase + kh, th), kw:kw + wo, :]
            t = kh * k + kw
            col_ref[:, t * CP:(t + 1) * CP] = tap.reshape(th * wo, CP)

    y = jnp.dot(col_ref[...], w_ref[...], preferred_element_type=jnp.float32)
    y = y + b_ref[...]
    if slope != 1.0:
        y = jnp.where(y >= 0.0, y, y * slope)
    o_ref[0] = y.astype(o_ref.dtype)

    if pool:
        # Fused 2x2 stride-2 maxpool epilogue: pool adjacent w-pairs (adjacent
        # rows of the flattened tile), then adjacent h-pairs.
        z = y.reshape(th * wo // 2, 2, CP)
        zw = jnp.maximum(z[:, 0, :], z[:, 1, :])          # (th*wo//2, CP)
        z2 = zw.reshape(th // 2, wo, CP)                  # [h=2i rows | h=2i+1 rows]
        ph = jnp.maximum(z2[:, :wo // 2, :], z2[:, wo // 2:, :])
        p_ref[0] = ph.reshape((th // 2) * (wo // 2), CP).astype(p_ref.dtype)


def _mm1_kernel(x_ref, w_ref, b_ref, o_ref, *, slope):
    # 1x1 conv as a row-tiled matmul: (tm, CP) @ (CP, CP), bf16 in / f32 acc.
    y = jnp.dot(x_ref[...], w_ref[...], preferred_element_type=jnp.float32)
    y = y + b_ref[...]
    if slope != 1.0:
        y = jnp.where(y >= 0.0, y, y * slope)
    o_ref[...] = y.astype(o_ref.dtype)


def _mm2_kernel(xa_ref, xb_ref, wa_ref, wb_ref, b_ref, o_ref, *, slope):
    # Fused "concat/add then 1x1 conv": y = xa@wa + xb@wb + b.
    # Covers route-concat (wa != wb) and shortcut-add ((a+b)@W == a@W + b@W).
    y = jnp.dot(xa_ref[...], wa_ref[...], preferred_element_type=jnp.float32)
    y = y + jnp.dot(xb_ref[...], wb_ref[...], preferred_element_type=jnp.float32)
    y = y + b_ref[...]
    if slope != 1.0:
        y = jnp.where(y >= 0.0, y, y * slope)
    o_ref[...] = y.astype(o_ref.dtype)


def _route_up_conv_kernel(xs_ref, xf_ref, up_ref, ws_ref, wf_ref, b_ref, o_ref,
                          *, slope):
    # Fused upsample(x_small) ++ x_full -> 1x1 conv.
    # The 2x nearest-neighbour upsample is a 0/1 row-selection matrix, so it is
    # applied exactly on the MXU (no jnp.repeat HBM intermediate, no relayouts).
    #   xs_ref: (1, r_small, CP) bf16   xf_ref: (1, r_full, CP) bf16
    #   up_ref: (r_full, r_small) bf16 constant selection matrix
    xs_up = jnp.dot(up_ref[...], xs_ref[0], preferred_element_type=jnp.float32)
    y = jnp.dot(xs_up.astype(jnp.bfloat16), ws_ref[...],
                preferred_element_type=jnp.float32)
    y = y + jnp.dot(xf_ref[0], wf_ref[...], preferred_element_type=jnp.float32)
    y = y + b_ref[...]
    if slope != 1.0:
        y = jnp.where(y >= 0.0, y, y * slope)
    o_ref[0] = y.astype(o_ref.dtype)


def _yolo_decode_kernel(p_ref, c_ref, o_ref, *, g, tr):
    # Lane-dense decode on (tr, CP) blocks; one unmasked full-tile store.
    #   p_ref: (tr, CP) bf16 head conv output, lanes = channel c = a*NB + f
    #   c_ref: (8, CP) f32 per-lane constants [is_x, is_y, sel_wh, anc, scale]
    row = pl.program_id(0) * tr + jax.lax.broadcasted_iota(jnp.int32, (tr, 1), 0)
    gg = g * g
    if (gg & (gg - 1) == 0) and (g & (g - 1) == 0):
        pix = jnp.bitwise_and(row, gg - 1)
        gx = jnp.bitwise_and(pix, g - 1).astype(jnp.float32)
        gy = jnp.right_shift(pix, g.bit_length() - 1).astype(jnp.float32)
    else:
        # float fallback: exact while row indices stay well below 2**24.
        rf = row.astype(jnp.float32)
        pixf = rf - jnp.floor(rf / float(gg) + 1e-4) * float(gg)
        gy = jnp.floor(pixf / float(g) + 1e-4)
        gx = pixf - gy * float(g)

    is_x = c_ref[0:1, :]
    is_y = c_ref[1:2, :]
    sel_wh = c_ref[2:3, :]
    anc = c_ref[3:4, :]
    scale = c_ref[4:5, :]

    p = p_ref[...].astype(jnp.float32)
    s = jax.nn.sigmoid(p)
    e = jnp.exp(p)
    xy_and_rest = (s + is_x * gx + is_y * gy) * scale
    o_ref[...] = sel_wh * (e * anc) + (1.0 - sel_wh) * xy_and_rest


# ------------------------------ layer wrappers ------------------------------

def conv3x3(x_img, wt, b, *, hs, ws, slope, pool=False):
    """3x3 stride-1 conv (+leaky) over a spatially pre-padded (n, hs+2, ws+2, CP)
    image; optionally also emits the fused 2x2/2 maxpool of its output."""
    n, hp, wp, _ = x_img.shape
    th = hs // 2 if (hs >= 8 and hs % 2 == 0) else hs
    nht = hs // th
    out_shape = [jax.ShapeDtypeStruct((n, hs * ws, CP), jnp.bfloat16)]
    out_specs = [pl.BlockSpec((1, th * ws, CP), lambda i, j: (i, j, 0))]
    if pool:
        out_shape.append(
            jax.ShapeDtypeStruct((n, (hs // 2) * (ws // 2), CP), jnp.bfloat16))
        out_specs.append(
            pl.BlockSpec((1, (th // 2) * (ws // 2), CP), lambda i, j: (i, j, 0)))
    res = pl.pallas_call(
        functools.partial(_conv3x3_kernel, th=th, wo=ws, slope=slope, pool=pool),
        out_shape=tuple(out_shape),
        grid=(n, nht),
        in_specs=[
            # full padded image; index constant across h-tiles -> one DMA/image
            pl.BlockSpec((1, hp, wp, CP), lambda i, j: (i, 0, 0, 0)),
            pl.BlockSpec((9 * CP, CP), lambda i, j: (0, 0)),
            pl.BlockSpec((1, CP), lambda i, j: (0, 0)),
        ],
        out_specs=tuple(out_specs),
        scratch_shapes=[pltpu.VMEM((th * ws, 9 * CP), jnp.bfloat16)],
        compiler_params=pltpu.CompilerParams(
            dimension_semantics=("parallel", "parallel"),
            vmem_limit_bytes=32 * 1024 * 1024),
    )(x_img, wt, b)
    return res if pool else res[0]


def conv1x1(x_rows, wt, b, slope):
    # x_rows: (m, CP) bf16; m is always a multiple of 32 here -> no row padding.
    m = x_rows.shape[0]
    steps = _steps_for_rows(m)
    tm = m // steps
    return pl.pallas_call(
        functools.partial(_mm1_kernel, slope=slope),
        out_shape=jax.ShapeDtypeStruct((m, CP), jnp.bfloat16),
        grid=(steps,),
        in_specs=[pl.BlockSpec((tm, CP), lambda i: (i, 0)),
                  pl.BlockSpec((CP, CP), lambda i: (0, 0)),
                  pl.BlockSpec((1, CP), lambda i: (0, 0))],
        out_specs=pl.BlockSpec((tm, CP), lambda i: (i, 0)),
        compiler_params=pltpu.CompilerParams(dimension_semantics=("parallel",)),
    )(x_rows, wt, b)


def conv1x1_sum2(xa_rows, xb_rows, wa, wb, b, slope):
    # Fused route-concat / shortcut-add + 1x1 conv.
    m = xa_rows.shape[0]
    steps = _steps_for_rows(m)
    tm = m // steps
    return pl.pallas_call(
        functools.partial(_mm2_kernel, slope=slope),
        out_shape=jax.ShapeDtypeStruct((m, CP), jnp.bfloat16),
        grid=(steps,),
        in_specs=[pl.BlockSpec((tm, CP), lambda i: (i, 0)),
                  pl.BlockSpec((tm, CP), lambda i: (i, 0)),
                  pl.BlockSpec((CP, CP), lambda i: (0, 0)),
                  pl.BlockSpec((CP, CP), lambda i: (0, 0)),
                  pl.BlockSpec((1, CP), lambda i: (0, 0))],
        out_specs=pl.BlockSpec((tm, CP), lambda i: (i, 0)),
        compiler_params=pltpu.CompilerParams(dimension_semantics=("parallel",)),
    )(xa_rows, xb_rows, wa, wb, b)


def _upsample_matrix(th, wo):
    """0/1 selection matrix mapping a (th//2, wo//2) tile onto its 2x NN-upsampled
    (th, wo) tile (row-major flattened). Exact, applied on the MXU."""
    th2, wo2 = th // 2, wo // 2
    p = np.zeros((th * wo, th2 * wo2), np.float32)
    for r in range(th):
        for c in range(wo):
            p[r * wo + c, (r // 2) * wo2 + (c // 2)] = 1.0
    return jnp.asarray(p, jnp.bfloat16)


def conv1x1_route_upsample(x_small, x_full, ws_w, wf_w, b, *, hs, ws, slope):
    """Blocks 10+11+12 fused: upsample(x_small) ++ x_full -> 1x1 conv."""
    n = x_full.shape[0]
    th = hs // 2 if (hs >= 8 and hs % 2 == 0) else hs
    nht = hs // th
    th2, ws2 = th // 2, ws // 2
    up = _upsample_matrix(th, ws)
    return pl.pallas_call(
        functools.partial(_route_up_conv_kernel, slope=slope),
        out_shape=jax.ShapeDtypeStruct((n, hs * ws, CP), jnp.bfloat16),
        grid=(n, nht),
        in_specs=[
            pl.BlockSpec((1, th2 * ws2, CP), lambda i, j: (i, j, 0)),
            pl.BlockSpec((1, th * ws, CP), lambda i, j: (i, j, 0)),
            pl.BlockSpec((th * ws, th2 * ws2), lambda i, j: (0, 0)),
            pl.BlockSpec((CP, CP), lambda i, j: (0, 0)),
            pl.BlockSpec((CP, CP), lambda i, j: (0, 0)),
            pl.BlockSpec((1, CP), lambda i, j: (0, 0)),
        ],
        out_specs=pl.BlockSpec((1, th * ws, CP), lambda i, j: (i, j, 0)),
        compiler_params=pltpu.CompilerParams(
            dimension_semantics=("parallel", "parallel")),
    )(x_small, x_full, up, ws_w, wf_w, b)


def _yolo_lane_consts(anchors, stride):
    is_x = np.zeros((CP,), np.float32)
    is_y = np.zeros((CP,), np.float32)
    sel_wh = np.zeros((CP,), np.float32)
    anc = np.zeros((CP,), np.float32)
    scale = np.ones((CP,), np.float32)
    for a in range(NUM_ANCHORS):
        base = a * NB
        is_x[base + 0] = 1.0
        is_y[base + 1] = 1.0
        sel_wh[base + 2] = 1.0
        sel_wh[base + 3] = 1.0
        anc[base + 2] = float(anchors[a][0])
        anc[base + 3] = float(anchors[a][1])
        scale[base + 0] = stride
        scale[base + 1] = stride
    zero = np.zeros((CP,), np.float32)
    return jnp.asarray(np.stack([is_x, is_y, sel_wh, anc, scale, zero, zero, zero]))


def yolo_decode(head_rows, anchors, g, img_size, n):
    # head_rows: (n*g*g, CP) bf16 -> (n, num_anchors*g*g, NB) f32 predictions.
    stride = float(img_size) / float(g)
    consts = _yolo_lane_consts(anchors, stride)
    m = head_rows.shape[0]
    steps = _steps_for_rows(m)
    tr = m // steps
    dec = pl.pallas_call(
        functools.partial(_yolo_decode_kernel, g=g, tr=tr),
        out_shape=jax.ShapeDtypeStruct((m, CP), jnp.float32),
        grid=(steps,),
        in_specs=[pl.BlockSpec((tr, CP), lambda i: (i, 0)),
                  pl.BlockSpec((8, CP), lambda i: (0, 0))],
        out_specs=pl.BlockSpec((tr, CP), lambda i: (i, 0)),
        compiler_params=pltpu.CompilerParams(dimension_semantics=("parallel",)),
    )(head_rows, consts)
    dec = dec[:, :YOLO_CH].reshape(n, g * g, NUM_ANCHORS, NB)
    return dec.transpose(0, 2, 1, 3).reshape(n, NUM_ANCHORS * g * g, NB)


# --------------------------- params / full forward ---------------------------

def build_params(key, in_channels):
    params = {}
    chans = []
    c = in_channels
    pending_split = None
    for i, blk in enumerate(BLOCKS):
        t = blk["type"]
        if t == "convolutional":
            k, cout = blk["size"], blk["filters"]
            key, k1, k2, k3 = jax.random.split(key, 4)
            w = jax.random.normal(k1, (k * k, c, cout), jnp.float32) * (
                0.1 / np.sqrt(k * k * c))
            if blk["bn"]:
                scale = 1.0 + 0.05 * jax.random.normal(k2, (cout,), jnp.float32)
            else:
                scale = jnp.ones((cout,), jnp.float32)
            bias = 0.05 * jax.random.normal(k3, (1, cout), jnp.float32)
            w = w * scale[None, None, :]  # fold (synthetic) BN scale into weights
            bp = jnp.zeros((1, CP), jnp.float32).at[:, :cout].set(bias)
            if pending_split is not None and k == 1:
                # conv consuming a multi-source route: one padded weight per source
                w_split, off = [], 0
                for cs in pending_split:
                    wi = jnp.zeros((CP, CP), jnp.float32)
                    wi = wi.at[:cs, :cout].set(w[0, off:off + cs])
                    w_split.append(wi.astype(jnp.bfloat16))
                    off += cs
                params[i] = dict(w_split=w_split, b=bp)
            elif k == 1:
                wp_ = jnp.zeros((CP, CP), jnp.float32).at[:c, :cout].set(w[0])
                params[i] = dict(w=wp_.astype(jnp.bfloat16), b=bp)
            else:
                wp_ = jnp.zeros((k * k, CP, CP), jnp.float32).at[:, :c, :cout].set(w)
                params[i] = dict(w=wp_.reshape(k * k * CP, CP).astype(jnp.bfloat16),
                                 b=bp)
            pending_split = None
            c = cout
        elif t == "route":
            idxs = [int(l) for l in blk["layers"].split(",")]
            src_c = [chans[j] for j in idxs]
            c = sum(src_c)
            pending_split = src_c if len(src_c) > 1 else None
        elif t == "shortcut":
            c = chans[-1]
        chans.append(c)
    return params


def darknet_forward(x_nchw, params):
    n = x_nchw.shape[0]
    img_size = x_nchw.shape[2]
    hs = ws = img_size          # 16
    h2, w2 = hs // 2, ws // 2   # 8

    # NCHW -> NHWC bf16; one pad supplies both the 3x3 halo and the CP lane pad.
    x = jnp.transpose(x_nchw, (0, 2, 3, 1)).astype(jnp.bfloat16)
    cin = x.shape[-1]
    x = jnp.pad(x, ((0, 0), (1, 1), (1, 1), (0, CP - cin)))

    # blocks 0+1: 3x3 conv + leaky, with the 2x2/2 maxpool fused as an epilogue
    x0_rows, x1_rows = conv3x3(x, params[0]["w"], params[0]["b"],
                               hs=hs, ws=ws, slope=0.1, pool=True)

    # block 2: 3x3 conv + leaky (8x8)
    x1_img = jnp.pad(x1_rows.reshape(n, h2, w2, CP), ((0, 0), (1, 1), (1, 1), (0, 0)))
    x2_rows = conv3x3(x1_img, params[2]["w"], params[2]["b"], hs=h2, ws=w2, slope=0.1)
    x2_flat = x2_rows.reshape(n * h2 * w2, CP)

    # block 3: 1x1 conv + leaky
    x3_rows = conv1x1(x2_flat, params[3]["w"], params[3]["b"], 0.1)

    # block 4: 3x3 conv + leaky
    x3_img = jnp.pad(x3_rows.reshape(n, h2, w2, CP), ((0, 0), (1, 1), (1, 1), (0, 0)))
    x4_rows = conv3x3(x3_img, params[4]["w"], params[4]["b"], hs=h2, ws=w2, slope=0.1)
    x4_flat = x4_rows.reshape(n * h2 * w2, CP)

    # block 5 (shortcut x4 + x2) and block 8 (route "-3") are folded into their
    # consumers via (a + b) @ W == a @ W + b @ W.

    # block 6: 1x1 conv (linear) on the shortcut sum -> yolo head 1 raw
    h1_rows = conv1x1_sum2(x4_flat, x2_flat, params[6]["w"], params[6]["w"],
                           params[6]["b"], 1.0)
    # block 7: yolo decode on the 8x8 grid
    y1 = yolo_decode(h1_rows, BLOCKS[7]["anchors"], h2, img_size, n)

    # block 9: 1x1 conv + leaky on the (aliased) shortcut sum
    x9_rows = conv1x1_sum2(x4_flat, x2_flat, params[9]["w"], params[9]["w"],
                           params[9]["b"], 0.1)

    # blocks 10+11+12: 2x NN upsample + route concat with layer-0 output + 1x1
    # conv (linear), fused into one call (upsample applied as a 0/1 MXU matrix).
    h2_rows = conv1x1_route_upsample(
        x9_rows.reshape(n, h2 * w2, CP), x0_rows,
        params[12]["w_split"][0], params[12]["w_split"][1], params[12]["b"],
        hs=hs, ws=ws, slope=1.0)
    # block 13: yolo decode on the 16x16 grid
    y2 = yolo_decode(h2_rows.reshape(n * hs * ws, CP), BLOCKS[13]["anchors"],
                     hs, img_size, n)

    return jnp.concatenate([y1, y2], axis=1)  # eval-mode output


if __name__ == "__main__":
    key = jax.random.PRNGKey(0)
    kx, kp = jax.random.split(key)
    x = jax.random.normal(kx, (2, 4, 16, 16), jnp.float32)  # NCHW like PyTorch
    params = build_params(kp, in_channels=4)

    out = jax.jit(darknet_forward)(x, params)
    jax.block_until_ready(out)

    # yolo head 1: 3 anchors * 8*8 = 192 preds; head 2: 3 * 16*16 = 768 preds.
    assert out.shape == (2, 192 + 768, 5 + NUM_CLASSES), out.shape
    assert bool(jnp.all(jnp.isfinite(out)))
    print("KERNEL_OK")
</pallas_src>

<mosaic_0001>
module attributes {stable_mosaic.version = 11 : i64} {
  func.func @_conv3x3_kernel(%arg0: i32, %arg1: i32, %arg2: memref<1x18x18x128xbf16, #tpu.memory_space<vmem>>, %arg3: memref<1152x128xbf16, #tpu.memory_space<vmem>>, %arg4: memref<1x128xf32, #tpu.memory_space<vmem>>, %arg5: memref<1x128x128xbf16, #tpu.memory_space<vmem>>, %arg6: memref<1x32x128xbf16, #tpu.memory_space<vmem>>, %arg7: memref<128x1152xbf16, #tpu.memory_space<vmem>>) attributes {dimension_semantics = [#tpu.dimension_semantics<parallel>, #tpu.dimension_semantics<parallel>], iteration_bounds = array<i64: 2, 2>, scalar_prefetch = 0 : i64, scratch_operands = 1 : i64, tpu.core_type = #tpu.core_type<tc>, window_params = [{transform_indices = @transform_0, window_bounds = array<i64: 1, 18, 18, 128>}, {pipeline_mode = #tpu.pipeline_mode<synchronous>, transform_indices = @transform_1, window_bounds = array<i64: 1152, 128>}, {pipeline_mode = #tpu.pipeline_mode<synchronous>, transform_indices = @transform_2, window_bounds = array<i64: 1, 128>}, {transform_indices = @transform_3, window_bounds = array<i64: 1, 128, 128>}, {transform_indices = @transform_4, window_bounds = array<i64: 1, 32, 128>}]} {
    %c8_i32 = arith.constant 8 : i32
    %0 = arith.muli %arg1, %c8_i32 : i32
    %1 = tpu.assume_multiple %0, 8 : i32
    %c0_i32 = arith.constant 0 : i32
    %2 = arith.addi %1, %c0_i32 : i32
    %c0 = arith.constant 0 : index
    %3 = arith.index_cast %2 : i32 to index
    %c0_0 = arith.constant 0 : index
    %c0_1 = arith.constant 0 : index
    %4 = vector.load %arg2[%c0, %3, %c0_0, %c0_1] : memref<1x18x18x128xbf16, #tpu.memory_space<vmem>>, vector<1x8x16x128xbf16>
    %5 = vector.shape_cast %4 : vector<1x8x16x128xbf16> to vector<8x16x128xbf16>
    %6 = vector.shape_cast %5 : vector<8x16x128xbf16> to vector<128x128xbf16>
    %c0_2 = arith.constant 0 : index
    %c0_3 = arith.constant 0 : index
    %7 = vector.load %arg7[%c0_2, %c0_3] : memref<128x1152xbf16, #tpu.memory_space<vmem>>, vector<128x128xbf16>
    tpu.vector_store %arg7[%c0_2, %c0_3], %6 {strides = array<i32>} : memref<128x1152xbf16, #tpu.memory_space<vmem>>, vector<128x128xbf16>,
    %c0_i32_4 = arith.constant 0 : i32
    %8 = arith.addi %1, %c0_i32_4 : i32
    %c0_5 = arith.constant 0 : index
    %9 = arith.index_cast %8 : i32 to index
    %c1 = arith.constant 1 : index
    %c0_6 = arith.constant 0 : index
    %10 = vector.load %arg2[%c0_5, %9, %c1, %c0_6] : memref<1x18x18x128xbf16, #tpu.memory_space<vmem>>, vector<1x8x16x128xbf16>
    %11 = vector.shape_cast %10 : vector<1x8x16x128xbf16> to vector<8x16x128xbf16>
    %12 = vector.shape_cast %11 : vector<8x16x128xbf16> to vector<128x128xbf16>
    %c0_7 = arith.constant 0 : index
    %c128 = arith.constant 128 : index
    %13 = vector.load %arg7[%c0_7, %c128] : memref<128x1152xbf16, #tpu.memory_space<vmem>>, vector<128x128xbf16>
    tpu.vector_store %arg7[%c0_7, %c128], %12 {strides = array<i32>} : memref<128x1152xbf16, #tpu.memory_space<vmem>>, vector<128x128xbf16>,
    %c0_i32_8 = arith.constant 0 : i32
    %14 = arith.addi %1, %c0_i32_8 : i32
    %c0_9 = arith.constant 0 : index
    %15 = arith.index_cast %14 : i32 to index
    %c2 = arith.constant 2 : index
    %c0_10 = arith.constant 0 : index
    %16 = vector.load %arg2[%c0_9, %15, %c2, %c0_10] : memref<1x18x18x128xbf16, #tpu.memory_space<vmem>>, vector<1x8x16x128xbf16>
    %17 = vector.shape_cast %16 : vector<1x8x16x128xbf16> to vector<8x16x128xbf16>
    %18 = vector.shape_cast %17 : vector<8x16x128xbf16> to vector<128x128xbf16>
    %c0_11 = arith.constant 0 : index
    %c256 = arith.constant 256 : index
    %19 = vector.load %arg7[%c0_11, %c256] : memref<128x1152xbf16, #tpu.memory_space<vmem>>, vector<128x128xbf16>
    tpu.vector_store %arg7[%c0_11, %c256], %18 {strides = array<i32>} : memref<128x1152xbf16, #tpu.memory_space<vmem>>, vector<128x128xbf16>,
    %c1_i32 = arith.constant 1 : i32
    %20 = arith.addi %1, %c1_i32 : i32
    %c0_12 = arith.constant 0 : index
    %21 = arith.index_cast %20 : i32 to index
    %c0_13 = arith.constant 0 : index
    %c0_14 = arith.constant 0 : index
    %22 = vector.load %arg2[%c0_12, %21, %c0_13, %c0_14] : memref<1x18x18x128xbf16, #tpu.memory_space<vmem>>, vector<1x8x16x128xbf16>
    %23 = vector.shape_cast %22 : vector<1x8x16x128xbf16> to vector<8x16x128xbf16>
    %24 = vector.shape_cast %23 : vector<8x16x128xbf16> to vector<128x128xbf16>
    %c0_15 = arith.constant 0 : index
    %c384 = arith.constant 384 : index
    %25 = vector.load %arg7[%c0_15, %c384] : memref<128x1152xbf16, #tpu.memory_space<vmem>>, vector<128x128xbf16>
    tpu.vector_store %arg7[%c0_15, %c384], %24 {strides = array<i32>} : memref<128x1152xbf16, #tpu.memory_space<vmem>>, vector<128x128xbf16>,
    %c1_i32_16 = arith.constant 1 : i32
    %26 = arith.addi %1, %c1_i32_16 : i32
    %c0_17 = arith.constant 0 : index
    %27 = arith.index_cast %26 : i32 to index
    %c1_18 = arith.constant 1 : index
    %c0_19 = arith.constant 0 : index
    %28 = vector.load %arg2[%c0_17, %27, %c1_18, %c0_19] : memref<1x18x18x128xbf16, #tpu.memory_space<vmem>>, vector<1x8x16x128xbf16>
    %29 = vector.shape_cast %28 : vector<1x8x16x128xbf16> to vector<8x16x128xbf16>
    %30 = vector.shape_cast %29 : vector<8x16x128xbf16> to vector<128x128xbf16>
    %c0_20 = arith.constant 0 : index
    %c512 = arith.constant 512 : index
    %31 = vector.load %arg7[%c0_20, %c512] : memref<128x1152xbf16, #tpu.memory_space<vmem>>, vector<128x128xbf16>
    tpu.vector_store %arg7[%c0_20, %c512], %30 {strides = array<i32>} : memref<128x1152xbf16, #tpu.memory_space<vmem>>, vector<128x128xbf16>,
    %c1_i32_21 = arith.constant 1 : i32
    %32 = arith.addi %1, %c1_i32_21 : i32
    %c0_22 = arith.constant 0 : index
    %33 = arith.index_cast %32 : i32 to index
    %c2_23 = arith.constant 2 : index
    %c0_24 = arith.constant 0 : index
    %34 = vector.load %arg2[%c0_22, %33, %c2_23, %c0_24] : memref<1x18x18x128xbf16, #tpu.memory_space<vmem>>, vector<1x8x16x128xbf16>
    %35 = vector.shape_cast %34 : vector<1x8x16x128xbf16> to vector<8x16x128xbf16>
    %36 = vector.shape_cast %35 : vector<8x16x128xbf16> to vector<128x128xbf16>
    %c0_25 = arith.constant 0 : index
    %c640 = arith.constant 640 : index
    %37 = vector.load %arg7[%c0_25, %c640] : memref<128x1152xbf16, #tpu.memory_space<vmem>>, vector<128x128xbf16>
    tpu.vector_store %arg7[%c0_25, %c640], %36 {strides = array<i32>} : memref<128x1152xbf16, #tpu.memory_space<vmem>>, vector<128x128xbf16>,
    %c2_i32 = arith.constant 2 : i32
    %38 = arith.addi %1, %c2_i32 : i32
    %c0_26 = arith.constant 0 : index
    %39 = arith.index_cast %38 : i32 to index
    %c0_27 = arith.constant 0 : index
    %c0_28 = arith.constant 0 : index
    %40 = vector.load %arg2[%c0_26, %39, %c0_27, %c0_28] : memref<1x18x18x128xbf16, #tpu.memory_space<vmem>>, vector<1x8x16x128xbf16>
    %41 = vector.shape_cast %40 : vector<1x8x16x128xbf16> to vector<8x16x128xbf16>
    %42 = vector.shape_cast %41 : vector<8x16x128xbf16> to vector<128x128xbf16>
    %c0_29 = arith.constant 0 : index
    %c768 = arith.constant 768 : index
    %43 = vector.load %arg7[%c0_29, %c768] : memref<128x1152xbf16, #tpu.memory_space<vmem>>, vector<128x128xbf16>
    tpu.vector_store %arg7[%c0_29, %c768], %42 {strides = array<i32>} : memref<128x1152xbf16, #tpu.memory_space<vmem>>, vector<128x128xbf16>,
    %c2_i32_30 = arith.constant 2 : i32
    %44 = arith.addi %1, %c2_i32_30 : i32
    %c0_31 = arith.constant 0 : index
    %45 = arith.index_cast %44 : i32 to index
    %c1_32 = arith.constant 1 : index
    %c0_33 = arith.constant 0 : index
    %46 = vector.load %arg2[%c0_31, %45, %c1_32, %c0_33] : memref<1x18x18x128xbf16, #tpu.memory_space<vmem>>, vector<1x8x16x128xbf16>
    %47 = vector.shape_cast %46 : vector<1x8x16x128xbf16> to vector<8x16x128xbf16>
    %48 = vector.shape_cast %47 : vector<8x16x128xbf16> to vector<128x128xbf16>
    %c0_34 = arith.constant 0 : index
    %c896 = arith.constant 896 : index
    %49 = vector.load %arg7[%c0_34, %c896] : memref<128x1152xbf16, #tpu.memory_space<vmem>>, vector<128x128xbf16>
    tpu.vector_store %arg7[%c0_34, %c896], %48 {strides = array<i32>} : memref<128x1152xbf16, #tpu.memory_space<vmem>>, vector<128x128xbf16>,
    %c2_i32_35 = arith.constant 2 : i32
    %50 = arith.addi %1, %c2_i32_35 : i32
    %c0_36 = arith.constant 0 : index
    %51 = arith.index_cast %50 : i32 to index
    %c2_37 = arith.constant 2 : index
    %c0_38 = arith.constant 0 : index
    %52 = vector.load %arg2[%c0_36, %51, %c2_37, %c0_38] : memref<1x18x18x128xbf16, #tpu.memory_space<vmem>>, vector<1x8x16x128xbf16>
    %53 = vector.shape_cast %52 : vector<1x8x16x128xbf16> to vector<8x16x128xbf16>
    %54 = vector.shape_cast %53 : vector<8x16x128xbf16> to vector<128x128xbf16>
    %c0_39 = arith.constant 0 : index
    %c1024 = arith.constant 1024 : index
    %55 = vector.load %arg7[%c0_39, %c1024] : memref<128x1152xbf16, #tpu.memory_space<vmem>>, vector<128x128xbf16>
    tpu.vector_store %arg7[%c0_39, %c1024], %54 {strides = array<i32>} : memref<128x1152xbf16, #tpu.memory_space<vmem>>, vector<128x128xbf16>,
    %c0_40 = arith.constant 0 : index
    %c0_41 = arith.constant 0 : index
    %56 = vector.load %arg7[%c0_40, %c0_41] : memref<128x1152xbf16, #tpu.memory_space<vmem>>, vector<128x1152xbf16>
    %c0_42 = arith.constant 0 : index
    %c0_43 = arith.constant 0 : index
    %57 = vector.load %arg3[%c0_42, %c0_43] : memref<1152x128xbf16, #tpu.memory_space<vmem>>, vector<1152x128xbf16>
    %cst = arith.constant dense<0.000000e+00> : vector<128x128xf32>
    %58 = tpu.matmul %56, %57, %cst {dimension_numbers = #tpu.dot_dimension_numbers<[1], [0], [0], [1], [0, 0, 1, 1], [], []>} : vector<128x1152xbf16>, vector<1152x128xbf16>, vector<128x128xf32> -> vector<128x128xf32>
    %c0_44 = arith.constant 0 : index
    %c0_45 = arith.constant 0 : index
    %59 = vector.load %arg4[%c0_44, %c0_45] : memref<1x128xf32, #tpu.memory_space<vmem>>, vector<1x128xf32>
    %60 = vector.broadcast %59 : vector<1x128xf32> to vector<128x128xf32>
    %61 = arith.addf %58, %60 : vector<128x128xf32>
    %cst_46 = arith.constant 0.000000e+00 : f32
    %62 = vector.broadcast %cst_46 : f32 to vector<128x128xf32>
    %63 = arith.cmpf oge, %61, %62 : vector<128x128xf32>
    %cst_47 = arith.constant 1.000000e-01 : f32
    %64 = vector.broadcast %cst_47 : f32 to vector<128x128xf32>
    %65 = arith.mulf %61, %64 : vector<128x128xf32>
    %66 = arith.select %63, %61, %65 : vector<128x128xi1>, vector<128x128xf32>
    %67 = arith.truncf %66 : vector<128x128xf32> to vector<128x128xbf16>
    %c0_48 = arith.constant 0 : index
    %c0_49 = arith.constant 0 : index
    %c0_50 = arith.constant 0 : index
    %68 = vector.load %arg5[%c0_48, %c0_49, %c0_50] : memref<1x128x128xbf16, #tpu.memory_space<vmem>>, vector<1x128x128xbf16>
    %69 = vector.shape_cast %68 : vector<1x128x128xbf16> to vector<128x128xbf16>
    %70 = vector.shape_cast %67 : vector<128x128xbf16> to vector<1x128x128xbf16>
    tpu.vector_store %arg5[%c0_48, %c0_49, %c0_50], %70 {strides = array<i32>} : memref<1x128x128xbf16, #tpu.memory_space<vmem>>, vector<1x128x128xbf16>,
    %71 = vector.shape_cast %66 : vector<128x128xf32> to vector<64x2x128xf32>
    %72 = vector.extract_strided_slice %71 {offsets = [0, 0, 0], sizes = [64, 1, 128], strides = [1, 1, 1]} : vector<64x2x128xf32> to vector<64x1x128xf32>
    %73 = vector.shape_cast %72 : vector<64x1x128xf32> to vector<64x128xf32>
    %74 = vector.extract_strided_slice %71 {offsets = [0, 1, 0], sizes = [64, 1, 128], strides = [1, 1, 1]} : vector<64x2x128xf32> to vector<64x1x128xf32>
    %75 = vector.shape_cast %74 : vector<64x1x128xf32> to vector<64x128xf32>
    %76 = arith.maximumf %73, %75 : vector<64x128xf32>
    %77 = vector.shape_cast %76 : vector<64x128xf32> to vector<4x16x128xf32>
    %78 = vector.extract_strided_slice %77 {offsets = [0, 0, 0], sizes = [4, 8, 128], strides = [1, 1, 1]} : vector<4x16x128xf32> to vector<4x8x128xf32>
    %79 = vector.extract_strided_slice %77 {offsets = [0, 8, 0], sizes = [4, 8, 128], strides = [1, 1, 1]} : vector<4x16x128xf32> to vector<4x8x128xf32>
    %80 = arith.maximumf %78, %79 : vector<4x8x128xf32>
    %81 = vector.shape_cast %80 : vector<4x8x128xf32> to vector<32x128xf32>
    %82 = arith.truncf %81 : vector<32x128xf32> to vector<32x128xbf16>
    %c0_51 = arith.constant 0 : index
    %c0_52 = arith.constant 0 : index
    %c0_53 = arith.constant 0 : index
    %83 = vector.load %arg6[%c0_51, %c0_52, %c0_53] : memref<1x32x128xbf16, #tpu.memory_space<vmem>>, vector<1x32x128xbf16>
    %84 = vector.shape_cast %83 : vector<1x32x128xbf16> to vector<32x128xbf16>
    %85 = vector.shape_cast %82 : vector<32x128xbf16> to vector<1x32x128xbf16>
    tpu.vector_store %arg6[%c0_51, %c0_52, %c0_53], %85 {strides = array<i32>} : memref<1x32x128xbf16, #tpu.memory_space<vmem>>, vector<1x32x128xbf16>,
    return
  }
  func.func @transform_0(%arg0: i32, %arg1: i32) -> (i32, i32, i32, i32) {
    %c0_i32 = arith.constant 0 : i32
    %c0_i32_0 = arith.constant 0 : i32
    %c0_i32_1 = arith.constant 0 : i32
    %c0_i32_2 = arith.constant 0 : i32
    return %arg0, %c0_i32, %c0_i32_0, %c0_i32_1 : i32, i32, i32, i32
  }
  func.func @transform_1(%arg0: i32, %arg1: i32) -> (i32, i32) {
    %c0_i32 = arith.constant 0 : i32
    %c0_i32_0 = arith.constant 0 : i32
    %c0_i32_1 = arith.constant 0 : i32
    return %c0_i32, %c0_i32_0 : i32, i32
  }
  func.func @transform_2(%arg0: i32, %arg1: i32) -> (i32, i32) {
    %c0_i32 = arith.constant 0 : i32
    %c0_i32_0 = arith.constant 0 : i32
    %c0_i32_1 = arith.constant 0 : i32
    return %c0_i32, %c0_i32_0 : i32, i32
  }
  func.func @transform_3(%arg0: i32, %arg1: i32) -> (i32, i32, i32) {
    %c0_i32 = arith.constant 0 : i32
    %c0_i32_0 = arith.constant 0 : i32
    return %arg0, %arg1, %c0_i32 : i32, i32, i32
  }
  func.func @transform_4(%arg0: i32, %arg1: i32) -> (i32, i32, i32) {
    %c0_i32 = arith.constant 0 : i32
    %c0_i32_0 = arith.constant 0 : i32
    return %arg0, %arg1, %c0_i32 : i32, i32, i32
  }
}

module attributes {stable_mosaic.version = 11 : i64} {
  func.func @_conv3x3_kernel(%arg0: i32, %arg1: i32, %arg2: memref<1x10x10x128xbf16, #tpu.memory_space<vmem>>, %arg3: memref<1152x128xbf16, #tpu.memory_space<vmem>>, %arg4: memref<1x128xf32, #tpu.memory_space<vmem>>, %arg5: memref<1x32x128xbf16, #tpu.memory_space<vmem>>, %arg6: memref<32x1152xbf16, #tpu.memory_space<vmem>>) attributes {dimension_semantics = [#tpu.dimension_semantics<parallel>, #tpu.dimension_semantics<parallel>], iteration_bounds = array<i64: 2, 2>, scalar_prefetch = 0 : i64, scratch_operands = 1 : i64, tpu.core_type = #tpu.core_type<tc>, window_params = [{transform_indices = @transform_0, window_bounds = array<i64: 1, 10, 10, 128>}, {pipeline_mode = #tpu.pipeline_mode<synchronous>, transform_indices = @transform_1, window_bounds = array<i64: 1152, 128>}, {pipeline_mode = #tpu.pipeline_mode<synchronous>, transform_indices = @transform_2, window_bounds = array<i64: 1, 128>}, {transform_indices = @transform_3, window_bounds = array<i64: 1, 32, 128>}]} {
    %c4_i32 = arith.constant 4 : i32
    %0 = arith.muli %arg1, %c4_i32 : i32
    %1 = tpu.assume_multiple %0, 4 : i32
    %c0_i32 = arith.constant 0 : i32
    %2 = arith.addi %1, %c0_i32 : i32
    %c0 = arith.constant 0 : index
    %3 = arith.index_cast %2 : i32 to index
    %c0_0 = arith.constant 0 : index
    %c0_1 = arith.constant 0 : index
    %4 = vector.load %arg2[%c0, %3, %c0_0, %c0_1] : memref<1x10x10x128xbf16, #tpu.memory_space<vmem>>, vector<1x4x8x128xbf16>
    %5 = vector.shape_cast %4 : vector<1x4x8x128xbf16> to vector<4x8x128xbf16>
    %6 = vector.shape_cast %5 : vector<4x8x128xbf16> to vector<32x128xbf16>
    %c0_2 = arith.constant 0 : index
    %c0_3 = arith.constant 0 : index
    %7 = vector.load %arg6[%c0_2, %c0_3] : memref<32x1152xbf16, #tpu.memory_space<vmem>>, vector<32x128xbf16>
    tpu.vector_store %arg6[%c0_2, %c0_3], %6 {strides = array<i32>} : memref<32x1152xbf16, #tpu.memory_space<vmem>>, vector<32x128xbf16>,
    %c0_i32_4 = arith.constant 0 : i32
    %8 = arith.addi %1, %c0_i32_4 : i32
    %c0_5 = arith.constant 0 : index
    %9 = arith.index_cast %8 : i32 to index
    %c1 = arith.constant 1 : index
    %c0_6 = arith.constant 0 : index
    %10 = vector.load %arg2[%c0_5, %9, %c1, %c0_6] : memref<1x10x10x128xbf16, #tpu.memory_space<vmem>>, vector<1x4x8x128xbf16>
    %11 = vector.shape_cast %10 : vector<1x4x8x128xbf16> to vector<4x8x128xbf16>
    %12 = vector.shape_cast %11 : vector<4x8x128xbf16> to vector<32x128xbf16>
    %c0_7 = arith.constant 0 : index
    %c128 = arith.constant 128 : index
    %13 = vector.load %arg6[%c0_7, %c128] : memref<32x1152xbf16, #tpu.memory_space<vmem>>, vector<32x128xbf16>
    tpu.vector_store %arg6[%c0_7, %c128], %12 {strides = array<i32>} : memref<32x1152xbf16, #tpu.memory_space<vmem>>, vector<32x128xbf16>,
    %c0_i32_8 = arith.constant 0 : i32
    %14 = arith.addi %1, %c0_i32_8 : i32
    %c0_9 = arith.constant 0 : index
    %15 = arith.index_cast %14 : i32 to index
    %c2 = arith.constant 2 : index
    %c0_10 = arith.constant 0 : index
    %16 = vector.load %arg2[%c0_9, %15, %c2, %c0_10] : memref<1x10x10x128xbf16, #tpu.memory_space<vmem>>, vector<1x4x8x128xbf16>
    %17 = vector.shape_cast %16 : vector<1x4x8x128xbf16> to vector<4x8x128xbf16>
    %18 = vector.shape_cast %17 : vector<4x8x128xbf16> to vector<32x128xbf16>
    %c0_11 = arith.constant 0 : index
    %c256 = arith.constant 256 : index
    %19 = vector.load %arg6[%c0_11, %c256] : memref<32x1152xbf16, #tpu.memory_space<vmem>>, vector<32x128xbf16>
    tpu.vector_store %arg6[%c0_11, %c256], %18 {strides = array<i32>} : memref<32x1152xbf16, #tpu.memory_space<vmem>>, vector<32x128xbf16>,
    %c1_i32 = arith.constant 1 : i32
    %20 = arith.addi %1, %c1_i32 : i32
    %c0_12 = arith.constant 0 : index
    %21 = arith.index_cast %20 : i32 to index
    %c0_13 = arith.constant 0 : index
    %c0_14 = arith.constant 0 : index
    %22 = vector.load %arg2[%c0_12, %21, %c0_13, %c0_14] : memref<1x10x10x128xbf16, #tpu.memory_space<vmem>>, vector<1x4x8x128xbf16>
    %23 = vector.shape_cast %22 : vector<1x4x8x128xbf16> to vector<4x8x128xbf16>
    %24 = vector.shape_cast %23 : vector<4x8x128xbf16> to vector<32x128xbf16>
    %c0_15 = arith.constant 0 : index
    %c384 = arith.constant 384 : index
    %25 = vector.load %arg6[%c0_15, %c384] : memref<32x1152xbf16, #tpu.memory_space<vmem>>, vector<32x128xbf16>
    tpu.vector_store %arg6[%c0_15, %c384], %24 {strides = array<i32>} : memref<32x1152xbf16, #tpu.memory_space<vmem>>, vector<32x128xbf16>,
    %c1_i32_16 = arith.constant 1 : i32
    %26 = arith.addi %1, %c1_i32_16 : i32
    %c0_17 = arith.constant 0 : index
    %27 = arith.index_cast %26 : i32 to index
    %c1_18 = arith.constant 1 : index
    %c0_19 = arith.constant 0 : index
    %28 = vector.load %arg2[%c0_17, %27, %c1_18, %c0_19] : memref<1x10x10x128xbf16, #tpu.memory_space<vmem>>, vector<1x4x8x128xbf16>
    %29 = vector.shape_cast %28 : vector<1x4x8x128xbf16> to vector<4x8x128xbf16>
    %30 = vector.shape_cast %29 : vector<4x8x128xbf16> to vector<32x128xbf16>
    %c0_20 = arith.constant 0 : index
    %c512 = arith.constant 512 : index
    %31 = vector.load %arg6[%c0_20, %c512] : memref<32x1152xbf16, #tpu.memory_space<vmem>>, vector<32x128xbf16>
    tpu.vector_store %arg6[%c0_20, %c512], %30 {strides = array<i32>} : memref<32x1152xbf16, #tpu.memory_space<vmem>>, vector<32x128xbf16>,
    %c1_i32_21 = arith.constant 1 : i32
    %32 = arith.addi %1, %c1_i32_21 : i32
    %c0_22 = arith.constant 0 : index
    %33 = arith.index_cast %32 : i32 to index
    %c2_23 = arith.constant 2 : index
    %c0_24 = arith.constant 0 : index
    %34 = vector.load %arg2[%c0_22, %33, %c2_23, %c0_24] : memref<1x10x10x128xbf16, #tpu.memory_space<vmem>>, vector<1x4x8x128xbf16>
    %35 = vector.shape_cast %34 : vector<1x4x8x128xbf16> to vector<4x8x128xbf16>
    %36 = vector.shape_cast %35 : vector<4x8x128xbf16> to vector<32x128xbf16>
    %c0_25 = arith.constant 0 : index
    %c640 = arith.constant 640 : index
    %37 = vector.load %arg6[%c0_25, %c640] : memref<32x1152xbf16, #tpu.memory_space<vmem>>, vector<32x128xbf16>
    tpu.vector_store %arg6[%c0_25, %c640], %36 {strides = array<i32>} : memref<32x1152xbf16, #tpu.memory_space<vmem>>, vector<32x128xbf16>,
    %c2_i32 = arith.constant 2 : i32
    %38 = arith.addi %1, %c2_i32 : i32
    %c0_26 = arith.constant 0 : index
    %39 = arith.index_cast %38 : i32 to index
    %c0_27 = arith.constant 0 : index
    %c0_28 = arith.constant 0 : index
    %40 = vector.load %arg2[%c0_26, %39, %c0_27, %c0_28] : memref<1x10x10x128xbf16, #tpu.memory_space<vmem>>, vector<1x4x8x128xbf16>
    %41 = vector.shape_cast %40 : vector<1x4x8x128xbf16> to vector<4x8x128xbf16>
    %42 = vector.shape_cast %41 : vector<4x8x128xbf16> to vector<32x128xbf16>
    %c0_29 = arith.constant 0 : index
    %c768 = arith.constant 768 : index
    %43 = vector.load %arg6[%c0_29, %c768] : memref<32x1152xbf16, #tpu.memory_space<vmem>>, vector<32x128xbf16>
    tpu.vector_store %arg6[%c0_29, %c768], %42 {strides = array<i32>} : memref<32x1152xbf16, #tpu.memory_space<vmem>>, vector<32x128xbf16>,
    %c2_i32_30 = arith.constant 2 : i32
    %44 = arith.addi %1, %c2_i32_30 : i32
    %c0_31 = arith.constant 0 : index
    %45 = arith.index_cast %44 : i32 to index
    %c1_32 = arith.constant 1 : index
    %c0_33 = arith.constant 0 : index
    %46 = vector.load %arg2[%c0_31, %45, %c1_32, %c0_33] : memref<1x10x10x128xbf16, #tpu.memory_space<vmem>>, vector<1x4x8x128xbf16>
    %47 = vector.shape_cast %46 : vector<1x4x8x128xbf16> to vector<4x8x128xbf16>
    %48 = vector.shape_cast %47 : vector<4x8x128xbf16> to vector<32x128xbf16>
    %c0_34 = arith.constant 0 : index
    %c896 = arith.constant 896 : index
    %49 = vector.load %arg6[%c0_34, %c896] : memref<32x1152xbf16, #tpu.memory_space<vmem>>, vector<32x128xbf16>
    tpu.vector_store %arg6[%c0_34, %c896], %48 {strides = array<i32>} : memref<32x1152xbf16, #tpu.memory_space<vmem>>, vector<32x128xbf16>,
    %c2_i32_35 = arith.constant 2 : i32
    %50 = arith.addi %1, %c2_i32_35 : i32
    %c0_36 = arith.constant 0 : index
    %51 = arith.index_cast %50 : i32 to index
    %c2_37 = arith.constant 2 : index
    %c0_38 = arith.constant 0 : index
    %52 = vector.load %arg2[%c0_36, %51, %c2_37, %c0_38] : memref<1x10x10x128xbf16, #tpu.memory_space<vmem>>, vector<1x4x8x128xbf16>
    %53 = vector.shape_cast %52 : vector<1x4x8x128xbf16> to vector<4x8x128xbf16>
    %54 = vector.shape_cast %53 : vector<4x8x128xbf16> to vector<32x128xbf16>
    %c0_39 = arith.constant 0 : index
    %c1024 = arith.constant 1024 : index
    %55 = vector.load %arg6[%c0_39, %c1024] : memref<32x1152xbf16, #tpu.memory_space<vmem>>, vector<32x128xbf16>
    tpu.vector_store %arg6[%c0_39, %c1024], %54 {strides = array<i32>} : memref<32x1152xbf16, #tpu.memory_space<vmem>>, vector<32x128xbf16>,
    %c0_40 = arith.constant 0 : index
    %c0_41 = arith.constant 0 : index
    %56 = vector.load %arg6[%c0_40, %c0_41] : memref<32x1152xbf16, #tpu.memory_space<vmem>>, vector<32x1152xbf16>
    %c0_42 = arith.constant 0 : index
    %c0_43 = arith.constant 0 : index
    %57 = vector.load %arg3[%c0_42, %c0_43] : memref<1152x128xbf16, #tpu.memory_space<vmem>>, vector<1152x128xbf16>
    %cst = arith.constant dense<0.000000e+00> : vector<32x128xf32>
    %58 = tpu.matmul %56, %57, %cst {dimension_numbers = #tpu.dot_dimension_numbers<[1], [0], [0], [1], [0, 0, 1, 1], [], []>} : vector<32x1152xbf16>, vector<1152x128xbf16>, vector<32x128xf32> -> vector<32x128xf32>
    %c0_44 = arith.constant 0 : index
    %c0_45 = arith.constant 0 : index
    %59 = vector.load %arg4[%c0_44, %c0_45] : memref<1x128xf32, #tpu.memory_space<vmem>>, vector<1x128xf32>
    %60 = vector.broadcast %59 : vector<1x128xf32> to vector<32x128xf32>
    %61 = arith.addf %58, %60 : vector<32x128xf32>
    %cst_46 = arith.constant 0.000000e+00 : f32
    %62 = vector.broadcast %cst_46 : f32 to vector<32x128xf32>
    %63 = arith.cmpf oge, %61, %62 : vector<32x128xf32>
    %cst_47 = arith.constant 1.000000e-01 : f32
    %64 = vector.broadcast %cst_47 : f32 to vector<32x128xf32>
    %65 = arith.mulf %61, %64 : vector<32x128xf32>
    %66 = arith.select %63, %61, %65 : vector<32x128xi1>, vector<32x128xf32>
    %67 = arith.truncf %66 : vector<32x128xf32> to vector<32x128xbf16>
    %c0_48 = arith.constant 0 : index
    %c0_49 = arith.constant 0 : index
    %c0_50 = arith.constant 0 : index
    %68 = vector.load %arg5[%c0_48, %c0_49, %c0_50] : memref<1x32x128xbf16, #tpu.memory_space<vmem>>, vector<1x32x128xbf16>
    %69 = vector.shape_cast %68 : vector<1x32x128xbf16> to vector<32x128xbf16>
    %70 = vector.shape_cast %67 : vector<32x128xbf16> to vector<1x32x128xbf16>
    tpu.vector_store %arg5[%c0_48, %c0_49, %c0_50], %70 {strides = array<i32>} : memref<1x32x128xbf16, #tpu.memory_space<vmem>>, vector<1x32x128xbf16>,
    return
  }
  func.func @transform_0(%arg0: i32, %arg1: i32) -> (i32, i32, i32, i32) {
    %c0_i32 = arith.constant 0 : i32
    %c0_i32_0 = arith.constant 0 : i32
    %c0_i32_1 = arith.constant 0 : i32
    %c0_i32_2 = arith.constant 0 : i32
    return %arg0, %c0_i32, %c0_i32_0, %c0_i32_1 : i32, i32, i32, i32
  }
  func.func @transform_1(%arg0: i32, %arg1: i32) -> (i32, i32) {
    %c0_i32 = arith.constant 0 : i32
    %c0_i32_0 = arith.constant 0 : i32
    %c0_i32_1 = arith.constant 0 : i32
    return %c0_i32, %c0_i32_0 : i32, i32
  }
  func.func @transform_2(%arg0: i32, %arg1: i32) -> (i32, i32) {
    %c0_i32 = arith.constant 0 : i32
    %c0_i32_0 = arith.constant 0 : i32
    %c0_i32_1 = arith.constant 0 : i32
    return %c0_i32, %c0_i32_0 : i32, i32
  }
  func.func @transform_3(%arg0: i32, %arg1: i32) -> (i32, i32, i32) {
    %c0_i32 = arith.constant 0 : i32
    %c0_i32_0 = arith.constant 0 : i32
    return %arg0, %arg1, %c0_i32 : i32, i32, i32
  }
}

module attributes {stable_mosaic.version = 11 : i64} {
  func.func @_mm1_kernel(%arg0: i32, %arg1: memref<32x128xbf16, #tpu.memory_space<vmem>>, %arg2: memref<128x128xbf16, #tpu.memory_space<vmem>>, %arg3: memref<1x128xf32, #tpu.memory_space<vmem>>, %arg4: memref<32x128xbf16, #tpu.memory_space<vmem>>) attributes {dimension_semantics = [#tpu.dimension_semantics<parallel>], iteration_bounds = array<i64: 4>, scalar_prefetch = 0 : i64, scratch_operands = 0 : i64, tpu.core_type = #tpu.core_type<tc>, window_params = [{transform_indices = @transform_0, window_bounds = array<i64: 32, 128>}, {pipeline_mode = #tpu.pipeline_mode<synchronous>, transform_indices = @transform_1, window_bounds = array<i64: 128, 128>}, {pipeline_mode = #tpu.pipeline_mode<synchronous>, transform_indices = @transform_2, window_bounds = array<i64: 1, 128>}, {transform_indices = @transform_3, window_bounds = array<i64: 32, 128>}]} {
    %c0 = arith.constant 0 : index
    %c0_0 = arith.constant 0 : index
    %0 = vector.load %arg1[%c0, %c0_0] : memref<32x128xbf16, #tpu.memory_space<vmem>>, vector<32x128xbf16>
    %c0_1 = arith.constant 0 : index
    %c0_2 = arith.constant 0 : index
    %1 = vector.load %arg2[%c0_1, %c0_2] : memref<128x128xbf16, #tpu.memory_space<vmem>>, vector<128x128xbf16>
    %cst = arith.constant dense<0.000000e+00> : vector<32x128xf32>
    %2 = tpu.matmul %0, %1, %cst {dimension_numbers = #tpu.dot_dimension_numbers<[1], [0], [0], [1], [0, 0, 1, 1], [], []>} : vector<32x128xbf16>, vector<128x128xbf16>, vector<32x128xf32> -> vector<32x128xf32>
    %c0_3 = arith.constant 0 : index
    %c0_4 = arith.constant 0 : index
    %3 = vector.load %arg3[%c0_3, %c0_4] : memref<1x128xf32, #tpu.memory_space<vmem>>, vector<1x128xf32>
    %4 = vector.broadcast %3 : vector<1x128xf32> to vector<32x128xf32>
    %5 = arith.addf %2, %4 : vector<32x128xf32>
    %cst_5 = arith.constant 0.000000e+00 : f32
    %6 = vector.broadcast %cst_5 : f32 to vector<32x128xf32>
    %7 = arith.cmpf oge, %5, %6 : vector<32x128xf32>
    %cst_6 = arith.constant 1.000000e-01 : f32
    %8 = vector.broadcast %cst_6 : f32 to vector<32x128xf32>
    %9 = arith.mulf %5, %8 : vector<32x128xf32>
    %10 = arith.select %7, %5, %9 : vector<32x128xi1>, vector<32x128xf32>
    %11 = arith.truncf %10 : vector<32x128xf32> to vector<32x128xbf16>
    %c0_7 = arith.constant 0 : index
    %c0_8 = arith.constant 0 : index
    %12 = vector.load %arg4[%c0_7, %c0_8] : memref<32x128xbf16, #tpu.memory_space<vmem>>, vector<32x128xbf16>
    tpu.vector_store %arg4[%c0_7, %c0_8], %11 {strides = array<i32>} : memref<32x128xbf16, #tpu.memory_space<vmem>>, vector<32x128xbf16>,
    return
  }
  func.func @transform_0(%arg0: i32) -> (i32, i32) {
    %c0_i32 = arith.constant 0 : i32
    %c0_i32_0 = arith.constant 0 : i32
    return %arg0, %c0_i32 : i32, i32
  }
  func.func @transform_1(%arg0: i32) -> (i32, i32) {
    %c0_i32 = arith.constant 0 : i32
    %c0_i32_0 = arith.constant 0 : i32
    %c0_i32_1 = arith.constant 0 : i32
    return %c0_i32, %c0_i32_0 : i32, i32
  }
  func.func @transform_2(%arg0: i32) -> (i32, i32) {
    %c0_i32 = arith.constant 0 : i32
    %c0_i32_0 = arith.constant 0 : i32
    %c0_i32_1 = arith.constant 0 : i32
    return %c0_i32, %c0_i32_0 : i32, i32
  }
  func.func @transform_3(%arg0: i32) -> (i32, i32) {
    %c0_i32 = arith.constant 0 : i32
    %c0_i32_0 = arith.constant 0 : i32
    return %arg0, %c0_i32 : i32, i32
  }
}

module attributes {stable_mosaic.version = 11 : i64} {
  func.func @_mm2_kernel(%arg0: i32, %arg1: memref<32x128xbf16, #tpu.memory_space<vmem>>, %arg2: memref<32x128xbf16, #tpu.memory_space<vmem>>, %arg3: memref<128x128xbf16, #tpu.memory_space<vmem>>, %arg4: memref<128x128xbf16, #tpu.memory_space<vmem>>, %arg5: memref<1x128xf32, #tpu.memory_space<vmem>>, %arg6: memref<32x128xbf16, #tpu.memory_space<vmem>>) attributes {dimension_semantics = [#tpu.dimension_semantics<parallel>], iteration_bounds = array<i64: 4>, scalar_prefetch = 0 : i64, scratch_operands = 0 : i64, tpu.core_type = #tpu.core_type<tc>, window_params = [{transform_indices = @transform_0, window_bounds = array<i64: 32, 128>}, {transform_indices = @transform_1, window_bounds = array<i64: 32, 128>}, {pipeline_mode = #tpu.pipeline_mode<synchronous>, transform_indices = @transform_2, window_bounds = array<i64: 128, 128>}, {pipeline_mode = #tpu.pipeline_mode<synchronous>, transform_indices = @transform_3, window_bounds = array<i64: 128, 128>}, {pipeline_mode = #tpu.pipeline_mode<synchronous>, transform_indices = @transform_4, window_bounds = array<i64: 1, 128>}, {transform_indices = @transform_5, window_bounds = array<i64: 32, 128>}]} {
    %c0 = arith.constant 0 : index
    %c0_0 = arith.constant 0 : index
    %0 = vector.load %arg1[%c0, %c0_0] : memref<32x128xbf16, #tpu.memory_space<vmem>>, vector<32x128xbf16>
    %c0_1 = arith.constant 0 : index
    %c0_2 = arith.constant 0 : index
    %1 = vector.load %arg3[%c0_1, %c0_2] : memref<128x128xbf16, #tpu.memory_space<vmem>>, vector<128x128xbf16>
    %cst = arith.constant dense<0.000000e+00> : vector<32x128xf32>
    %2 = tpu.matmul %0, %1, %cst {dimension_numbers = #tpu.dot_dimension_numbers<[1], [0], [0], [1], [0, 0, 1, 1], [], []>} : vector<32x128xbf16>, vector<128x128xbf16>, vector<32x128xf32> -> vector<32x128xf32>
    %c0_3 = arith.constant 0 : index
    %c0_4 = arith.constant 0 : index
    %3 = vector.load %arg2[%c0_3, %c0_4] : memref<32x128xbf16, #tpu.memory_space<vmem>>, vector<32x128xbf16>
    %c0_5 = arith.constant 0 : index
    %c0_6 = arith.constant 0 : index
    %4 = vector.load %arg4[%c0_5, %c0_6] : memref<128x128xbf16, #tpu.memory_space<vmem>>, vector<128x128xbf16>
    %cst_7 = arith.constant dense<0.000000e+00> : vector<32x128xf32>
    %5 = tpu.matmul %3, %4, %cst_7 {dimension_numbers = #tpu.dot_dimension_numbers<[1], [0], [0], [1], [0, 0, 1, 1], [], []>} : vector<32x128xbf16>, vector<128x128xbf16>, vector<32x128xf32> -> vector<32x128xf32>
    %6 = arith.addf %2, %5 : vector<32x128xf32>
    %c0_8 = arith.constant 0 : index
    %c0_9 = arith.constant 0 : index
    %7 = vector.load %arg5[%c0_8, %c0_9] : memref<1x128xf32, #tpu.memory_space<vmem>>, vector<1x128xf32>
    %8 = vector.broadcast %7 : vector<1x128xf32> to vector<32x128xf32>
    %9 = arith.addf %6, %8 : vector<32x128xf32>
    %cst_10 = arith.constant 0.000000e+00 : f32
    %10 = vector.broadcast %cst_10 : f32 to vector<32x128xf32>
    %11 = arith.cmpf oge, %9, %10 : vector<32x128xf32>
    %cst_11 = arith.constant 1.000000e-01 : f32
    %12 = vector.broadcast %cst_11 : f32 to vector<32x128xf32>
    %13 = arith.mulf %9, %12 : vector<32x128xf32>
    %14 = arith.select %11, %9, %13 : vector<32x128xi1>, vector<32x128xf32>
    %15 = arith.truncf %14 : vector<32x128xf32> to vector<32x128xbf16>
    %c0_12 = arith.constant 0 : index
    %c0_13 = arith.constant 0 : index
    %16 = vector.load %arg6[%c0_12, %c0_13] : memref<32x128xbf16, #tpu.memory_space<vmem>>, vector<32x128xbf16>
    tpu.vector_store %arg6[%c0_12, %c0_13], %15 {strides = array<i32>} : memref<32x128xbf16, #tpu.memory_space<vmem>>, vector<32x128xbf16>,
    return
  }
  func.func @transform_0(%arg0: i32) -> (i32, i32) {
    %c0_i32 = arith.constant 0 : i32
    %c0_i32_0 = arith.constant 0 : i32
    return %arg0, %c0_i32 : i32, i32
  }
  func.func @transform_1(%arg0: i32) -> (i32, i32) {
    %c0_i32 = arith.constant 0 : i32
    %c0_i32_0 = arith.constant 0 : i32
    return %arg0, %c0_i32 : i32, i32
  }
  func.func @transform_2(%arg0: i32) -> (i32, i32) {
    %c0_i32 = arith.constant 0 : i32
    %c0_i32_0 = arith.constant 0 : i32
    %c0_i32_1 = arith.constant 0 : i32
    return %c0_i32, %c0_i32_0 : i32, i32
  }
  func.func @transform_3(%arg0: i32) -> (i32, i32) {
    %c0_i32 = arith.constant 0 : i32
    %c0_i32_0 = arith.constant 0 : i32
    %c0_i32_1 = arith.constant 0 : i32
    return %c0_i32, %c0_i32_0 : i32, i32
  }
  func.func @transform_4(%arg0: i32) -> (i32, i32) {
    %c0_i32 = arith.constant 0 : i32
    %c0_i32_0 = arith.constant 0 : i32
    %c0_i32_1 = arith.constant 0 : i32
    return %c0_i32, %c0_i32_0 : i32, i32
  }
  func.func @transform_5(%arg0: i32) -> (i32, i32) {
    %c0_i32 = arith.constant 0 : i32
    %c0_i32_0 = arith.constant 0 : i32
    return %arg0, %c0_i32 : i32, i32
  }
}

module attributes {stable_mosaic.version = 11 : i64} {
  func.func @_mm2_kernel(%arg0: i32, %arg1: memref<32x128xbf16, #tpu.memory_space<vmem>>, %arg2: memref<32x128xbf16, #tpu.memory_space<vmem>>, %arg3: memref<128x128xbf16, #tpu.memory_space<vmem>>, %arg4: memref<128x128xbf16, #tpu.memory_space<vmem>>, %arg5: memref<1x128xf32, #tpu.memory_space<vmem>>, %arg6: memref<32x128xbf16, #tpu.memory_space<vmem>>) attributes {dimension_semantics = [#tpu.dimension_semantics<parallel>], iteration_bounds = array<i64: 4>, scalar_prefetch = 0 : i64, scratch_operands = 0 : i64, tpu.core_type = #tpu.core_type<tc>, window_params = [{transform_indices = @transform_0, window_bounds = array<i64: 32, 128>}, {transform_indices = @transform_1, window_bounds = array<i64: 32, 128>}, {pipeline_mode = #tpu.pipeline_mode<synchronous>, transform_indices = @transform_2, window_bounds = array<i64: 128, 128>}, {pipeline_mode = #tpu.pipeline_mode<synchronous>, transform_indices = @transform_3, window_bounds = array<i64: 128, 128>}, {pipeline_mode = #tpu.pipeline_mode<synchronous>, transform_indices = @transform_4, window_bounds = array<i64: 1, 128>}, {transform_indices = @transform_5, window_bounds = array<i64: 32, 128>}]} {
    %c0 = arith.constant 0 : index
    %c0_0 = arith.constant 0 : index
    %0 = vector.load %arg1[%c0, %c0_0] : memref<32x128xbf16, #tpu.memory_space<vmem>>, vector<32x128xbf16>
    %c0_1 = arith.constant 0 : index
    %c0_2 = arith.constant 0 : index
    %1 = vector.load %arg3[%c0_1, %c0_2] : memref<128x128xbf16, #tpu.memory_space<vmem>>, vector<128x128xbf16>
    %cst = arith.constant dense<0.000000e+00> : vector<32x128xf32>
    %2 = tpu.matmul %0, %1, %cst {dimension_numbers = #tpu.dot_dimension_numbers<[1], [0], [0], [1], [0, 0, 1, 1], [], []>} : vector<32x128xbf16>, vector<128x128xbf16>, vector<32x128xf32> -> vector<32x128xf32>
    %c0_3 = arith.constant 0 : index
    %c0_4 = arith.constant 0 : index
    %3 = vector.load %arg2[%c0_3, %c0_4] : memref<32x128xbf16, #tpu.memory_space<vmem>>, vector<32x128xbf16>
    %c0_5 = arith.constant 0 : index
    %c0_6 = arith.constant 0 : index
    %4 = vector.load %arg4[%c0_5, %c0_6] : memref<128x128xbf16, #tpu.memory_space<vmem>>, vector<128x128xbf16>
    %cst_7 = arith.constant dense<0.000000e+00> : vector<32x128xf32>
    %5 = tpu.matmul %3, %4, %cst_7 {dimension_numbers = #tpu.dot_dimension_numbers<[1], [0], [0], [1], [0, 0, 1, 1], [], []>} : vector<32x128xbf16>, vector<128x128xbf16>, vector<32x128xf32> -> vector<32x128xf32>
    %6 = arith.addf %2, %5 : vector<32x128xf32>
    %c0_8 = arith.constant 0 : index
    %c0_9 = arith.constant 0 : index
    %7 = vector.load %arg5[%c0_8, %c0_9] : memref<1x128xf32, #tpu.memory_space<vmem>>, vector<1x128xf32>
    %8 = vector.broadcast %7 : vector<1x128xf32> to vector<32x128xf32>
    %9 = arith.addf %6, %8 : vector<32x128xf32>
    %10 = arith.truncf %9 : vector<32x128xf32> to vector<32x128xbf16>
    %c0_10 = arith.constant 0 : index
    %c0_11 = arith.constant 0 : index
    %11 = vector.load %arg6[%c0_10, %c0_11] : memref<32x128xbf16, #tpu.memory_space<vmem>>, vector<32x128xbf16>
    tpu.vector_store %arg6[%c0_10, %c0_11], %10 {strides = array<i32>} : memref<32x128xbf16, #tpu.memory_space<vmem>>, vector<32x128xbf16>,
    return
  }
  func.func @transform_0(%arg0: i32) -> (i32, i32) {
    %c0_i32 = arith.constant 0 : i32
    %c0_i32_0 = arith.constant 0 : i32
    return %arg0, %c0_i32 : i32, i32
  }
  func.func @transform_1(%arg0: i32) -> (i32, i32) {
    %c0_i32 = arith.constant 0 : i32
    %c0_i32_0 = arith.constant 0 : i32
    return %arg0, %c0_i32 : i32, i32
  }
  func.func @transform_2(%arg0: i32) -> (i32, i32) {
    %c0_i32 = arith.constant 0 : i32
    %c0_i32_0 = arith.constant 0 : i32
    %c0_i32_1 = arith.constant 0 : i32
    return %c0_i32, %c0_i32_0 : i32, i32
  }
  func.func @transform_3(%arg0: i32) -> (i32, i32) {
    %c0_i32 = arith.constant 0 : i32
    %c0_i32_0 = arith.constant 0 : i32
    %c0_i32_1 = arith.constant 0 : i32
    return %c0_i32, %c0_i32_0 : i32, i32
  }
  func.func @transform_4(%arg0: i32) -> (i32, i32) {
    %c0_i32 = arith.constant 0 : i32
    %c0_i32_0 = arith.constant 0 : i32
    %c0_i32_1 = arith.constant 0 : i32
    return %c0_i32, %c0_i32_0 : i32, i32
  }
  func.func @transform_5(%arg0: i32) -> (i32, i32) {
    %c0_i32 = arith.constant 0 : i32
    %c0_i32_0 = arith.constant 0 : i32
    return %arg0, %c0_i32 : i32, i32
  }
}

module attributes {stable_mosaic.version = 11 : i64} {
  func.func @_route_up_conv_kernel(%arg0: i32, %arg1: i32, %arg2: memref<1x32x128xbf16, #tpu.memory_space<vmem>>, %arg3: memref<1x128x128xbf16, #tpu.memory_space<vmem>>, %arg4: memref<128x32xbf16, #tpu.memory_space<vmem>>, %arg5: memref<128x128xbf16, #tpu.memory_space<vmem>>, %arg6: memref<128x128xbf16, #tpu.memory_space<vmem>>, %arg7: memref<1x128xf32, #tpu.memory_space<vmem>>, %arg8: memref<1x128x128xbf16, #tpu.memory_space<vmem>>) attributes {dimension_semantics = [#tpu.dimension_semantics<parallel>, #tpu.dimension_semantics<parallel>], iteration_bounds = array<i64: 2, 2>, scalar_prefetch = 0 : i64, scratch_operands = 0 : i64, tpu.core_type = #tpu.core_type<tc>, window_params = [{transform_indices = @transform_0, window_bounds = array<i64: 1, 32, 128>}, {transform_indices = @transform_1, window_bounds = array<i64: 1, 128, 128>}, {pipeline_mode = #tpu.pipeline_mode<synchronous>, transform_indices = @transform_2, window_bounds = array<i64: 128, 32>}, {pipeline_mode = #tpu.pipeline_mode<synchronous>, transform_indices = @transform_3, window_bounds = array<i64: 128, 128>}, {pipeline_mode = #tpu.pipeline_mode<synchronous>, transform_indices = @transform_4, window_bounds = array<i64: 128, 128>}, {pipeline_mode = #tpu.pipeline_mode<synchronous>, transform_indices = @transform_5, window_bounds = array<i64: 1, 128>}, {transform_indices = @transform_6, window_bounds = array<i64: 1, 128, 128>}]} {
    %c0 = arith.constant 0 : index
    %c0_0 = arith.constant 0 : index
    %0 = vector.load %arg4[%c0, %c0_0] : memref<128x32xbf16, #tpu.memory_space<vmem>>, vector<128x32xbf16>
    %c0_1 = arith.constant 0 : index
    %c0_2 = arith.constant 0 : index
    %c0_3 = arith.constant 0 : index
    %1 = vector.load %arg2[%c0_1, %c0_2, %c0_3] : memref<1x32x128xbf16, #tpu.memory_space<vmem>>, vector<1x32x128xbf16>
    %2 = vector.shape_cast %1 : vector<1x32x128xbf16> to vector<32x128xbf16>
    %cst = arith.constant dense<0.000000e+00> : vector<128x128xf32>
    %3 = tpu.matmul %0, %2, %cst {dimension_numbers = #tpu.dot_dimension_numbers<[1], [0], [0], [1], [0, 0, 1, 1], [], []>} : vector<128x32xbf16>, vector<32x128xbf16>, vector<128x128xf32> -> vector<128x128xf32>
    %4 = arith.truncf %3 : vector<128x128xf32> to vector<128x128xbf16>
    %c0_4 = arith.constant 0 : index
    %c0_5 = arith.constant 0 : index
    %5 = vector.load %arg5[%c0_4, %c0_5] : memref<128x128xbf16, #tpu.memory_space<vmem>>, vector<128x128xbf16>
    %cst_6 = arith.constant dense<0.000000e+00> : vector<128x128xf32>
    %6 = tpu.matmul %4, %5, %cst_6 {dimension_numbers = #tpu.dot_dimension_numbers<[1], [0], [0], [1], [0, 0, 1, 1], [], []>} : vector<128x128xbf16>, vector<128x128xbf16>, vector<128x128xf32> -> vector<128x128xf32>
    %c0_7 = arith.constant 0 : index
    %c0_8 = arith.constant 0 : index
    %c0_9 = arith.constant 0 : index
    %7 = vector.load %arg3[%c0_7, %c0_8, %c0_9] : memref<1x128x128xbf16, #tpu.memory_space<vmem>>, vector<1x128x128xbf16>
    %8 = vector.shape_cast %7 : vector<1x128x128xbf16> to vector<128x128xbf16>
    %c0_10 = arith.constant 0 : index
    %c0_11 = arith.constant 0 : index
    %9 = vector.load %arg6[%c0_10, %c0_11] : memref<128x128xbf16, #tpu.memory_space<vmem>>, vector<128x128xbf16>
    %cst_12 = arith.constant dense<0.000000e+00> : vector<128x128xf32>
    %10 = tpu.matmul %8, %9, %cst_12 {dimension_numbers = #tpu.dot_dimension_numbers<[1], [0], [0], [1], [0, 0, 1, 1], [], []>} : vector<128x128xbf16>, vector<128x128xbf16>, vector<128x128xf32> -> vector<128x128xf32>
    %11 = arith.addf %6, %10 : vector<128x128xf32>
    %c0_13 = arith.constant 0 : index
    %c0_14 = arith.constant 0 : index
    %12 = vector.load %arg7[%c0_13, %c0_14] : memref<1x128xf32, #tpu.memory_space<vmem>>, vector<1x128xf32>
    %13 = vector.broadcast %12 : vector<1x128xf32> to vector<128x128xf32>
    %14 = arith.addf %11, %13 : vector<128x128xf32>
    %15 = arith.truncf %14 : vector<128x128xf32> to vector<128x128xbf16>
    %c0_15 = arith.constant 0 : index
    %c0_16 = arith.constant 0 : index
    %c0_17 = arith.constant 0 : index
    %16 = vector.load %arg8[%c0_15, %c0_16, %c0_17] : memref<1x128x128xbf16, #tpu.memory_space<vmem>>, vector<1x128x128xbf16>
    %17 = vector.shape_cast %16 : vector<1x128x128xbf16> to vector<128x128xbf16>
    %18 = vector.shape_cast %15 : vector<128x128xbf16> to vector<1x128x128xbf16>
    tpu.vector_store %arg8[%c0_15, %c0_16, %c0_17], %18 {strides = array<i32>} : memref<1x128x128xbf16, #tpu.memory_space<vmem>>, vector<1x128x128xbf16>,
    return
  }
  func.func @transform_0(%arg0: i32, %arg1: i32) -> (i32, i32, i32) {
    %c0_i32 = arith.constant 0 : i32
    %c0_i32_0 = arith.constant 0 : i32
    return %arg0, %arg1, %c0_i32 : i32, i32, i32
  }
  func.func @transform_1(%arg0: i32, %arg1: i32) -> (i32, i32, i32) {
    %c0_i32 = arith.constant 0 : i32
    %c0_i32_0 = arith.constant 0 : i32
    return %arg0, %arg1, %c0_i32 : i32, i32, i32
  }
  func.func @transform_2(%arg0: i32, %arg1: i32) -> (i32, i32) {
    %c0_i32 = arith.constant 0 : i32
    %c0_i32_0 = arith.constant 0 : i32
    %c0_i32_1 = arith.constant 0 : i32
    return %c0_i32, %c0_i32_0 : i32, i32
  }
  func.func @transform_3(%arg0: i32, %arg1: i32) -> (i32, i32) {
    %c0_i32 = arith.constant 0 : i32
    %c0_i32_0 = arith.constant 0 : i32
    %c0_i32_1 = arith.constant 0 : i32
    return %c0_i32, %c0_i32_0 : i32, i32
  }
  func.func @transform_4(%arg0: i32, %arg1: i32) -> (i32, i32) {
    %c0_i32 = arith.constant 0 : i32
    %c0_i32_0 = arith.constant 0 : i32
    %c0_i32_1 = arith.constant 0 : i32
    return %c0_i32, %c0_i32_0 : i32, i32
  }
  func.func @transform_5(%arg0: i32, %arg1: i32) -> (i32, i32) {
    %c0_i32 = arith.constant 0 : i32
    %c0_i32_0 = arith.constant 0 : i32
    %c0_i32_1 = arith.constant 0 : i32
    return %c0_i32, %c0_i32_0 : i32, i32
  }
  func.func @transform_6(%arg0: i32, %arg1: i32) -> (i32, i32, i32) {
    %c0_i32 = arith.constant 0 : i32
    %c0_i32_0 = arith.constant 0 : i32
    return %arg0, %arg1, %c0_i32 : i32, i32, i32
  }
}

module attributes {stable_mosaic.version = 11 : i64} {
  func.func @_yolo_decode_kernel(%arg0: i32, %arg1: memref<32x128xbf16, #tpu.memory_space<vmem>>, %arg2: memref<8x128xf32, #tpu.memory_space<vmem>>, %arg3: memref<32x128xf32, #tpu.memory_space<vmem>>) attributes {dimension_semantics = [#tpu.dimension_semantics<parallel>], iteration_bounds = array<i64: 4>, scalar_prefetch = 0 : i64, scratch_operands = 0 : i64, tpu.core_type = #tpu.core_type<tc>, window_params = [{transform_indices = @transform_0, window_bounds = array<i64: 32, 128>}, {pipeline_mode = #tpu.pipeline_mode<synchronous>, transform_indices = @transform_1, window_bounds = array<i64: 8, 128>}, {transform_indices = @transform_2, window_bounds = array<i64: 32, 128>}]} {
    %c32_i32 = arith.constant 32 : i32
    %0 = arith.muli %arg0, %c32_i32 : i32
    %1 = tpu.iota {dimensions = array<i32: 0>} : vector<32x1xi32>
    %2 = vector.broadcast %0 : i32 to vector<32x1xi32>
    %3 = arith.addi %2, %1 : vector<32x1xi32>
    %c63_i32 = arith.constant 63 : i32
    %4 = vector.broadcast %c63_i32 : i32 to vector<32x1xi32>
    %5 = arith.andi %3, %4 : vector<32x1xi32>
    %c7_i32 = arith.constant 7 : i32
    %6 = vector.broadcast %c7_i32 : i32 to vector<32x1xi32>
    %7 = arith.andi %5, %6 : vector<32x1xi32>
    %8 = arith.sitofp %7 : vector<32x1xi32> to vector<32x1xf32>
    %c3_i32 = arith.constant 3 : i32
    %9 = vector.broadcast %c3_i32 : i32 to vector<32x1xi32>
    %10 = arith.shrsi %5, %9 : vector<32x1xi32>
    %11 = arith.sitofp %10 : vector<32x1xi32> to vector<32x1xf32>
    %c0 = arith.constant 0 : index
    %c0_0 = arith.constant 0 : index
    %12 = vector.load %arg2[%c0, %c0_0] : memref<8x128xf32, #tpu.memory_space<vmem>>, vector<1x128xf32>
    %c1 = arith.constant 1 : index
    %c0_1 = arith.constant 0 : index
    %13 = vector.load %arg2[%c1, %c0_1] : memref<8x128xf32, #tpu.memory_space<vmem>>, vector<1x128xf32>
    %c2 = arith.constant 2 : index
    %c0_2 = arith.constant 0 : index
    %14 = vector.load %arg2[%c2, %c0_2] : memref<8x128xf32, #tpu.memory_space<vmem>>, vector<1x128xf32>
    %c3 = arith.constant 3 : index
    %c0_3 = arith.constant 0 : index
    %15 = vector.load %arg2[%c3, %c0_3] : memref<8x128xf32, #tpu.memory_space<vmem>>, vector<1x128xf32>
    %c4 = arith.constant 4 : index
    %c0_4 = arith.constant 0 : index
    %16 = vector.load %arg2[%c4, %c0_4] : memref<8x128xf32, #tpu.memory_space<vmem>>, vector<1x128xf32>
    %c0_5 = arith.constant 0 : index
    %c0_6 = arith.constant 0 : index
    %17 = vector.load %arg1[%c0_5, %c0_6] : memref<32x128xbf16, #tpu.memory_space<vmem>>, vector<32x128xbf16>
    %18 = arith.extf %17 : vector<32x128xbf16> to vector<32x128xf32>
    %19 = arith.negf %18 : vector<32x128xf32>
    %20 = math.exp %19 : vector<32x128xf32>
    %cst = arith.constant 1.000000e+00 : f32
    %21 = vector.broadcast %cst : f32 to vector<32x128xf32>
    %22 = arith.addf %21, %20 : vector<32x128xf32>
    %23 = arith.divf %21, %22 : vector<32x128xf32>
    %24 = math.exp %18 : vector<32x128xf32>
    %25 = vector.broadcast %12 : vector<1x128xf32> to vector<32x128xf32>
    %26 = vector.broadcast %8 : vector<32x1xf32> to vector<32x128xf32>
    %27 = arith.mulf %25, %26 : vector<32x128xf32>
    %28 = arith.addf %23, %27 : vector<32x128xf32>
    %29 = vector.broadcast %13 : vector<1x128xf32> to vector<32x128xf32>
    %30 = vector.broadcast %11 : vector<32x1xf32> to vector<32x128xf32>
    %31 = arith.mulf %29, %30 : vector<32x128xf32>
    %32 = arith.addf %28, %31 : vector<32x128xf32>
    %33 = vector.broadcast %16 : vector<1x128xf32> to vector<32x128xf32>
    %34 = arith.mulf %32, %33 : vector<32x128xf32>
    %35 = vector.broadcast %15 : vector<1x128xf32> to vector<32x128xf32>
    %36 = arith.mulf %24, %35 : vector<32x128xf32>
    %37 = vector.broadcast %14 : vector<1x128xf32> to vector<32x128xf32>
    %38 = arith.mulf %37, %36 : vector<32x128xf32>
    %cst_7 = arith.constant 1.000000e+00 : f32
    %39 = vector.broadcast %cst_7 : f32 to vector<1x128xf32>
    %40 = arith.subf %39, %14 : vector<1x128xf32>
    %41 = vector.broadcast %40 : vector<1x128xf32> to vector<32x128xf32>
    %42 = arith.mulf %41, %34 : vector<32x128xf32>
    %43 = arith.addf %38, %42 : vector<32x128xf32>
    %c0_8 = arith.constant 0 : index
    %c0_9 = arith.constant 0 : index
    %44 = vector.load %arg3[%c0_8, %c0_9] : memref<32x128xf32, #tpu.memory_space<vmem>>, vector<32x128xf32>
    tpu.vector_store %arg3[%c0_8, %c0_9], %43 {strides = array<i32>} : memref<32x128xf32, #tpu.memory_space<vmem>>, vector<32x128xf32>,
    return
  }
  func.func @transform_0(%arg0: i32) -> (i32, i32) {
    %c0_i32 = arith.constant 0 : i32
    %c0_i32_0 = arith.constant 0 : i32
    return %arg0, %c0_i32 : i32, i32
  }
  func.func @transform_1(%arg0: i32) -> (i32, i32) {
    %c0_i32 = arith.constant 0 : i32
    %c0_i32_0 = arith.constant 0 : i32
    %c0_i32_1 = arith.constant 0 : i32
    return %c0_i32, %c0_i32_0 : i32, i32
  }
  func.func @transform_2(%arg0: i32) -> (i32, i32) {
    %c0_i32 = arith.constant 0 : i32
    %c0_i32_0 = arith.constant 0 : i32
    return %arg0, %c0_i32 : i32, i32
  }
}

module attributes {stable_mosaic.version = 11 : i64} {
  func.func @_yolo_decode_kernel(%arg0: i32, %arg1: memref<128x128xbf16, #tpu.memory_space<vmem>>, %arg2: memref<8x128xf32, #tpu.memory_space<vmem>>, %arg3: memref<128x128xf32, #tpu.memory_space<vmem>>) attributes {dimension_semantics = [#tpu.dimension_semantics<parallel>], iteration_bounds = array<i64: 4>, scalar_prefetch = 0 : i64, scratch_operands = 0 : i64, tpu.core_type = #tpu.core_type<tc>, window_params = [{transform_indices = @transform_0, window_bounds = array<i64: 128, 128>}, {pipeline_mode = #tpu.pipeline_mode<synchronous>, transform_indices = @transform_1, window_bounds = array<i64: 8, 128>}, {transform_indices = @transform_2, window_bounds = array<i64: 128, 128>}]} {
    %c128_i32 = arith.constant 128 : i32
    %0 = arith.muli %arg0, %c128_i32 : i32
    %1 = tpu.iota {dimensions = array<i32: 0>} : vector<128x1xi32>
    %2 = vector.broadcast %0 : i32 to vector<128x1xi32>
    %3 = arith.addi %2, %1 : vector<128x1xi32>
    %c255_i32 = arith.constant 255 : i32
    %4 = vector.broadcast %c255_i32 : i32 to vector<128x1xi32>
    %5 = arith.andi %3, %4 : vector<128x1xi32>
    %c15_i32 = arith.constant 15 : i32
    %6 = vector.broadcast %c15_i32 : i32 to vector<128x1xi32>
    %7 = arith.andi %5, %6 : vector<128x1xi32>
    %8 = arith.sitofp %7 : vector<128x1xi32> to vector<128x1xf32>
    %c4_i32 = arith.constant 4 : i32
    %9 = vector.broadcast %c4_i32 : i32 to vector<128x1xi32>
    %10 = arith.shrsi %5, %9 : vector<128x1xi32>
    %11 = arith.sitofp %10 : vector<128x1xi32> to vector<128x1xf32>
    %c0 = arith.constant 0 : index
    %c0_0 = arith.constant 0 : index
    %12 = vector.load %arg2[%c0, %c0_0] : memref<8x128xf32, #tpu.memory_space<vmem>>, vector<1x128xf32>
    %c1 = arith.constant 1 : index
    %c0_1 = arith.constant 0 : index
    %13 = vector.load %arg2[%c1, %c0_1] : memref<8x128xf32, #tpu.memory_space<vmem>>, vector<1x128xf32>
    %c2 = arith.constant 2 : index
    %c0_2 = arith.constant 0 : index
    %14 = vector.load %arg2[%c2, %c0_2] : memref<8x128xf32, #tpu.memory_space<vmem>>, vector<1x128xf32>
    %c3 = arith.constant 3 : index
    %c0_3 = arith.constant 0 : index
    %15 = vector.load %arg2[%c3, %c0_3] : memref<8x128xf32, #tpu.memory_space<vmem>>, vector<1x128xf32>
    %c4 = arith.constant 4 : index
    %c0_4 = arith.constant 0 : index
    %16 = vector.load %arg2[%c4, %c0_4] : memref<8x128xf32, #tpu.memory_space<vmem>>, vector<1x128xf32>
    %c0_5 = arith.constant 0 : index
    %c0_6 = arith.constant 0 : index
    %17 = vector.load %arg1[%c0_5, %c0_6] : memref<128x128xbf16, #tpu.memory_space<vmem>>, vector<128x128xbf16>
    %18 = arith.extf %17 : vector<128x128xbf16> to vector<128x128xf32>
    %19 = arith.negf %18 : vector<128x128xf32>
    %20 = math.exp %19 : vector<128x128xf32>
    %cst = arith.constant 1.000000e+00 : f32
    %21 = vector.broadcast %cst : f32 to vector<128x128xf32>
    %22 = arith.addf %21, %20 : vector<128x128xf32>
    %23 = arith.divf %21, %22 : vector<128x128xf32>
    %24 = math.exp %18 : vector<128x128xf32>
    %25 = vector.broadcast %12 : vector<1x128xf32> to vector<128x128xf32>
    %26 = vector.broadcast %8 : vector<128x1xf32> to vector<128x128xf32>
    %27 = arith.mulf %25, %26 : vector<128x128xf32>
    %28 = arith.addf %23, %27 : vector<128x128xf32>
    %29 = vector.broadcast %13 : vector<1x128xf32> to vector<128x128xf32>
    %30 = vector.broadcast %11 : vector<128x1xf32> to vector<128x128xf32>
    %31 = arith.mulf %29, %30 : vector<128x128xf32>
    %32 = arith.addf %28, %31 : vector<128x128xf32>
    %33 = vector.broadcast %16 : vector<1x128xf32> to vector<128x128xf32>
    %34 = arith.mulf %32, %33 : vector<128x128xf32>
    %35 = vector.broadcast %15 : vector<1x128xf32> to vector<128x128xf32>
    %36 = arith.mulf %24, %35 : vector<128x128xf32>
    %37 = vector.broadcast %14 : vector<1x128xf32> to vector<128x128xf32>
    %38 = arith.mulf %37, %36 : vector<128x128xf32>
    %cst_7 = arith.constant 1.000000e+00 : f32
    %39 = vector.broadcast %cst_7 : f32 to vector<1x128xf32>
    %40 = arith.subf %39, %14 : vector<1x128xf32>
    %41 = vector.broadcast %40 : vector<1x128xf32> to vector<128x128xf32>
    %42 = arith.mulf %41, %34 : vector<128x128xf32>
    %43 = arith.addf %38, %42 : vector<128x128xf32>
    %c0_8 = arith.constant 0 : index
    %c0_9 = arith.constant 0 : index
    %44 = vector.load %arg3[%c0_8, %c0_9] : memref<128x128xf32, #tpu.memory_space<vmem>>, vector<128x128xf32>
    tpu.vector_store %arg3[%c0_8, %c0_9], %43 {strides = array<i32>} : memref<128x128xf32, #tpu.memory_space<vmem>>, vector<128x128xf32>,
    return
  }
  func.func @transform_0(%arg0: i32) -> (i32, i32) {
    %c0_i32 = arith.constant 0 : i32
    %c0_i32_0 = arith.constant 0 : i32
    return %arg0, %c0_i32 : i32, i32
  }
  func.func @transform_1(%arg0: i32) -> (i32, i32) {
    %c0_i32 = arith.constant 0 : i32
    %c0_i32_0 = arith.constant 0 : i32
    %c0_i32_1 = arith.constant 0 : i32
    return %c0_i32, %c0_i32_0 : i32, i32
  }
  func.func @transform_2(%arg0: i32) -> (i32, i32) {
    %c0_i32 = arith.constant 0 : i32
    %c0_i32_0 = arith.constant 0 : i32
    return %arg0, %c0_i32 : i32, i32
  }
}

</mosaic_0001>

<bundles_post_ra>
// kernel: darknet_forward.11
= control target key start
LH: loop header
LB: loop body
LE: loop exit
PB: predicated region body
PF: predicated region fallthrough
CT: control target
= control target key end

     0   :  { %s516_s12 = smov 0   ;;  %s567_s0 = inlined_call_operand.vmem [shape: bf16[128,128], index: 0, kind: input, shape index: {}]   ;;  %s568_s1 = inlined_call_operand.vmem [shape: bf16[128,128], index: 1, kind: input, shape index: {}]   ;;  %s569_s2 = inlined_call_operand.vmem [shape: f32[1,128], index: 2, kind: input, shape index: {}]   ;;  %s570_s3 = inlined_call_operand.vmem [shape: bf16[128,128], index: 3, kind: output, shape index: {}]  }
   0x1 LB: > { %s399_s13 = sadd.s32 4294967295, %s494_s12   ;;  %p403_p0 = scmp.ge.s32.totalorder %s494_s12, 1  ;;  %s494_s12 = sphi %s516_s12, %s13_s12  }
   0x2   : > { %p138_p1 = scmp.lt.s32.totalorder %s494_s12, 5 }
   0x4   : > { %p139_p2 = pnand %p403_p0, %p138_p1 }
   0x5   : > { %v478_v0 = vld [vmem:[%s568_s1] sm:$0xff] (!%p139_p2)   ;;  %s404_s16 = sshll.u32 (!%p139_p2), %s399_s13, 2  ;;  %v479_v1 = vld [vmem:[%s568_s1 + $0x8] sm:$0xff] (!%p139_p2)   ;;  %v480_v2 = vld [vmem:[%s568_s1 + $0x10] sm:$0xff] (!%p139_p2)  }
   0x6   : > { %142 = sbr.rel (%p139_p2) target bundleno = 261 (0x105), region = 32  ;;  %p163_p3 = scmp.lt.s32.totalorder (!%p139_p2), %s404_s16, 15  ;;  %450 = vmatprep.subr.bf16.mxu0 (!%p139_p2), %v478_v0  ;;  %v481_v3 = vld [vmem:[%s568_s1 + $0x18] sm:$0xff] (!%p139_p2)   ;;  %v482_v5 = vld [vmem:[%s568_s1 + $0x20] sm:$0xff] (!%p139_p2)   ;;  %v483_v6 = vld [vmem:[%s568_s1 + $0x28] sm:$0xff] (!%p139_p2)  }
   0x7   : > { %451 = vmatpush3.bf16.msra.mxu0 (!%p139_p2), %v478_v0  ;;  %v484_v7 = vld [vmem:[%s568_s1 + $0x30] sm:$0xff] (!%p139_p2)   ;;  %v485_v8 = vld [vmem:[%s568_s1 + $0x38] sm:$0xff] (!%p139_p2)   ;;  %v408_v10 = vld [vmem:[%s569_s2] ss:$0 sm:$0xff] (!%p139_p2) }
   0x8   : > { %452 = vmatprep.subr.bf16.mxu0 (!%p139_p2), %v479_v1 }
   0xb   : > { %453 = vmatpush3.bf16.msra.mxu0 (!%p139_p2), %v479_v1 }
   0xc   : > { %454 = vmatprep.subr.bf16.mxu0 (!%p139_p2), %v480_v2 }
   0xd   : > { %s572_s16 = smov (!%p163_p3, %s404_s16), 15 }
   0xe   : > { %s405_s21 = sshll.u32 %s572_s16, 2 }
   0xf   : > { %s166_s24 = scalar_lea.vmem %s567_s0, %s405_s21  ;;  %455 = vmatpush3.bf16.msra.mxu0 %v480_v2  ;;  %s172_s13 = scalar_lea.vmem %s570_s3, %s405_s21 }
  0x10   : > { %v486_v4 = vld [vmem:[%s166_s24] sm:$0xff]   ;;  %456 = vmatprep.subr.bf16.mxu0 %v481_v3  ;;  %v487_v9 = vld [vmem:[%s166_s24 + $0x8] sm:$0xff]  }
  0x11   : > { %466 = vmatprep.mubr.bf16.mxu0 %v486_v4 }
  0x13   : > { %457 = vmatpush3.bf16.msra.mxu0 %v481_v3 }
  0x14   : > { %458 = vmatprep.subr.bf16.mxu0 %v482_v5 }
  0x17   : > { %459 = vmatpush3.bf16.msra.mxu0 %v482_v5 }
  0x18   : > { %460 = vmatprep.subr.bf16.mxu0 %v483_v6 }
  0x1b   : > { %461 = vmatpush3.bf16.msra.mxu0 %v483_v6 }
  0x1c   : > { %462 = vmatprep.subr.bf16.mxu0 %v484_v7 }
  0x1f   : > { %463 = vmatpush3.bf16.msra.mxu0 %v484_v7 }
  0x20   : > { %464 = vmatprep.subr.bf16.mxu0 %v485_v8 }
  0x23   : > { %465 = vmatpush3.bf16.msra.mxu0 %v485_v8 }
  0x26   : > { %467 = vmatmul.mubr.bf16.vlgmr.msra.gmra.mrb[0].mxu0 %v487_v9 }
  0xf9   : > { %v468_v11 = vpop.f32.mrb[0].mxu0 }
  0xfa   : > { %v305_v12 = vadd.f32 %v468_v11, %v408_v10  ;;  %v296_v13 = vpop.f32.mrb[1].mxu0 }
  0xfb   : > { %v297_v14 = vadd.f32 %v408_v10, %v296_v13  ;;  %v469_v15 = vpop.f32.mrb[2].mxu0 }
  0xfc   : > { %v317_v16 = vmul.f32 0.1, %v305_v12  ;;  %v308_v17 = vadd.f32 %v469_v15, %v408_v10  ;;  %v299_v18 = vpop.f32.mrb[3].mxu0  ;;  %vm313_vm0 = vcmp.ge.f32.partialorder %v305_v12, 0.0 }
  0xfd   : > { %v315_v19 = vmul.f32 0.1, %v297_v14  ;;  %v300_v20 = vadd.f32 %v408_v10, %v299_v18  ;;  %vm311_vm1 = vcmp.ge.f32.partialorder %v297_v14, 0.0 }
  0xfe   : > { %vm314_vm2 = vcmp.ge.f32.partialorder %v308_v17, 0.0  ;;  %v318_v21 = vmul.f32 0.1, %v308_v17  ;;  %v321_v23 = vsel %vm313_vm0, %v305_v12, %v317_v16 }
  0xff   : > { %vm312_vm3 = vcmp.ge.f32.partialorder %v300_v20, 0.0  ;;  %v316_v22 = vmul.f32 0.1, %v300_v20  ;;  %v319_v25 = vsel %vm311_vm1, %v297_v14, %v315_v19 }
 0x100   : > { %v322_v24 = vsel %vm314_vm2, %v308_v17, %v318_v21 }
 0x101   : > { %v437_v26 = vpack.c.bf16 %v322_v24, %v321_v23  ;;  %v320_v27 = vsel %vm312_vm3, %v300_v20, %v316_v22 }
 0x102   : > { %v432_v28 = vpack.c.bf16 %v320_v27, %v319_v25 }
 0x103   : > { %439 = vst [vmem:[%s172_s13 + $0x8] sm:$0xff] %v437_v26  }
 0x104   : > { %433 = vst [vmem:[%s172_s13] sm:$0xff] %v432_v28  }
 0x105 PF: > { %s13_s12 = sadd.s32 1, %s494_s12  }
 0x106   : > { %p10_p4 = scmp.ge.s32.totalorder %s13_s12, 6  }
 0x108   :  { %12 = sbr.rel (!%p10_p4) target bundleno = 1 (0x1), region = 62 }

// kernel: darknet_forward.15
= control target key start
LH: loop header
LB: loop body
LE: loop exit
PB: predicated region body
PF: predicated region fallthrough
CT: control target
= control target key end

     0   :  { %s803_s18 = smov 0   ;;  %s879_s0 = inlined_call_operand.vmem [shape: bf16[128,128], index: 0, kind: input, shape index: {}]   ;;  %s880_s1 = inlined_call_operand.vmem [shape: bf16[128,128], index: 1, kind: input, shape index: {}]   ;;  %s881_s2 = inlined_call_operand.vmem [shape: bf16[128,128], index: 2, kind: input, shape index: {}, may-alias: {2,3}]   ;;  %s882_s3 = inlined_call_operand.vmem [shape: bf16[128,128], index: 3, kind: input, shape index: {}, may-alias: {2,3}]   ;;  %s883_s4 = inlined_call_operand.vmem [shape: f32[1,128], index: 4, kind: input, shape index: {}]   ;;  %s884_s5 = inlined_call_operand.vmem [shape: bf16[128,128], index: 5, kind: output, shape index: {}]  }
   0x1 LB: > { %s620_s19 = sadd.s32 4294967295, %s771_s18   ;;  %p624_p0 = scmp.ge.s32.totalorder %s771_s18, 1  ;;  %s771_s18 = sphi %s803_s18, %s15_s18  }
   0x2   : > { %p199_p1 = scmp.lt.s32.totalorder %s771_s18, 5 }
   0x4   : > { %p200_p2 = pnand %p624_p0, %p199_p1 }
   0x5   : > { %v745_v0 = vld [vmem:[%s882_s3] sm:$0xff] (!%p200_p2)   ;;  %s625_s22 = sshll.u32 (!%p200_p2), %s620_s19, 2  ;;  %v747_v2 = vld [vmem:[%s882_s3 + $0x8] sm:$0xff] (!%p200_p2)   ;;  %v749_v4 = vld [vmem:[%s882_s3 + $0x10] sm:$0xff] (!%p200_p2)  }
   0x6   : > { %203 = sbr.rel (%p200_p2) target bundleno = 264 (0x108), region = 40  ;;  %v746_v1 = vld [vmem:[%s881_s2] sm:$0xff] (!%p200_p2)   ;;  %693 = vmatprep.subr.bf16.mxu1 (!%p200_p2), %v745_v0  ;;  %p233_p3 = scmp.lt.s32.totalorder (!%p200_p2), %s625_s22, 15  ;;  %v748_v3 = vld [vmem:[%s881_s2 + $0x8] sm:$0xff] (!%p200_p2)   ;;  %v750_v5 = vld [vmem:[%s881_s2 + $0x10] sm:$0xff] (!%p200_p2)  }
   0x7   : > { %713 = vmatprep.subr.bf16.mxu0 (!%p200_p2), %v746_v1  ;;  %694 = vmatpush3.bf16.msra.mxu1 (!%p200_p2), %v745_v0  ;;  %v751_v6 = vld [vmem:[%s882_s3 + $0x18] sm:$0xff] (!%p200_p2)   ;;  %v753_v8 = vld [vmem:[%s882_s3 + $0x20] sm:$0xff] (!%p200_p2)   ;;  %v755_v10 = vld [vmem:[%s882_s3 + $0x28] sm:$0xff] (!%p200_p2)  }
   0x8   : > { %714 = vmatpush3.bf16.msra.mxu0 (!%p200_p2), %v746_v1  ;;  %695 = vmatprep.subr.bf16.mxu1 (!%p200_p2), %v747_v2  ;;  %v752_v7 = vld [vmem:[%s881_s2 + $0x18] sm:$0xff] (!%p200_p2)   ;;  %v754_v9 = vld [vmem:[%s881_s2 + $0x20] sm:$0xff] (!%p200_p2)   ;;  %v756_v11 = vld [vmem:[%s881_s2 + $0x28] sm:$0xff] (!%p200_p2)  }
   0x9   : > { %715 = vmatprep.subr.bf16.mxu0 (!%p200_p2), %v748_v3  ;;  %v757_v14 = vld [vmem:[%s882_s3 + $0x30] sm:$0xff] (!%p200_p2)   ;;  %v759_v16 = vld [vmem:[%s882_s3 + $0x38] sm:$0xff] (!%p200_p2)   ;;  %v651_v22 = vld [vmem:[%s883_s4] ss:$0 sm:$0xff] (!%p200_p2) }
   0xa   : > { %v758_v15 = vld [vmem:[%s881_s2 + $0x30] sm:$0xff] (!%p200_p2)   ;;  %v760_v17 = vld [vmem:[%s881_s2 + $0x38] sm:$0xff] (!%p200_p2)  }
   0xb   : > { %696 = vmatpush3.bf16.msra.mxu1 (!%p200_p2), %v747_v2 }
   0xc   : > { %716 = vmatpush3.bf16.msra.mxu0 (!%p200_p2), %v748_v3  ;;  %697 = vmatprep.subr.bf16.mxu1 (!%p200_p2), %v749_v4 }
   0xd   : > { %s886_s22 = smov (!%p233_p3, %s625_s22), 15  ;;  %717 = vmatprep.subr.bf16.mxu0 %v750_v5 }
   0xe   : > { %s835_s12 = sshll.u32 %s886_s22, 2 }
   0xf   : > { %698 = vmatpush3.bf16.msra.mxu1 %v749_v4  ;;  %s242_s20 = scalar_lea.vmem %s880_s1, %s835_s12  ;;  %s236_s25 = scalar_lea.vmem %s879_s0, %s835_s12 }
  0x10   : > { %718 = vmatpush3.bf16.msra.mxu0 %v750_v5  ;;  %699 = vmatprep.subr.bf16.mxu1 %v751_v6  ;;  %v761_v12 = vld [vmem:[%s242_s20] sm:$0xff]   ;;  %v763_v18 = vld [vmem:[%s242_s20 + $0x8] sm:$0xff]   ;;  %s248_s16 = scalar_lea.vmem %s884_s5, %s835_s12 }
  0x11   : > { %719 = vmatprep.subr.bf16.mxu0 %v752_v7  ;;  %v762_v13 = vld [vmem:[%s236_s25] sm:$0xff]   ;;  %709 = vmatprep.mubr.bf16.mxu1 %v761_v12  ;;  %v764_v19 = vld [vmem:[%s236_s25 + $0x8] sm:$0xff]  }
  0x12   : > { %729 = vmatprep.mubr.bf16.mxu0 %v762_v13 }
  0x13   : > { %700 = vmatpush3.bf16.msra.mxu1 %v751_v6 }
  0x14   : > { %720 = vmatpush3.bf16.msra.mxu0 %v752_v7  ;;  %701 = vmatprep.subr.bf16.mxu1 %v753_v8 }
  0x15   : > { %721 = vmatprep.subr.bf16.mxu0 %v754_v9 }
  0x17   : > { %702 = vmatpush3.bf16.msra.mxu1 %v753_v8 }
  0x18   : > { %722 = vmatpush3.bf16.msra.mxu0 %v754_v9  ;;  %703 = vmatprep.subr.bf16.mxu1 %v755_v10 }
  0x19   : > { %723 = vmatprep.subr.bf16.mxu0 %v756_v11 }
  0x1b   : > { %704 = vmatpush3.bf16.msra.mxu1 %v755_v10 }
  0x1c   : > { %724 = vmatpush3.bf16.msra.mxu0 %v756_v11  ;;  %705 = vmatprep.subr.bf16.mxu1 %v757_v14 }
  0x1d   : > { %725 = vmatprep.subr.bf16.mxu0 %v758_v15 }
  0x1f   : > { %706 = vmatpush3.bf16.msra.mxu1 %v757_v14 }
  0x20   : > { %726 = vmatpush3.bf16.msra.mxu0 %v758_v15  ;;  %707 = vmatprep.subr.bf16.mxu1 %v759_v16 }
  0x21   : > { %727 = vmatprep.subr.bf16.mxu0 %v760_v17 }
  0x23   : > { %708 = vmatpush3.bf16.msra.mxu1 %v759_v16 }
  0x24   : > { %728 = vmatpush3.bf16.msra.mxu0 %v760_v17 }
  0x26   : > { %710 = vmatmul.mubr.bf16.vlgmr.msra.gmra.mrb[0].mxu1 %v763_v18 }
  0x27   : > { %730 = vmatmul.mubr.bf16.vlgmr.msra.gmra.mrb[0].mxu0 %v764_v19 }
  0xf9   : > { %v711_v20 = vpop.f32.mrb[0].mxu1 }
  0xfa   : > { %v731_v21 = vpop.f32.mrb[0].mxu0  ;;  %v385_v23 = vpop.f32.mrb[1].mxu1 }
  0xfb   : > { %v503_v24 = vadd.f32 %v731_v21, %v711_v20  ;;  %v494_v25 = vpop.f32.mrb[1].mxu0  ;;  %v712_v26 = vpop.f32.mrb[2].mxu1 }
  0xfc   : > { %v495_v27 = vadd.f32 %v494_v25, %v385_v23  ;;  %v732_v28 = vpop.f32.mrb[2].mxu0  ;;  %v388_v29 = vpop.f32.mrb[3].mxu1 }
  0xfd   : > { %v518_v30 = vadd.f32 %v651_v22, %v503_v24  ;;  %v506_v31 = vadd.f32 %v732_v28, %v712_v26  ;;  %v497_v32 = vpop.f32.mrb[3].mxu0 }
  0xfe   : > { %v516_v33 = vadd.f32 %v651_v22, %v495_v27  ;;  %v498_v34 = vadd.f32 %v497_v32, %v388_v29 }
  0xff   : > { %v526_v35 = vmul.f32 0.1, %v518_v30  ;;  %v519_v36 = vadd.f32 %v651_v22, %v506_v31  ;;  %vm522_vm0 = vcmp.ge.f32.partialorder %v518_v30, 0.0 }
 0x100   : > { %v524_v37 = vmul.f32 0.1, %v516_v33  ;;  %v517_v38 = vadd.f32 %v651_v22, %v498_v34  ;;  %vm520_vm1 = vcmp.ge.f32.partialorder %v516_v33, 0.0 }
 0x101   : > { %vm523_vm2 = vcmp.ge.f32.partialorder %v519_v36, 0.0  ;;  %v527_v39 = vmul.f32 0.1, %v519_v36  ;;  %v530_v41 = vsel %vm522_vm0, %v518_v30, %v526_v35 }
 0x102   : > { %vm521_vm3 = vcmp.ge.f32.partialorder %v517_v38, 0.0  ;;  %v525_v40 = vmul.f32 0.1, %v517_v38  ;;  %v528_v43 = vsel %vm520_vm1, %v516_v33, %v524_v37 }
 0x103   : > { %v531_v42 = vsel %vm523_vm2, %v519_v36, %v527_v39 }
 0x104   : > { %v670_v44 = vpack.c.bf16 %v531_v42, %v530_v41  ;;  %v529_v45 = vsel %vm521_vm3, %v517_v38, %v525_v40 }
 0x105   : > { %v665_v46 = vpack.c.bf16 %v529_v45, %v528_v43 }
 0x106   : > { %672 = vst [vmem:[%s248_s16 + $0x8] sm:$0xff] %v670_v44  }
 0x107   : > { %666 = vst [vmem:[%s248_s16] sm:$0xff] %v665_v46  }
 0x108 PF: > { %s15_s18 = sadd.s32 1, %s771_s18  }
 0x109   : > { %p12_p4 = scmp.ge.s32.totalorder %s15_s18, 6  }
 0x10b   :  { %14 = sbr.rel (!%p12_p4) target bundleno = 1 (0x1), region = 73 }

// kernel: darknet_forward.10
= control target key start
LH: loop header
LB: loop body
LE: loop exit
PB: predicated region body
PF: predicated region fallthrough
CT: control target
= control target key end

     0   :  { %s2092_s12 = smov 0   ;;  %s2094_s13 = smov 0   ;;  %s2487_s0 = inlined_call_operand.vmem [shape: bf16[2,10,10,128], index: 0, kind: input, shape index: {}]   ;;  %s2488_s1 = inlined_call_operand.vmem [shape: bf16[1152,128], index: 1, kind: input, shape index: {}]   ;;  %s2489_s2 = inlined_call_operand.vmem [shape: f32[1,128], index: 2, kind: input, shape index: {}]   ;;  %s2490_s3 = inlined_call_operand.vmem [shape: bf16[2,64,128], index: 3, kind: output, shape index: {}]  }
   0x1   :  { %s2096_s14 = smov 0   ;;  %s2098_s15 = smov 0  }
   0x2   :  { %s2100_s16 = smov 0  }
   0x3 LB: > { %s22_s17 = sadd.s32 1, %s2062_s14  ;;  %s25_s18 = sadd.s32 1, %s2066_s15  ;;  %s2070_s16 = sphi %s2100_s16, %s13_s16   ;;  %s2066_s15 = sphi %s2098_s15, %s2498_s15   ;;  %s2062_s14 = sphi %s2096_s14, %s2497_s14   ;;  %s2058_s13 = sphi %s2094_s13, %s2496_s13   ;;  %s2054_s12 = sphi %s2092_s12, %s2495_s12  }
   0x4   : > { %p23_p0 = scmp.ge.s32.totalorder %s22_s17, 2  ;;  %p1591_p1 = scmp.ge.s32.totalorder %s2070_s16, 1 }
   0x5   : > { %p151_p2 = scmp.lt.s32.totalorder %s2070_s16, 5 }
   0x6   : > { %s2500_s17 = smov (%p23_p0, %s22_s17), 0  ;;  %s2502_s18 = smov (!%p23_p0, %s25_s18), %s2066_s15 }
   0x7   : > { %p152_p3 = pnand %p1591_p1, %p151_p2  ;;  %p27_p4 = scmp.ge.s32.totalorder %s2502_s18, 2 }
   0x8   : > { %v1954_v0 = vld [vmem:[%s2488_s1 + $0x40] sm:$0xff] (!%p152_p3)   ;;  %v1958_v4 = vld [vmem:[%s2488_s1 + $0x48] sm:$0xff] (!%p152_p3)   ;;  %v1962_v8 = vld [vmem:[%s2488_s1 + $0x50] sm:$0xff] (!%p152_p3)   ;;  %p179_p5 = scmp.lt.s32.totalorder (!%p152_p3), %s2058_s13, 1  ;;  %s1753_s8 = sshll.u32 (!%p152_p3), %s2054_s12, 5  ;;  %vm310_vm2 = vcmask (!%p152_p3), 1042432  }
   0x9   : > { %s2504_s18 = smov (%p27_p4, %s2502_s18), 0  ;;  %155 = sbr.rel (%p152_p3) target bundleno = 329 (0x149), region = 32 }
   0xa   : > { %v1955_v1 = vld [vmem:[%s2488_s1] sm:$0xff] (!%p152_p3)   ;;  %1771 = vmatprep.subr.bf16.mxu0 (!%p152_p3), %v1954_v0  ;;  %v1959_v5 = vld [vmem:[%s2488_s1 + $0x8] sm:$0xff] (!%p152_p3)   ;;  %v1963_v9 = vld [vmem:[%s2488_s1 + $0x10] sm:$0xff] (!%p152_p3)   ;;  %vm225_vm0 = vsmask.f32 (!%p152_p3), 3328  ;;  %vm311_vm4 = vcmask (!%p152_p3), 1046532  }
   0xb   : > { %v1956_v2 = vld [vmem:[%s2488_s1 + $0xc0] sm:$0xff] (!%p152_p3)   ;;  %1772 = vmatpush3.bf16.msra.mxu0 (!%p152_p3), %v1955_v1  ;;  %v1960_v6 = vld [vmem:[%s2488_s1 + $0xc8] sm:$0xff] (!%p152_p3)   ;;  %v1964_v10 = vld [vmem:[%s2488_s1 + $0xd0] sm:$0xff] (!%p152_p3)   ;;  %vm226_vm1 = vsmask.f32 (!%p152_p3), 7440 }
   0xc   : > { %v1957_v3 = vld [vmem:[%s2488_s1 + $0x80] sm:$0xff] (!%p152_p3)   ;;  %1799 = vmatprep.subr.bf16.mxu1 (!%p152_p3), %v1956_v2  ;;  %1773 = vmatprep.subr.bf16.mxu0 (!%p152_p3), %v1958_v4  ;;  %v1961_v7 = vld [vmem:[%s2488_s1 + $0x88] sm:$0xff] (!%p152_p3)   ;;  %v1965_v11 = vld [vmem:[%s2488_s1 + $0x90] sm:$0xff] (!%p152_p3)  }
   0xd   : > { %1800 = vmatpush3.bf16.msra.mxu1 (!%p152_p3), %v1957_v3  ;;  %v1966_v12 = vld [vmem:[%s2488_s1 + $0x58] sm:$0xff] (!%p152_p3)   ;;  %v1970_v16 = vld [vmem:[%s2488_s1 + $0x60] sm:$0xff] (!%p152_p3)   ;;  %v1974_v20 = vld [vmem:[%s2488_s1 + $0x68] sm:$0xff] (!%p152_p3)  }
   0xe   : > { %1801 = vmatprep.subr.bf16.mxu1 (!%p152_p3), %v1960_v6  ;;  %v1967_v13 = vld [vmem:[%s2488_s1 + $0x18] sm:$0xff] (!%p152_p3)   ;;  %v1971_v17 = vld [vmem:[%s2488_s1 + $0x20] sm:$0xff] (!%p152_p3)   ;;  %v1975_v21 = vld [vmem:[%s2488_s1 + $0x28] sm:$0xff] (!%p152_p3)  }
   0xf   : > { %1774 = vmatpush3.bf16.msra.mxu0 (!%p152_p3), %v1959_v5  ;;  %v1968_v14 = vld [vmem:[%s2488_s1 + $0xd8] sm:$0xff] (!%p152_p3)   ;;  %v1972_v18 = vld [vmem:[%s2488_s1 + $0xe0] sm:$0xff] (!%p152_p3)   ;;  %v1976_v22 = vld [vmem:[%s2488_s1 + $0xe8] sm:$0xff] (!%p152_p3)  }
  0x10   : > { %1775 = vmatprep.subr.bf16.mxu0 %v1962_v8  ;;  %v1969_v15 = vld [vmem:[%s2488_s1 + $0x98] sm:$0xff]   ;;  %s2506_s13 = smov (!%p179_p5, %s2058_s13), 1  ;;  %v1973_v19 = vld [vmem:[%s2488_s1 + $0xa0] sm:$0xff]   ;;  %v1977_v23 = vld [vmem:[%s2488_s1 + $0xa8] sm:$0xff]  }
  0x11   : > { %1802 = vmatpush3.bf16.msra.mxu1 %v1961_v7  ;;  %s1913_s23 = smul.u32 80, %s2506_s13  ;;  %v1978_v24 = vld [vmem:[%s2488_s1 + $0x70] sm:$0xff]   ;;  %v1982_v28 = vld [vmem:[%s2488_s1 + $0x78] sm:$0xff]   ;;  %v1987_v42 = vld [vmem:[%s2488_s1 + $0x140] sm:$0xff]  }
  0x12   : > { %1803 = vmatprep.subr.bf16.mxu1 %v1964_v10  ;;  %v1979_v25 = vld [vmem:[%s2488_s1 + $0x30] sm:$0xff]   ;;  %v1983_v29 = vld [vmem:[%s2488_s1 + $0x38] sm:$0xff]   ;;  %vm2240_vm3 = vmor %vm225_vm0, %vm226_vm1 }
  0x13   : > { %1776 = vmatpush3.bf16.msra.mxu0 %v1963_v9  ;;  %s183_s7 = scalar_lea.vmem %s2487_s0, %s1913_s23  ;;  %v1980_v26 = vld [vmem:[%s2488_s1 + $0xf0] sm:$0xff]   ;;  %v1984_v30 = vld [vmem:[%s2488_s1 + $0xf8] sm:$0xff]   ;;  %vm2250_vm5 = vmor %vm310_vm2, %vm311_vm4 }
  0x14   : > { %1777 = vmatprep.subr.bf16.mxu0 %v1966_v12  ;;  %v1981_v27 = vld [vmem:[%s2488_s1 + $0xb0] sm:$0xff]   ;;  %s2222_s22 = scalar_lea.vmem %s183_s7, %s1753_s8  ;;  %v1985_v41 = vld [vmem:[%s2488_s1 + $0xb8] sm:$0xff]   ;;  %v1989_v62 = vld [vmem:[%s2488_s1 + $0x100] sm:$0xff]   ;;  %s1593_s7 = sshll.u32 %s2054_s12, 2 }
  0x15   : > { %1804 = vmatpush3.bf16.msra.mxu1 %v1965_v11  ;;  %v217_v31 = vld [vmem:[%s2222_s22] sm:$0xf]  ;;  %v218_v32 = vld [vmem:[%s2222_s22 + $0x4] sm:$0x1]  ;;  %v219_v33 = vld [vmem:[%s2222_s22 + $0x8] sm:$0xf] }
  0x16   : > { %1805 = vmatprep.subr.bf16.mxu1 %v1968_v14  ;;  %v220_v34 = vld [vmem:[%s2222_s22 + $0xc] sm:$0x1]  ;;  %v229_v35 = vshrl.u32 %v217_v31, 16  ;;  %v232_v36 = vshll.u32 %v217_v31, 16  ;;  %v238_v37 = vshll.u32 %v218_v32, 16  ;;  %v243_v38 = vshrl.u32 %v219_v33, 16 }
  0x17   : > { %1778 = vmatpush3.bf16.msra.mxu0 %v1967_v13  ;;  %v246_v39 = vshll.u32 %v219_v33, 16  ;;  %v252_v40 = vshll.u32 %v220_v34, 16  ;;  %v1988_v52 = vld [vmem:[%s2222_s22 + $0x8] ss:$8 sps:$4 sm:$0xff]   ;;  %v294_v54 = vld [vmem:[%s2222_s22] sm:$0xe] }
  0x18   : > { %1779 = vmatprep.subr.bf16.mxu0 %v1970_v16  ;;  %v231_v43 = vrot.slane %v229_v35, 4  ;;  %v234_v44 = vrot.slane %v232_v36, 5  ;;  %v245_v45 = vrot.slane %v243_v38, 4  ;;  %v240_v47 = vrot.slane %v238_v37, 5  ;;  %v1986_v56 = vld [vmem:[%s2222_s22] ss:$8 sps:$4 sm:$0xff]   ;;  %1297 = vmatprep.mubr.bf16.mxu1 %v1988_v52 }
  0x19   : > { %1806 = vmatpush3.bf16.msra.mxu1 %v1969_v15  ;;  %v248_v48 = vrot.slane %v246_v39, 5  ;;  %v254_v49 = vrot.slane %v252_v40, 5  ;;  %v295_v57 = vld [vmem:[%s2222_s22 + $0x4] sm:$0x1]  ;;  %v296_v58 = vld [vmem:[%s2222_s22 + $0x8] sm:$0xe] }
  0x1a   : > { %1807 = vmatprep.subr.bf16.mxu1 %v1972_v18  ;;  %v235_v50 = vor.u32 %v234_v44, %v231_v43  ;;  %v1603_v60 = vrot.slane %v294_v54, 9  ;;  %v297_v63 = vld [vmem:[%s2222_s22 + $0xc] sm:$0x1]  ;;  %v315_v0 = vrot.slane %v295_v57, 5  ;;  %v1604_v1 = vrot.slane %v296_v58, 9  ;;  %v1990_v4 = vld [vmem:[%s2488_s1 + $0x1c0] sm:$0xff]  }
  0x1b   : > { %1780 = vmatpush3.bf16.msra.mxu0 %v1971_v17  ;;  %v249_v51 = vor.u32 %v248_v48, %v245_v45  ;;  %v319_v3 = vrot.slane %v297_v63, 5  ;;  %v1991_v7 = vld [vmem:[%s2488_s1 + $0x180] sm:$0xff]   ;;  %v1992_v9 = vld [vmem:[%s2488_s1 + $0x148] sm:$0xff]   ;;  %v1996_v14 = vld [vmem:[%s2488_s1 + $0x150] sm:$0xff]   ;;  %p187_p6 = scmp.lt.s32.totalorder %s1593_s7, 7  ;;  %s1594_s8 = sshll.u32 %s2506_s13, 3 }
  0x1c   : > { %1781 = vmatprep.subr.bf16.mxu0 %v1974_v20  ;;  %v236_v53 = vrot.slane %v235_v50, 4  ;;  %v316_v6 = vsel %vm2250_vm5, %v1603_v60, %v315_v0  ;;  %v1993_v11 = vld [vmem:[%s2488_s1 + $0x108] sm:$0xff]   ;;  %v1997_v15 = vld [vmem:[%s2488_s1 + $0x110] sm:$0xff]   ;;  %v2000_v18 = vld [vmem:[%s2488_s1 + $0x158] sm:$0xff]  }
  0x1d   : > { %1808 = vmatpush3.bf16.msra.mxu1 %v1973_v19  ;;  %v250_v55 = vrot.slane %v249_v51, 4  ;;  %v320_v8 = vsel %vm2250_vm5, %v1604_v1, %v319_v3  ;;  %v1994_v12 = vld [vmem:[%s2488_s1 + $0x1c8] sm:$0xff]   ;;  %v1998_v16 = vld [vmem:[%s2488_s1 + $0x1d0] sm:$0xff]   ;;  %v2001_v19 = vld [vmem:[%s2488_s1 + $0x118] sm:$0xff]   ;;  %s2508_s7 = smov (!%p187_p6, %s1593_s7), 7 }
  0x1e   : > { %1809 = vmatprep.subr.bf16.mxu1 %v1976_v22  ;;  %v241_v61 = vsel %vm2240_vm3, %v236_v53, %v240_v47  ;;  %v1607_v10 = vcombine.low %v316_v6, %v320_v8  ;;  %v1995_v13 = vld [vmem:[%s2488_s1 + $0x188] sm:$0xff]   ;;  %v1999_v17 = vld [vmem:[%s2488_s1 + $0x190] sm:$0xff]   ;;  %v2002_v20 = vld [vmem:[%s2488_s1 + $0x1d8] sm:$0xff]   ;;  %s190_s9 = sadd.s32 %s1594_s8, %s2508_s7 }
  0x1f   : > { %1782 = vmatpush3.bf16.msra.mxu0 %v1975_v21  ;;  %v255_v2 = vsel %vm2240_vm3, %v250_v55, %v254_v49  ;;  %v2003_v21 = vld [vmem:[%s2488_s1 + $0x198] sm:$0xff]   ;;  %v2004_v22 = vld [vmem:[%s2488_s1 + $0x160] sm:$0xff]   ;;  %v2009_v37 = vld [vmem:[%s2488_s1 + $0x128] sm:$0xff]   ;;  %s1595_s10 = sshll.u32 %s190_s9, 2 }
  0x20   : > { %1783 = vmatprep.subr.bf16.mxu0 %v1978_v24  ;;  %v1601_v5 = vcombine.low %v241_v61, %v255_v2  ;;  %v2006_v24 = vld [vmem:[%s2488_s1 + $0x1e0] sm:$0xff]   ;;  %v2011_v38 = vld [vmem:[%s2488_s1 + $0x1e8] sm:$0xff]   ;;  %v298_v51 = vld [vmem:[%s2222_s22 + $0x10] sm:$0xe]  ;;  %s192_s11 = scalar_lea.vmem %s2490_s3, %s1595_s10 }
  0x21   : > { %1810 = vmatpush3.bf16.msra.mxu1 %v1977_v23  ;;  %v2005_v23 = vld [vmem:[%s2488_s1 + $0x120] sm:$0xff]   ;;  %v2013_v50 = vld [vmem:[%s2488_s1 + $0x1a8] sm:$0xff]   ;;  %v2010_v53 = vld [vmem:[%s2222_s22 + $0x10] ss:$8 sps:$4 sm:$0xff]  }
  0x22   : > { %1811 = vmatprep.subr.bf16.mxu1 %v1980_v26  ;;  %1248 = vmatprep.mubr.bf16.mxu0 %v1601_v5  ;;  %v2008_v26 = vld [vmem:[%s2488_s1 + $0x168] sm:$0xff]   ;;  %v2012_v48 = vld [vmem:[%s2222_s22 + $0x18] ss:$8 sps:$4 sm:$0xff]   ;;  %v299_v54 = vld [vmem:[%s2222_s22 + $0x14] sm:$0x1] }
  0x23   : > { %1784 = vmatpush3.bf16.msra.mxu0 %v1979_v25  ;;  %v2007_v25 = vld [vmem:[%s2488_s1 + $0x1a0] sm:$0xff]   ;;  %v300_v55 = vld [vmem:[%s2222_s22 + $0x18] sm:$0xe]  ;;  %v301_v58 = vld [vmem:[%s2222_s22 + $0x1c] sm:$0x1]  ;;  %v323_v60 = vrot.slane %v299_v54, 5 }
  0x24   : > { %1785 = vmatprep.subr.bf16.mxu0 %v1982_v28  ;;  %v222_v28 = vld [vmem:[%s2222_s22 + $0x14] sm:$0x1]  ;;  %v1606_v61 = vrot.slane %v300_v55, 9  ;;  %v327_v63 = vrot.slane %v301_v58, 5  ;;  %v2018_v8 = vld [vmem:[%s2488_s1 + $0x178] sm:$0xff]  }
  0x25   : > { %1812 = vmatpush3.bf16.msra.mxu1 %v1981_v27  ;;  %v221_v27 = vld [vmem:[%s2222_s22 + $0x10] sm:$0xf]  ;;  %v266_v33 = vshll.u32 %v222_v28, 16 }
  0x26   : > { %1813 = vmatprep.subr.bf16.mxu1 %v1984_v30  ;;  %v224_v30 = vld [vmem:[%s2222_s22 + $0x1c] sm:$0x1]  ;;  %v257_v31 = vshrl.u32 %v221_v27, 16  ;;  %v260_v32 = vshll.u32 %v221_v27, 16  ;;  %v2014_v0 = vld [vmem:[%s2488_s1 + $0x170] sm:$0xff]  }
  0x27   : > { %1786 = vmatpush3.bf16.msra.mxu0 %v1983_v29  ;;  %v223_v29 = vld [vmem:[%s2222_s22 + $0x18] sm:$0xf]  ;;  %v280_v36 = vshll.u32 %v224_v30, 16  ;;  %v2015_v3 = vld [vmem:[%s2488_s1 + $0x130] sm:$0xff]   ;;  %v2022_v30 = vld [vmem:[%s2488_s1 + $0x200] sm:$0xff]  }
  0x28   : > { %1827 = vmatprep.subr.bf16.mxu0 %v1987_v42  ;;  %v271_v34 = vshrl.u32 %v223_v29, 16  ;;  %v274_v35 = vshll.u32 %v223_v29, 16  ;;  %v259_v39 = vrot.slane %v257_v31, 4  ;;  %v262_v40 = vrot.slane %v260_v32, 5  ;;  %v2016_v5 = vld [vmem:[%s2488_s1 + $0x1f0] sm:$0xff]  }
  0x29   : > { %1814 = vmatpush3.bf16.msra.mxu1 %v1985_v41  ;;  %v268_v42 = vrot.slane %v266_v33, 5  ;;  %v282_v44 = vrot.slane %v280_v36, 5  ;;  %v2030_v46 = vld [vmem:[%s2488_s1 + $0x230] sm:$0xff]  }
  0x2a   : > { %1855 = vmatprep.subr.bf16.mxu1 %v1990_v4  ;;  %1249 = vmatmul.mubr.bf16.vlgmr.msra.gmra.mrb[0].mxu0 %v1986_v56  ;;  %v273_v41 = vrot.slane %v271_v34, 4  ;;  %v276_v43 = vrot.slane %v274_v35, 5  ;;  %v263_v45 = vor.u32 %v262_v40, %v259_v39  ;;  %v1605_v56 = vrot.slane %v298_v51, 9 }
  0x2b   : > { %1828 = vmatpush3.bf16.msra.mxu0 %v1989_v62  ;;  %v328_v4 = vsel %vm2250_vm5, %v1606_v61, %v327_v63 }
  0x2c   : > { %1298 = vmatmul.mubr.bf16.vlgmr.msra.gmra.mrb[0].mxu1 %v1607_v10  ;;  %1829 = vmatprep.subr.bf16.mxu0 %v1992_v9  ;;  %v277_v47 = vor.u32 %v276_v43, %v273_v41  ;;  %v264_v49 = vrot.slane %v263_v45, 4  ;;  %v324_v2 = vsel %vm2250_vm5, %v1605_v56, %v323_v60  ;;  %v2019_v9 = vld [vmem:[%s2488_s1 + $0x138] sm:$0xff]   ;;  %v1650_v41 = vld [vmem:[%s2222_s22 + $0x14] sm:$0x1] }
  0x2d   : > { %1856 = vmatpush3.bf16.msra.mxu1 %v1991_v7  ;;  %1305 = vmatprep.mubr.bf16.mxu1 %v2012_v48  ;;  %v1608_v6 = vcombine.low %v324_v2, %v328_v4  ;;  %v2017_v7 = vld [vmem:[%s2488_s1 + $0x1b0] sm:$0xff]   ;;  %v2020_v10 = vld [vmem:[%s2488_s1 + $0x1f8] sm:$0xff]   ;;  %v517_v48 = vshll.u32 %v1650_v41, 16  ;;  %v1633_v4 = vld [vmem:[%s2222_s22 + $0x20] sm:$0xe] }
  0x2e   : > { %1857 = vmatprep.subr.bf16.mxu1 %v1994_v12  ;;  %v278_v52 = vrot.slane %v277_v47, 4  ;;  %v269_v57 = vsel %vm2240_vm3, %v264_v49, %v268_v42  ;;  %v1628_v12 = vld [vmem:[%s2222_s22 + $0xc] sm:$0x1]  ;;  %v1652_v45 = vld [vmem:[%s2222_s22 + $0x1c] sm:$0x1] }
  0x2f   : > { %1830 = vmatpush3.bf16.msra.mxu0 %v1993_v11  ;;  %v1627_v11 = vld [vmem:[%s2222_s22 + $0x8] sm:$0xe]  ;;  %v531_v55 = vshll.u32 %v1652_v45, 16  ;;  %v1631_v2 = vld [vmem:[%s2222_s22 + $0x18] sm:$0xe] }
  0x30   : > { %1831 = vmatprep.subr.bf16.mxu0 %v1996_v14  ;;  %v283_v62 = vsel %vm2240_vm3, %v278_v52, %v282_v44  ;;  %v1630_v14 = vld [vmem:[%s2222_s22 + $0x14] sm:$0x1]  ;;  %v1651_v44 = vld [vmem:[%s2222_s22 + $0x18] sm:$0xf] }
  0x31   : > { %1858 = vmatpush3.bf16.msra.mxu1 %v1995_v13  ;;  %v1602_v1 = vcombine.low %v269_v57, %v283_v62  ;;  %v1629_v13 = vld [vmem:[%s2222_s22 + $0x10] sm:$0xe]  ;;  %v522_v51 = vshrl.u32 %v1651_v44, 16  ;;  %v525_v52 = vshll.u32 %v1651_v44, 16  ;;  %v519_v62 = vrot.slane %v517_v48, 5 }
  0x32   : > { %1859 = vmatprep.subr.bf16.mxu1 %v1998_v16  ;;  %v453_v16 = vrot.slane %v1628_v12, 5  ;;  %v533_v63 = vrot.slane %v531_v55, 5  ;;  %v2023_v12 = vld [vmem:[%s2222_s22 + $0x10] ss:$8 sps:$4 sm:$0xff]  }
  0x33   : > { %1832 = vmatpush3.bf16.msra.mxu0 %v1997_v15  ;;  %1256 = vmatprep.mubr.bf16.mxu0 %v1602_v1  ;;  %v1635_v15 = vrot.slane %v1627_v11, 9  ;;  %v524_v57 = vrot.slane %v522_v51, 4  ;;  %v527_v58 = vrot.slane %v525_v52, 5 }
  0x34   : > { %1833 = vmatprep.subr.bf16.mxu0 %v2000_v18  ;;  %1257 = vmatmul.mubr.bf16.gmra.mrb[4].mxu0 %v2010_v53  ;;  %v457_v18 = vrot.slane %v1630_v14, 5 }
  0x35   : > { %1860 = vmatpush3.bf16.msra.mxu1 %v1999_v17  ;;  %v1636_v17 = vrot.slane %v1629_v13, 9  ;;  %v528_v1 = vor.u32 %v527_v58, %v524_v57  ;;  %v1638_v13 = vrot.slane %v1633_v4, 9 }
  0x36   : > { %1861 = vmatprep.subr.bf16.mxu1 %v2002_v20  ;;  %1306 = vmatmul.mubr.bf16.gmra.mrb[4].mxu1 %v1608_v6  ;;  %v1617_v20 = vld [vmem:[%s2222_s22 + $0x8] sm:$0xf] }
  0x37   : > { %1834 = vmatpush3.bf16.msra.mxu0 %v2001_v19  ;;  %v2021_v19 = vld [vmem:[%s2488_s1 + $0x1b8] sm:$0xff]   ;;  %v370_v27 = vshrl.u32 %v1617_v20, 16  ;;  %v373_v28 = vshll.u32 %v1617_v20, 16  ;;  %v529_v11 = vrot.slane %v528_v1, 4  ;;  %v1624_v20 = vld [vmem:[%s2222_s22 + $0x24] sm:$0x1] }
  0x38   : > { %1835 = vmatprep.subr.bf16.mxu0 %v2004_v22  ;;  %v458_v22 = vsel %vm2250_vm5, %v1636_v17, %v457_v18  ;;  %v1622_v18 = vld [vmem:[%s2222_s22 + $0x1c] sm:$0x1] }
  0x39   : > { %1862 = vmatpush3.bf16.msra.mxu1 %v2003_v21  ;;  %v454_v21 = vsel %vm2250_vm5, %v1635_v15, %v453_v16  ;;  %v372_v34 = vrot.slane %v370_v27, 4  ;;  %v375_v35 = vrot.slane %v373_v28, 5  ;;  %v1621_v15 = vld [vmem:[%s2222_s22 + $0x18] sm:$0xf]  ;;  %v407_v28 = vshll.u32 %v1622_v18, 16 }
  0x3a   : > { %1863 = vmatprep.subr.bf16.mxu1 %v2006_v24  ;;  %v1619_v24 = vld [vmem:[%s2222_s22 + $0x10] sm:$0xf] }
  0x3b   : > { %1836 = vmatpush3.bf16.msra.mxu0 %v2005_v23  ;;  %v1618_v23 = vld [vmem:[%s2222_s22 + $0xc] sm:$0x1]  ;;  %v384_v31 = vshrl.u32 %v1619_v24, 16  ;;  %v387_v32 = vshll.u32 %v1619_v24, 16  ;;  %v376_v43 = vor.u32 %v375_v35, %v372_v34  ;;  %v398_v24 = vshrl.u32 %v1621_v15, 16 }
  0x3c   : > { %1837 = vmatprep.subr.bf16.mxu0 %v2008_v26  ;;  %v1639_v26 = vcombine.low %v454_v21, %v458_v22  ;;  %v379_v29 = vshll.u32 %v1618_v23, 16  ;;  %v2025_v21 = vld [vmem:[%s2488_s1 + $0x210] sm:$0xff]   ;;  %v534_v22 = vsel %vm2240_vm3, %v529_v11, %v533_v63  ;;  %v2026_v11 = vld [vmem:[%s2222_s22 + $0x20] ss:$8 sps:$4 sm:$0xff]  }
  0x3d   : > { %1864 = vmatpush3.bf16.msra.mxu1 %v2007_v25  ;;  %v1620_v25 = vld [vmem:[%s2222_s22 + $0x14] sm:$0x1]  ;;  %v389_v39 = vrot.slane %v387_v32, 5  ;;  %v377_v53 = vrot.slane %v376_v43, 4  ;;  %v1654_v32 = vld [vmem:[%s2222_s22 + $0x24] sm:$0x1] }
  0x3e   : > { %1865 = vmatprep.subr.bf16.mxu1 %v2011_v38  ;;  %v393_v33 = vshll.u32 %v1620_v25, 16  ;;  %1346 = vmatprep.mubr.bf16.mxu0 %v1639_v26  ;;  %v381_v36 = vrot.slane %v379_v29, 5  ;;  %v386_v38 = vrot.slane %v384_v31, 4  ;;  %v401_v25 = vshll.u32 %v1621_v15, 16  ;;  %v1653_v31 = vld [vmem:[%s2222_s22 + $0x20] sm:$0xf] }
  0x3f   : > { %1838 = vmatpush3.bf16.msra.mxu0 %v2009_v37  ;;  %v1649_v37 = vld [vmem:[%s2222_s22 + $0x10] sm:$0xf]  ;;  %v539_v41 = vshll.u32 %v1653_v31, 16  ;;  %v545_v45 = vshll.u32 %v1654_v32, 16 }
  0x40   : > { %1839 = vmatprep.subr.bf16.mxu0 %v2014_v0  ;;  %v395_v40 = vrot.slane %v393_v33, 5  ;;  %v508_v42 = vshrl.u32 %v1649_v37, 16  ;;  %v511_v47 = vshll.u32 %v1649_v37, 16  ;;  %v390_v49 = vor.u32 %v389_v39, %v386_v38  ;;  %v1655_v37 = vld [vmem:[%s2222_s22 + $0x28] sm:$0xf] }
  0x41   : > { %1866 = vmatpush3.bf16.msra.mxu1 %v2013_v50  ;;  %v382_v60 = vsel %vm2240_vm3, %v377_v53, %v381_v36  ;;  %v400_v33 = vrot.slane %v398_v24, 4  ;;  %v403_v34 = vrot.slane %v401_v25, 5  ;;  %v421_v36 = vshll.u32 %v1624_v20, 16  ;;  %v1656_v39 = vld [vmem:[%s2222_s22 + $0x2c] sm:$0x1] }
  0x42   : > { %1867 = vmatprep.subr.bf16.mxu1 %v2016_v5  ;;  %v510_v50 = vrot.slane %v508_v42, 4  ;;  %v513_v54 = vrot.slane %v511_v47, 5  ;;  %v391_v56 = vrot.slane %v390_v49, 4  ;;  %v2027_v47 = vld [vmem:[%s2488_s1 + $0x218] sm:$0xff]   ;;  %v541_v49 = vrot.slane %v539_v41, 5 }
  0x43   : > { %1840 = vmatpush3.bf16.msra.mxu0 %v2015_v3  ;;  %v1632_v3 = vld [vmem:[%s2222_s22 + $0x1c] sm:$0x1]  ;;  %v404_v42 = vor.u32 %v403_v34, %v400_v33  ;;  %v423_v44 = vrot.slane %v421_v36, 5  ;;  %v553_v51 = vshll.u32 %v1655_v37, 16  ;;  %v559_v55 = vshll.u32 %v1656_v39, 16 }
  0x44   : > { %1841 = vmatprep.subr.bf16.mxu0 %v2018_v8  ;;  %v514_v61 = vor.u32 %v513_v54, %v510_v50  ;;  %v396_v0 = vsel %vm2240_vm3, %v391_v56, %v395_v40  ;;  %v1634_v8 = vld [vmem:[%s2222_s22 + $0x24] sm:$0x1]  ;;  %v536_v40 = vshrl.u32 %v1653_v31, 16  ;;  %v550_v50 = vshrl.u32 %v1655_v37, 16  ;;  %v1663_v20 = vld [vmem:[%s2222_s22 + $0x20] sm:$0xe] }
  0x45   : > { %1868 = vmatpush3.bf16.msra.mxu1 %v2017_v7  ;;  %v1625_v5 = vcombine.low %v382_v60, %v396_v0  ;;  %v2024_v7 = vld [vmem:[%s2488_s1 + $0x208] sm:$0xff]   ;;  %v465_v14 = vrot.slane %v1634_v8, 5  ;;  %v405_v52 = vrot.slane %v404_v42, 4  ;;  %v547_v54 = vrot.slane %v545_v45, 5  ;;  %v1661_v8 = vld [vmem:[%s2222_s22 + $0x18] sm:$0xe] }
  0x46   : > { %1869 = vmatprep.subr.bf16.mxu1 %v2020_v10  ;;  %v515_v6 = vrot.slane %v514_v61, 4  ;;  %v461_v10 = vrot.slane %v1632_v3, 5  ;;  %v538_v48 = vrot.slane %v536_v40, 4  ;;  %v552_v57 = vrot.slane %v550_v50, 4  ;;  %v1666_v24 = vld [vmem:[%s2222_s22 + $0x2c] sm:$0x1] }
  0x47   : > { %1842 = vmatpush3.bf16.msra.mxu0 %v2019_v9  ;;  %v1637_v9 = vrot.slane %v1631_v2, 9  ;;  %v466_v23 = vsel %vm2250_vm5, %v1638_v13, %v465_v14  ;;  %v555_v58 = vrot.slane %v553_v51, 5  ;;  %v561_v1 = vrot.slane %v559_v55, 5 }
  0x48   : > { %1893 = vmatprep.subr.bf16.mxu0 %v2022_v30  ;;  %v520_v16 = vsel %vm2240_vm3, %v515_v6, %v519_v62  ;;  %v542_v56 = vor.u32 %v541_v49, %v538_v48  ;;  %v2028_v62 = vld [vmem:[%s2488_s1 + $0x220] sm:$0xff]   ;;  %v1659_v6 = vld [vmem:[%s2222_s22 + $0x10] sm:$0xe]  ;;  %v1668_v15 = vrot.slane %v1661_v8, 9  ;;  %v1669_v25 = vrot.slane %v1663_v20, 9 }
  0x49   : > { %1870 = vmatpush3.bf16.msra.mxu1 %v2021_v19  ;;  %v462_v17 = vsel %vm2250_vm5, %v1637_v9, %v461_v10  ;;  %v1623_v19 = vld [vmem:[%s2222_s22 + $0x20] sm:$0xf]  ;;  %v1657_v26 = vcombine.low %v520_v16, %v534_v22  ;;  %v556_v0 = vor.u32 %v555_v58, %v552_v57  ;;  %v1662_v9 = vld [vmem:[%s2222_s22 + $0x1c] sm:$0x1]  ;;  %v1667_v13 = vrot.slane %v1659_v6, 9 }
  0x4a   : > { %1347 = vmatmul.mubr.bf16.vlgmr.msra.gmra.mrb[8].mxu0 %v1625_v5  ;;  %v1640_v27 = vcombine.low %v462_v17, %v466_v23  ;;  %v412_v29 = vshrl.u32 %v1623_v19, 16  ;;  %v415_v35 = vshll.u32 %v1623_v19, 16  ;;  %v543_v63 = vrot.slane %v542_v56, 4  ;;  %v1664_v22 = vld [vmem:[%s2222_s22 + $0x24] sm:$0x1] }
  0x4b   : > { %1894 = vmatpush3.bf16.msra.mxu0 %v2022_v30  ;;  %1395 = vmatprep.mubr.bf16.mxu1 %v1657_v26  ;;  %v409_v30 = vrot.slane %v407_v28, 5  ;;  %v557_v5 = vrot.slane %v556_v0, 4  ;;  %v595_v17 = vrot.slane %v1662_v9, 5  ;;  %v1665_v23 = vld [vmem:[%s2222_s22 + $0x28] sm:$0xe]  ;;  %v599_v26 = vrot.slane %v1664_v22, 5 }
  0x4c   : > { %1895 = vmatprep.subr.bf16.mxu0 %v2024_v7  ;;  %1354 = vmatprep.mubr.bf16.mxu0 %v1640_v27  ;;  %v414_v38 = vrot.slane %v412_v29, 4  ;;  %v417_v43 = vrot.slane %v415_v35, 5  ;;  %v548_v4 = vsel %vm2240_vm3, %v543_v63, %v547_v54  ;;  %v1670_v27 = vrot.slane %v1665_v23, 9  ;;  %v2031_v29 = vld [vmem:[%s2488_s1 + $0x238] sm:$0xff]   ;;  %v1673_v35 = vld [vmem:[%s2489_s2] ss:$0 sm:$0xff] }
  0x4d   : > { %1396 = vmatmul.mubr.bf16.vlgmr.msra.gmra.mrb[8].mxu1 %v2023_v12  ;;  %v410_v60 = vsel %vm2240_vm3, %v405_v52, %v409_v30  ;;  %v562_v10 = vsel %vm2240_vm3, %v557_v5, %v561_v1  ;;  %v2029_v12 = vld [vmem:[%s2488_s1 + $0x228] sm:$0xff]   ;;  %v596_v19 = vsel %vm2250_vm5, %v1668_v15, %v595_v17  ;;  %v603_v28 = vrot.slane %v1666_v24, 5 }
  0x4e   : > { %v418_v53 = vor.u32 %v417_v43, %v414_v38  ;;  %v1658_v16 = vcombine.low %v548_v4, %v562_v10  ;;  %v600_v31 = vsel %vm2250_vm5, %v1669_v25, %v599_v26 }
  0x4f   : > { %1896 = vmatpush3.bf16.msra.mxu0 %v2024_v7  ;;  %v1660_v7 = vld [vmem:[%s2222_s22 + $0x14] sm:$0x1]  ;;  %v604_v32 = vsel %vm2250_vm5, %v1670_v27, %v603_v28 }
  0x50   : > { %1897 = vmatprep.subr.bf16.mxu0 %v2025_v21  ;;  %v419_v61 = vrot.slane %v418_v53, 4  ;;  %v591_v14 = vrot.slane %v1660_v7, 5  ;;  %1403 = vmatprep.mubr.bf16.mxu1 %v1658_v16  ;;  %v1672_v33 = vcombine.low %v600_v31, %v604_v32 }
  0x52   : > { %v424_v2 = vsel %vm2240_vm3, %v419_v61, %v423_v44  ;;  %v592_v18 = vsel %vm2250_vm5, %v1667_v13, %v591_v14 }
  0x53   : > { %1898 = vmatpush3.bf16.msra.mxu0 %v2025_v21  ;;  %v1626_v3 = vcombine.low %v410_v60, %v424_v2  ;;  %v1671_v21 = vcombine.low %v592_v18, %v596_v19 }
  0x54   : > { %1899 = vmatprep.subr.bf16.mxu0 %v2027_v47 }
  0x55   : > { %1355 = vmatmul.mubr.bf16.gmra.mrb[12].mxu0 %v1626_v3  ;;  %1404 = vmatmul.mubr.bf16.gmra.mrb[12].mxu1 %v2026_v11 }
  0x56   : > { %1909 = vmatprep.mubr.bf16.mxu0 %v1671_v21 }
  0x57   : > { %1900 = vmatpush3.bf16.msra.mxu0 %v2027_v47 }
  0x58   : > { %1901 = vmatprep.subr.bf16.mxu0 %v2028_v62 }
  0x5b   : > { %1902 = vmatpush3.bf16.msra.mxu0 %v2028_v62 }
  0x5c   : > { %1903 = vmatprep.subr.bf16.mxu0 %v2029_v12 }
  0x5f   : > { %1904 = vmatpush3.bf16.msra.mxu0 %v2029_v12 }
  0x60   : > { %1905 = vmatprep.subr.bf16.mxu0 %v2030_v46 }
  0x63   : > { %1906 = vmatpush3.bf16.msra.mxu0 %v2030_v46 }
  0x64   : > { %1907 = vmatprep.subr.bf16.mxu0 %v2031_v29 }
  0x67   : > { %1908 = vmatpush3.bf16.msra.mxu0 %v2031_v29 }
  0x6a   : > { %1910 = vmatmul.mubr.bf16.vlgmr.msra.gmra.mrb[16].mxu0 %v1672_v33 }
  0xfd   : > { %v1787_v34 = vpop.f32.mrb[0].mxu0 }
  0xfe   : > { %v1788_v36 = vpop.f32.mrb[1].mxu0 }
  0xff   : > { %v1815_v37 = vpop.f32.mrb[0].mxu1  ;;  %v1789_v30 = vadd.f32 %v1788_v36, %v1787_v34  ;;  %v1790_v38 = vpop.f32.mrb[2].mxu0 }
 0x100   : > { %v1816_v39 = vpop.f32.mrb[1].mxu1  ;;  %v1791_v40 = vpop.f32.mrb[3].mxu0 }
 0x101   : > { %v1817_v41 = vadd.f32 %v1816_v39, %v1815_v37  ;;  %v1818_v42 = vpop.f32.mrb[2].mxu1  ;;  %v1251_v43 = vadd.f32 %v1789_v30, %v1673_v35  ;;  %v1792_v59 = vadd.f32 %v1791_v40, %v1790_v38 }
 0x102   : > { %v1819_v44 = vpop.f32.mrb[3].mxu1 }
 0x103   : > { %v1820_v45 = vadd.f32 %v1819_v44, %v1818_v42  ;;  %v1254_v47 = vadd.f32 %v1792_v59, %v1673_v35  ;;  %v1300_v48 = vadd.f32 %v1817_v41, %v1251_v43 }
 0x105   : > { %v1303_v49 = vadd.f32 %v1820_v45, %v1254_v47 }
 0x107   : > { %v1793_v50 = vpop.f32.mrb[4].mxu0 }
 0x108   : > { %v1794_v51 = vpop.f32.mrb[5].mxu0 }
 0x109   : > { %v1821_v52 = vpop.f32.mrb[4].mxu1  ;;  %v1795_v53 = vadd.f32 %v1794_v51, %v1793_v50  ;;  %v1796_v54 = vpop.f32.mrb[6].mxu0 }
 0x10a   : > { %v1822_v55 = vpop.f32.mrb[5].mxu1  ;;  %v1797_v56 = vpop.f32.mrb[7].mxu0 }
 0x10b   : > { %v1823_v57 = vadd.f32 %v1822_v55, %v1821_v52  ;;  %v1824_v58 = vpop.f32.mrb[6].mxu1  ;;  %v1259_v60 = vadd.f32 %v1795_v53, %v1673_v35  ;;  %v1798_v61 = vadd.f32 %v1797_v56, %v1796_v54 }
 0x10c   : > { %v1825_v62 = vpop.f32.mrb[7].mxu1 }
 0x10d   : > { %v1826_v63 = vadd.f32 %v1825_v62, %v1824_v58  ;;  %v1262_v0 = vadd.f32 %v1798_v61, %v1673_v35  ;;  %v1308_v1 = vadd.f32 %v1823_v57, %v1259_v60 }
 0x10f   : > { %v1311_v2 = vadd.f32 %v1826_v63, %v1262_v0 }
 0x11d   : > { %v1843_v3 = vpop.f32.mrb[8].mxu0 }
 0x11e   : > { %v1844_v4 = vpop.f32.mrb[9].mxu0 }
 0x11f   : > { %v1845_v5 = vadd.f32 %v1844_v4, %v1843_v3  ;;  %v1846_v6 = vpop.f32.mrb[10].mxu0 }
 0x120   : > { %v1847_v7 = vpop.f32.mrb[11].mxu0  ;;  %v1871_v10 = vpop.f32.mrb[8].mxu1 }
 0x121   : > { %v1349_v8 = vadd.f32 %v1845_v5, %v1300_v48  ;;  %v1848_v9 = vadd.f32 %v1847_v7, %v1846_v6  ;;  %v1872_v12 = vpop.f32.mrb[9].mxu1 }
 0x122   : > { %v1873_v13 = vadd.f32 %v1872_v12, %v1871_v10  ;;  %v1874_v14 = vpop.f32.mrb[10].mxu1 }
 0x123   : > { %v1352_v11 = vadd.f32 %v1848_v9, %v1303_v49  ;;  %v1875_v15 = vpop.f32.mrb[11].mxu1 }
 0x124   : > { %v1876_v16 = vadd.f32 %v1875_v15, %v1874_v14  ;;  %v1398_v17 = vadd.f32 %v1873_v13, %v1349_v8 }
 0x126   : > { %v1401_v18 = vadd.f32 %v1876_v16, %v1352_v11 }
 0x128   : > { %v1849_v46 = vpop.f32.mrb[12].mxu0  ;;  %v1877_v24 = vpop.f32.mrb[12].mxu1 }
 0x129   : > { %v1850_v19 = vpop.f32.mrb[13].mxu0  ;;  %v1878_v26 = vpop.f32.mrb[13].mxu1 }
 0x12a   : > { %v1851_v20 = vadd.f32 %v1850_v19, %v1849_v46  ;;  %v1852_v21 = vpop.f32.mrb[14].mxu0  ;;  %v1879_v28 = vadd.f32 %v1878_v26, %v1877_v24  ;;  %v1880_v29 = vpop.f32.mrb[14].mxu1 }
 0x12b   : > { %v1853_v22 = vpop.f32.mrb[15].mxu0  ;;  %v1881_v31 = vpop.f32.mrb[15].mxu1 }
 0x12c   : > { %v1357_v23 = vadd.f32 %v1851_v20, %v1308_v1  ;;  %v1854_v25 = vadd.f32 %v1853_v22, %v1852_v21  ;;  %v1882_v32 = vadd.f32 %v1881_v31, %v1880_v29 }
 0x12e   : > { %v1360_v27 = vadd.f32 %v1854_v25, %v1311_v2  ;;  %v1406_v33 = vadd.f32 %v1879_v28, %v1357_v23 }
 0x130   : > { %v1409_v34 = vadd.f32 %v1882_v32, %v1360_v27 }
 0x13d   : > { %v1911_v35 = vpop.f32.mrb[16].mxu0 }
 0x13e   : > { %v1455_v36 = vadd.f32 %v1911_v35, %v1406_v33  ;;  %v1446_v37 = vpop.f32.mrb[17].mxu0 }
 0x13f   : > { %v1447_v30 = vadd.f32 %v1446_v37, %v1398_v17  ;;  %v1912_v38 = vpop.f32.mrb[18].mxu0 }
 0x140   : > { %v1467_v39 = vmul.f32 0.1, %v1455_v36  ;;  %v1458_v40 = vadd.f32 %v1912_v38, %v1409_v34  ;;  %v1449_v41 = vpop.f32.mrb[19].mxu0  ;;  %vm1463_vm6 = vcmp.ge.f32.partialorder %v1455_v36, 0.0 }
 0x141   : > { %v1465_v42 = vmul.f32 0.1, %v1447_v30  ;;  %v1450_v43 = vadd.f32 %v1449_v41, %v1401_v18  ;;  %vm1461_vm7 = vcmp.ge.f32.partialorder %v1447_v30, 0.0 }
 0x142   : > { %vm1464_vm8 = vcmp.ge.f32.partialorder %v1458_v40, 0.0  ;;  %v1468_v59 = vmul.f32 0.1, %v1458_v40  ;;  %v1471_v45 = vsel %vm1463_vm6, %v1455_v36, %v1467_v39 }
 0x143   : > { %vm1462_vm9 = vcmp.ge.f32.partialorder %v1450_v43, 0.0  ;;  %v1466_v44 = vmul.f32 0.1, %v1450_v43  ;;  %v1469_v48 = vsel %vm1461_vm7, %v1447_v30, %v1465_v42 }
 0x144   : > { %v1472_v47 = vsel %vm1464_vm8, %v1458_v40, %v1468_v59 }
 0x145   : > { %v1768_v49 = vpack.c.bf16 %v1472_v47, %v1471_v45  ;;  %v1470_v50 = vsel %vm1462_vm9, %v1450_v43, %v1466_v44 }
 0x146   : > { %v1763_v51 = vpack.c.bf16 %v1470_v50, %v1469_v48 }
 0x147   : > { %1770 = vst [vmem:[%s192_s11 + $0x8] sm:$0xff] %v1768_v49  }
 0x148   : > { %1764 = vst [vmem:[%s192_s11] sm:$0xff] %v1763_v51  }
 0x149 PF: > { %s13_s16 = sadd.s32 1, %s2070_s16   ;;  %s2495_s12 = smov %s2062_s14 }
 0x14a   : > { %p10_p7 = scmp.ge.s32.totalorder %s13_s16, 6   ;;  %s2496_s13 = smov %s2066_s15 }
 0x14b   : > { %s2497_s14 = smov %s2500_s17  ;;  %s2498_s15 = smov %s2504_s18 }
 0x14c   :  { %12 = sbr.rel (!%p10_p7) target bundleno = 3 (0x3), region = 65 }

// kernel: darknet_forward.13
= control target key start
LH: loop header
LB: loop body
LE: loop exit
PB: predicated region body
PF: predicated region fallthrough
CT: control target
= control target key end

     0   :  { %s791_s18 = smov 0   ;;  %s867_s0 = inlined_call_operand.vmem [shape: bf16[128,128], index: 0, kind: input, shape index: {}]   ;;  %s868_s1 = inlined_call_operand.vmem [shape: bf16[128,128], index: 1, kind: input, shape index: {}]   ;;  %s869_s2 = inlined_call_operand.vmem [shape: bf16[128,128], index: 2, kind: input, shape index: {}, may-alias: {2,3}]   ;;  %s870_s3 = inlined_call_operand.vmem [shape: bf16[128,128], index: 3, kind: input, shape index: {}, may-alias: {2,3}]   ;;  %s871_s4 = inlined_call_operand.vmem [shape: f32[1,128], index: 4, kind: input, shape index: {}]   ;;  %s872_s5 = inlined_call_operand.vmem [shape: bf16[128,128], index: 5, kind: output, shape index: {}]  }
   0x1 LB: > { %s608_s19 = sadd.s32 4294967295, %s759_s18   ;;  %p612_p0 = scmp.ge.s32.totalorder %s759_s18, 1  ;;  %s759_s18 = sphi %s791_s18, %s15_s18  }
   0x2   : > { %p199_p1 = scmp.lt.s32.totalorder %s759_s18, 5 }
   0x4   : > { %p200_p2 = pnand %p612_p0, %p199_p1 }
   0x5   : > { %v733_v0 = vld [vmem:[%s870_s3] sm:$0xff] (!%p200_p2)   ;;  %s613_s22 = sshll.u32 (!%p200_p2), %s608_s19, 2  ;;  %v735_v2 = vld [vmem:[%s870_s3 + $0x8] sm:$0xff] (!%p200_p2)   ;;  %v737_v4 = vld [vmem:[%s870_s3 + $0x10] sm:$0xff] (!%p200_p2)  }
   0x6   : > { %203 = sbr.rel (%p200_p2) target bundleno = 261 (0x105), region = 40  ;;  %v734_v1 = vld [vmem:[%s869_s2] sm:$0xff] (!%p200_p2)   ;;  %681 = vmatprep.subr.bf16.mxu1 (!%p200_p2), %v733_v0  ;;  %p233_p3 = scmp.lt.s32.totalorder (!%p200_p2), %s613_s22, 15  ;;  %v736_v3 = vld [vmem:[%s869_s2 + $0x8] sm:$0xff] (!%p200_p2)   ;;  %v738_v5 = vld [vmem:[%s869_s2 + $0x10] sm:$0xff] (!%p200_p2)  }
   0x7   : > { %701 = vmatprep.subr.bf16.mxu0 (!%p200_p2), %v734_v1  ;;  %682 = vmatpush3.bf16.msra.mxu1 (!%p200_p2), %v733_v0  ;;  %v739_v6 = vld [vmem:[%s870_s3 + $0x18] sm:$0xff] (!%p200_p2)   ;;  %v741_v8 = vld [vmem:[%s870_s3 + $0x20] sm:$0xff] (!%p200_p2)   ;;  %v743_v10 = vld [vmem:[%s870_s3 + $0x28] sm:$0xff] (!%p200_p2)  }
   0x8   : > { %702 = vmatpush3.bf16.msra.mxu0 (!%p200_p2), %v734_v1  ;;  %683 = vmatprep.subr.bf16.mxu1 (!%p200_p2), %v735_v2  ;;  %v740_v7 = vld [vmem:[%s869_s2 + $0x18] sm:$0xff] (!%p200_p2)   ;;  %v742_v9 = vld [vmem:[%s869_s2 + $0x20] sm:$0xff] (!%p200_p2)   ;;  %v744_v11 = vld [vmem:[%s869_s2 + $0x28] sm:$0xff] (!%p200_p2)  }
   0x9   : > { %703 = vmatprep.subr.bf16.mxu0 (!%p200_p2), %v736_v3  ;;  %v745_v14 = vld [vmem:[%s870_s3 + $0x30] sm:$0xff] (!%p200_p2)   ;;  %v747_v16 = vld [vmem:[%s870_s3 + $0x38] sm:$0xff] (!%p200_p2)   ;;  %v639_v26 = vld [vmem:[%s871_s4] ss:$0 sm:$0xff] (!%p200_p2) }
   0xa   : > { %v746_v15 = vld [vmem:[%s869_s2 + $0x30] sm:$0xff] (!%p200_p2)   ;;  %v748_v17 = vld [vmem:[%s869_s2 + $0x38] sm:$0xff] (!%p200_p2)  }
   0xb   : > { %684 = vmatpush3.bf16.msra.mxu1 (!%p200_p2), %v735_v2 }
   0xc   : > { %704 = vmatpush3.bf16.msra.mxu0 (!%p200_p2), %v736_v3  ;;  %685 = vmatprep.subr.bf16.mxu1 (!%p200_p2), %v737_v4 }
   0xd   : > { %s874_s22 = smov (!%p233_p3, %s613_s22), 15  ;;  %705 = vmatprep.subr.bf16.mxu0 %v738_v5 }
   0xe   : > { %s823_s12 = sshll.u32 %s874_s22, 2 }
   0xf   : > { %686 = vmatpush3.bf16.msra.mxu1 %v737_v4  ;;  %s242_s20 = scalar_lea.vmem %s868_s1, %s823_s12  ;;  %s236_s25 = scalar_lea.vmem %s867_s0, %s823_s12 }
  0x10   : > { %706 = vmatpush3.bf16.msra.mxu0 %v738_v5  ;;  %687 = vmatprep.subr.bf16.mxu1 %v739_v6  ;;  %v749_v12 = vld [vmem:[%s242_s20] sm:$0xff]   ;;  %v751_v18 = vld [vmem:[%s242_s20 + $0x8] sm:$0xff]   ;;  %s248_s16 = scalar_lea.vmem %s872_s5, %s823_s12 }
  0x11   : > { %707 = vmatprep.subr.bf16.mxu0 %v740_v7  ;;  %v750_v13 = vld [vmem:[%s236_s25] sm:$0xff]   ;;  %697 = vmatprep.mubr.bf16.mxu1 %v749_v12  ;;  %v752_v19 = vld [vmem:[%s236_s25 + $0x8] sm:$0xff]  }
  0x12   : > { %717 = vmatprep.mubr.bf16.mxu0 %v750_v13 }
  0x13   : > { %688 = vmatpush3.bf16.msra.mxu1 %v739_v6 }
  0x14   : > { %708 = vmatpush3.bf16.msra.mxu0 %v740_v7  ;;  %689 = vmatprep.subr.bf16.mxu1 %v741_v8 }
  0x15   : > { %709 = vmatprep.subr.bf16.mxu0 %v742_v9 }
  0x17   : > { %690 = vmatpush3.bf16.msra.mxu1 %v741_v8 }
  0x18   : > { %710 = vmatpush3.bf16.msra.mxu0 %v742_v9  ;;  %691 = vmatprep.subr.bf16.mxu1 %v743_v10 }
  0x19   : > { %711 = vmatprep.subr.bf16.mxu0 %v744_v11 }
  0x1b   : > { %692 = vmatpush3.bf16.msra.mxu1 %v743_v10 }
  0x1c   : > { %712 = vmatpush3.bf16.msra.mxu0 %v744_v11  ;;  %693 = vmatprep.subr.bf16.mxu1 %v745_v14 }
  0x1d   : > { %713 = vmatprep.subr.bf16.mxu0 %v746_v15 }
  0x1f   : > { %694 = vmatpush3.bf16.msra.mxu1 %v745_v14 }
  0x20   : > { %714 = vmatpush3.bf16.msra.mxu0 %v746_v15  ;;  %695 = vmatprep.subr.bf16.mxu1 %v747_v16 }
  0x21   : > { %715 = vmatprep.subr.bf16.mxu0 %v748_v17 }
  0x23   : > { %696 = vmatpush3.bf16.msra.mxu1 %v747_v16 }
  0x24   : > { %716 = vmatpush3.bf16.msra.mxu0 %v748_v17 }
  0x26   : > { %698 = vmatmul.mubr.bf16.vlgmr.msra.gmra.mrb[0].mxu1 %v751_v18 }
  0x27   : > { %718 = vmatmul.mubr.bf16.vlgmr.msra.gmra.mrb[0].mxu0 %v752_v19 }
  0xf9   : > { %v699_v20 = vpop.f32.mrb[0].mxu1 }
  0xfa   : > { %v719_v21 = vpop.f32.mrb[0].mxu0  ;;  %v385_v22 = vpop.f32.mrb[1].mxu1 }
  0xfb   : > { %v503_v23 = vadd.f32 %v719_v21, %v699_v20  ;;  %v494_v24 = vpop.f32.mrb[1].mxu0  ;;  %v700_v25 = vpop.f32.mrb[2].mxu1 }
  0xfc   : > { %v495_v27 = vadd.f32 %v494_v24, %v385_v22  ;;  %v720_v28 = vpop.f32.mrb[2].mxu0  ;;  %v388_v29 = vpop.f32.mrb[3].mxu1 }
  0xfd   : > { %v506_v30 = vadd.f32 %v720_v28, %v700_v25  ;;  %v497_v31 = vpop.f32.mrb[3].mxu0  ;;  %v518_v33 = vadd.f32 %v639_v26, %v503_v23 }
  0xfe   : > { %v498_v32 = vadd.f32 %v497_v31, %v388_v29  ;;  %v516_v35 = vadd.f32 %v639_v26, %v495_v27 }
  0xff   : > { %v519_v34 = vadd.f32 %v639_v26, %v506_v30 }
 0x100   : > { %v517_v36 = vadd.f32 %v639_v26, %v498_v32 }
 0x101   : > { %v658_v37 = vpack.c.bf16 %v519_v34, %v518_v33 }
 0x102   : > { %v653_v38 = vpack.c.bf16 %v517_v36, %v516_v35 }
 0x103   : > { %660 = vst [vmem:[%s248_s16 + $0x8] sm:$0xff] %v658_v37  }
 0x104   : > { %654 = vst [vmem:[%s248_s16] sm:$0xff] %v653_v38  }
 0x105 PF: > { %s15_s18 = sadd.s32 1, %s759_s18  }
 0x106   : > { %p12_p4 = scmp.ge.s32.totalorder %s15_s18, 6  }
 0x108   :  { %14 = sbr.rel (!%p12_p4) target bundleno = 1 (0x1), region = 73 }

// kernel: darknet_forward.16
= control target key start
LH: loop header
LB: loop body
LE: loop exit
PB: predicated region body
PF: predicated region fallthrough
CT: control target
= control target key end

     0   :  { %s1556_s21 = smov 0   ;;  %s1558_s22 = smov 0   ;;  %s1728_s0 = inlined_call_operand.vmem [shape: bf16[2,64,128], index: 0, kind: input, shape index: {}]   ;;  %s1729_s1 = inlined_call_operand.vmem [shape: bf16[2,256,128], index: 1, kind: input, shape index: {}]   ;;  %s1730_s2 = inlined_call_operand.vmem [shape: bf16[128,32], index: 2, kind: input, shape index: {}]   ;;  %s1731_s3 = inlined_call_operand.vmem [shape: bf16[128,128], index: 3, kind: input, shape index: {}]   ;;  %s1732_s4 = inlined_call_operand.vmem [shape: bf16[128,128], index: 4, kind: input, shape index: {}]   ;;  %s1733_s5 = inlined_call_operand.vmem [shape: f32[1,128], index: 5, kind: input, shape index: {}]   ;;  %s1734_s6 = inlined_call_operand.vmem [shape: bf16[2,256,128], index: 6, kind: output, shape index: {}]  }
   0x1   :  { %s1560_s23 = smov 0   ;;  %s1562_s24 = smov 0  }
   0x2   :  { %s1564_s25 = smov 0  }
   0x3 LB: > { %s25_s26 = sadd.s32 1, %s1511_s23  ;;  %s28_s27 = sadd.s32 1, %s1515_s24  ;;  %s1519_s25 = sphi %s1564_s25, %s16_s25   ;;  %s1515_s24 = sphi %s1562_s24, %s1738_s24   ;;  %s1511_s23 = sphi %s1560_s23, %s1737_s23   ;;  %s1507_s22 = sphi %s1558_s22, %s1736_s22   ;;  %s1503_s21 = sphi %s1556_s21, %s1735_s21  }
   0x4   : > { %p26_p0 = scmp.ge.s32.totalorder %s25_s26, 2  ;;  %p1131_p1 = scmp.ge.s32.totalorder %s1519_s25, 1 }
   0x5   : > { %p250_p2 = scmp.lt.s32.totalorder %s1519_s25, 5 }
   0x6   : > { %s1740_s26 = smov (%p26_p0, %s25_s26), 0  ;;  %s1742_s27 = smov (!%p26_p0, %s28_s27), %s1515_s24 }
   0x7   : > { %p251_p3 = pnand %p1131_p1, %p250_p2  ;;  %p30_p4 = scmp.ge.s32.totalorder %s1742_s27, 2 }
   0x8   : > { %s1132_s28 = sshll.u32 (!%p251_p3), %s1503_s21, 2  ;;  %p298_p5 = scmp.lt.s32.totalorder (!%p251_p3), %s1507_s22, 1  ;;  %v1449_v0 = vld [vmem:[%s1730_s2] sm:$0xff] (!%p251_p3)   ;;  %vm400_vm0 = vcmask (!%p251_p3), 261120   ;;  %v1450_v5 = vld [vmem:[%s1730_s2 + $0x8] sm:$0xff] (!%p251_p3)   ;;  %v1451_v7 = vld [vmem:[%s1730_s2 + $0x10] sm:$0xff] (!%p251_p3)  }
   0x9   : > { %s1744_s27 = smov (%p30_p4, %s1742_s27), 0  ;;  %254 = sbr.rel (%p251_p3) target bundleno = 494 (0x1ee), region = 44 }
   0xa   : > { %p300_p6 = scmp.lt.s32.totalorder (!%p251_p3), %s1132_s28, 7  ;;  %1311 = vmatprep.mubr.msk.bf16.mxu0 (!%p251_p3), %vm400_vm0, %v1449_v0  ;;  %s1135_s10 = sshll.u32 (!%p251_p3), %s1503_s21, 4  ;;  %v1457_v3 = vld [vmem:[%s1732_s4] sm:$0xff] (!%p251_p3)   ;;  %v1460_v6 = vld [vmem:[%s1731_s3 + $0x8] sm:$0xff] (!%p251_p3)   ;;  %v1462_v9 = vld [vmem:[%s1731_s3 + $0x10] sm:$0xff] (!%p251_p3)  }
   0xb   : > { %p310_p7 = scmp.lt.s32.totalorder (!%p251_p3), %s1135_s10, 31  ;;  %v1458_v4 = vld [vmem:[%s1731_s3] sm:$0xff] (!%p251_p3)   ;;  %v1459_v8 = vld [vmem:[%s1732_s4 + $0x8] sm:$0xff] (!%p251_p3)   ;;  %v1452_v10 = vld [vmem:[%s1730_s2 + $0x18] sm:$0xff] (!%p251_p3)  }
   0xc   : > { %1359 = vmatprep.subr.bf16.mxu1 (!%p251_p3), %v1458_v4  ;;  %v1461_v11 = vld [vmem:[%s1732_s4 + $0x10] sm:$0xff] (!%p251_p3)   ;;  %v1464_v12 = vld [vmem:[%s1731_s3 + $0x18] sm:$0xff] (!%p251_p3)   ;;  %v1453_v13 = vld [vmem:[%s1730_s2 + $0x20] sm:$0xff] (!%p251_p3)  }
   0xd   : > { %1360 = vmatpush3.bf16.msra.mxu1 (!%p251_p3), %v1458_v4  ;;  %v1463_v14 = vld [vmem:[%s1732_s4 + $0x18] sm:$0xff] (!%p251_p3)   ;;  %v1466_v15 = vld [vmem:[%s1731_s3 + $0x20] sm:$0xff] (!%p251_p3)   ;;  %v1468_v17 = vld [vmem:[%s1731_s3 + $0x28] sm:$0xff] (!%p251_p3)  }
   0xe   : > { %1361 = vmatprep.subr.bf16.mxu1 (!%p251_p3), %v1460_v6  ;;  %v1465_v16 = vld [vmem:[%s1732_s4 + $0x20] sm:$0xff] (!%p251_p3)   ;;  %v1454_v18 = vld [vmem:[%s1730_s2 + $0x28] sm:$0xff] (!%p251_p3)   ;;  %v1455_v19 = vld [vmem:[%s1730_s2 + $0x30] sm:$0xff] (!%p251_p3)  }
   0xf   : > { %v1467_v20 = vld [vmem:[%s1732_s4 + $0x28] sm:$0xff] (!%p251_p3)   ;;  %v1470_v21 = vld [vmem:[%s1731_s3 + $0x30] sm:$0xff] (!%p251_p3)   ;;  %v1456_v23 = vld [vmem:[%s1730_s2 + $0x38] sm:$0xff] (!%p251_p3)  }
  0x10   : > { %s1746_s22 = smov (!%p298_p5, %s1507_s22), 1  ;;  %s1748_s28 = smov (!%p300_p6, %s1132_s28), 7  ;;  %v1469_v22 = vld [vmem:[%s1732_s4 + $0x30] sm:$0xff]   ;;  %v1471_v24 = vld [vmem:[%s1732_s4 + $0x38] sm:$0xff]  }
  0x11   : > { %s1133_s7 = sshll.u32 %s1746_s22, 3  ;;  %s1750_s10 = smov (!%p310_p7, %s1135_s10), 31  ;;  %1362 = vmatpush3.bf16.msra.mxu1 %v1460_v6  ;;  %v1473_v26 = vld [vmem:[%s1731_s3 + $0x38] sm:$0xff]  }
  0x12   : > { %s303_s8 = sadd.s32 %s1133_s7, %s1748_s28  ;;  %s1136_s28 = sshll.u32 %s1746_s22, 5  ;;  %1363 = vmatprep.subr.bf16.mxu1 %v1462_v9 }
  0x13   : > { %s1134_s9 = sshll.u32 %s303_s8, 2  ;;  %s1622_s12 = sadd.s32 %s1136_s28, %s1750_s10 }
  0x14   : > { %s305_s13 = scalar_lea.vmem %s1728_s0, %s1134_s9  ;;  %s1137_s16 = sshll.u32 %s1622_s12, 2 }
  0x15   : > { %v1447_v1 = vld [vmem:[%s305_s13] sm:$0xff]   ;;  %v1448_v2 = vld [vmem:[%s305_s13 + $0x8] sm:$0xff]   ;;  %s1647_s30 = scalar_lea.vmem %s1729_s1, %s1137_s16  ;;  %1364 = vmatpush3.bf16.msra.mxu1 %v1462_v9  ;;  %s1703_s17 = scalar_lea.vmem %s1734_s6, %s1137_s16 }
  0x16   : > { %1307 = vmatprep.subr.bf16.mxu0 %v1447_v1  ;;  %1365 = vmatprep.subr.bf16.mxu1 %v1464_v12  ;;  %v1472_v25 = vld [vmem:[%s1647_s30] sm:$0xff]   ;;  %v1474_v27 = vld [vmem:[%s1647_s30 + $0x8] sm:$0xff]   ;;  %v1475_v28 = vld [vmem:[%s1647_s30 + $0x10] sm:$0xff]  }
  0x17   : > { %1308 = vmatpush3.bf16.msra.mxu0 %v1447_v1  ;;  %v1476_v29 = vld [vmem:[%s1647_s30 + $0x18] sm:$0xff]   ;;  %v1477_v30 = vld [vmem:[%s1647_s30 + $0x20] sm:$0xff]   ;;  %v1478_v31 = vld [vmem:[%s1647_s30 + $0x28] sm:$0xff]  }
  0x18   : > { %1309 = vmatprep.subr.bf16.mxu0 %v1448_v2  ;;  %v1479_v32 = vld [vmem:[%s1647_s30 + $0x30] sm:$0xff]   ;;  %v1480_v33 = vld [vmem:[%s1647_s30 + $0x38] sm:$0xff]  }
  0x19   : > { %1366 = vmatpush3.bf16.msra.mxu1 %v1464_v12 }
  0x1a   : > { %1367 = vmatprep.subr.bf16.mxu1 %v1466_v15 }
  0x1b   : > { %1310 = vmatpush3.bf16.msra.mxu0 %v1448_v2 }
  0x1c   : > { %1327 = vmatprep.subr.bf16.mxu0 %v1457_v3 }
  0x1d   : > { %1368 = vmatpush3.bf16.msra.mxu1 %v1466_v15 }
  0x1e   : > { %1312 = vmatmul.mubr.msk.bf16.vlgmr.msra.gmra.mrb[0].mxu0 %vm400_vm0, %v1450_v5  ;;  %1369 = vmatprep.subr.bf16.mxu1 %v1468_v17 }
  0x1f   : > { %1315 = vmatprep.mubr.msk.bf16.mxu0 %vm400_vm0, %v1451_v7  ;;  %1328 = vmatpush3.bf16.msra.mxu0 %v1457_v3 }
  0x20   : > { %1329 = vmatprep.subr.bf16.mxu0 %v1459_v8 }
  0x21   : > { %1370 = vmatpush3.bf16.msra.mxu1 %v1468_v17 }
  0x22   : > { %1371 = vmatprep.subr.bf16.mxu1 %v1470_v21 }
  0x23   : > { %1330 = vmatpush3.bf16.msra.mxu0 %v1459_v8 }
  0x24   : > { %1331 = vmatprep.subr.bf16.mxu0 %v1461_v11 }
  0x25   : > { %1372 = vmatpush3.bf16.msra.mxu1 %v1470_v21 }
  0x26   : > { %1316 = vmatmul.mubr.msk.bf16.gmra.mrb[4].mxu0 %vm400_vm0, %v1452_v10  ;;  %1373 = vmatprep.subr.bf16.mxu1 %v1473_v26 }
  0x27   : > { %1319 = vmatprep.mubr.msk.bf16.mxu0 %vm400_vm0, %v1453_v13  ;;  %1332 = vmatpush3.bf16.msra.mxu0 %v1461_v11  ;;  %v1183_v13 = vld [vmem:[%s1733_s5] ss:$0 sm:$0xff] }
  0x28   : > { %1333 = vmatprep.subr.bf16.mxu0 %v1463_v14 }
  0x29   : > { %1374 = vmatpush3.bf16.msra.mxu1 %v1473_v26 }
  0x2b   : > { %1334 = vmatpush3.bf16.msra.mxu0 %v1463_v14 }
  0x2c   : > { %1335 = vmatprep.subr.bf16.mxu0 %v1465_v16 }
  0x2e   : > { %1320 = vmatmul.mubr.msk.bf16.gmra.mrb[8].mxu0 %vm400_vm0, %v1454_v18 }
  0x2f   : > { %1323 = vmatprep.mubr.msk.bf16.mxu0 %vm400_vm0, %v1455_v19  ;;  %1336 = vmatpush3.bf16.msra.mxu0 %v1465_v16 }
  0x30   : > { %1337 = vmatprep.subr.bf16.mxu0 %v1467_v20 }
  0x33   : > { %1338 = vmatpush3.bf16.msra.mxu0 %v1467_v20 }
  0x34   : > { %1339 = vmatprep.subr.bf16.mxu0 %v1469_v22 }
  0x36   : > { %1324 = vmatmul.mubr.msk.bf16.gmra.mrb[12].mxu0 %vm400_vm0, %v1456_v23 }
  0x37   : > { %1340 = vmatpush3.bf16.msra.mxu0 %v1469_v22  ;;  %1343 = vmatprep.mubr.bf16.mxu0 %v1472_v25 }
  0x38   : > { %1341 = vmatprep.subr.bf16.mxu0 %v1471_v24 }
  0x3b   : > { %1342 = vmatpush3.bf16.msra.mxu0 %v1471_v24 }
  0x3e   : > { %1344 = vmatmul.mubr.bf16.vlgmr.msra.gmra.mrb[16].mxu0 %v1474_v27 }
  0x3f   : > { %1347 = vmatprep.mubr.bf16.mxu0 %v1475_v28 }
  0x46   : > { %1348 = vmatmul.mubr.bf16.gmra.mrb[20].mxu0 %v1476_v29 }
  0x47   : > { %1351 = vmatprep.mubr.bf16.mxu0 %v1477_v30 }
  0x4e   : > { %1352 = vmatmul.mubr.bf16.gmra.mrb[24].mxu0 %v1478_v31 }
  0x4f   : > { %1355 = vmatprep.mubr.bf16.mxu0 %v1479_v32 }
  0x56   : > { %1356 = vmatmul.mubr.bf16.gmra.mrb[28].mxu0 %v1480_v33 }
  0xf1   : > { %v1313_v34 = vpop.f32.mrb[0].mxu0 }
  0xf2   : > { %v459_v35 = vpop.f32.mrb[1].mxu0 }
  0xf3   : > { %v1314_v36 = vpop.f32.mrb[2].mxu0 }
  0xf4   : > { %v523_v37 = vpack.c.bf16 %v1314_v36, %v1313_v34  ;;  %v462_v38 = vpop.f32.mrb[3].mxu0 }
  0xf5   : > { %v522_v39 = vpack.c.bf16 %v462_v38, %v459_v35 }
  0xf7   : > { %1375 = vmatprep.mubr.bf16.mxu1 %v522_v39 }
  0xf8   : > { %1376 = vmatmul.mubr.bf16.vlgmr.msra.gmra.mrb[0].mxu1 %v523_v37 }
  0xf9   : > { %v1317_v40 = vpop.f32.mrb[4].mxu0 }
  0xfa   : > { %v475_v41 = vpop.f32.mrb[5].mxu0 }
  0xfb   : > { %v1318_v42 = vpop.f32.mrb[6].mxu0 }
  0xfc   : > { %v525_v43 = vpack.c.bf16 %v1318_v42, %v1317_v40  ;;  %v478_v44 = vpop.f32.mrb[7].mxu0 }
  0xfd   : > { %v524_v45 = vpack.c.bf16 %v478_v44, %v475_v41 }
  0xff   : > { %1379 = vmatprep.mubr.bf16.mxu1 %v524_v45 }
 0x100   : > { %1380 = vmatmul.mubr.bf16.gmra.mrb[4].mxu1 %v525_v43 }
 0x101   : > { %v1321_v46 = vpop.f32.mrb[8].mxu0 }
 0x102   : > { %v491_v47 = vpop.f32.mrb[9].mxu0 }
 0x103   : > { %v1322_v48 = vpop.f32.mrb[10].mxu0 }
 0x104   : > { %v527_v49 = vpack.c.bf16 %v1322_v48, %v1321_v46  ;;  %v494_v50 = vpop.f32.mrb[11].mxu0 }
 0x105   : > { %v526_v51 = vpack.c.bf16 %v494_v50, %v491_v47 }
 0x107   : > { %1383 = vmatprep.mubr.bf16.mxu1 %v526_v51 }
 0x108   : > { %1384 = vmatmul.mubr.bf16.gmra.mrb[8].mxu1 %v527_v49 }
 0x109   : > { %v1325_v52 = vpop.f32.mrb[12].mxu0 }
 0x10a   : > { %v507_v53 = vpop.f32.mrb[13].mxu0 }
 0x10b   : > { %v1326_v54 = vpop.f32.mrb[14].mxu0 }
 0x10c   : > { %v529_v55 = vpack.c.bf16 %v1326_v54, %v1325_v52  ;;  %v510_v56 = vpop.f32.mrb[15].mxu0 }
 0x10d   : > { %v528_v57 = vpack.c.bf16 %v510_v56, %v507_v53 }
 0x10f   : > { %1387 = vmatprep.mubr.bf16.mxu1 %v528_v57 }
 0x110   : > { %1388 = vmatmul.mubr.bf16.gmra.mrb[12].mxu1 %v529_v55 }
 0x111   : > { %v1345_v58 = vpop.f32.mrb[16].mxu0 }
 0x112   : > { %v708_v59 = vpop.f32.mrb[17].mxu0 }
 0x113   : > { %v1346_v60 = vpop.f32.mrb[18].mxu0 }
 0x114   : > { %v711_v61 = vpop.f32.mrb[19].mxu0 }
 0x119   : > { %v1349_v62 = vpop.f32.mrb[20].mxu0 }
 0x11a   : > { %v724_v63 = vpop.f32.mrb[21].mxu0 }
 0x11b   : > { %v1350_v0 = vpop.f32.mrb[22].mxu0 }
 0x11c   : > { %v727_v1 = vpop.f32.mrb[23].mxu0 }
 0x121   : > { %v1353_v2 = vpop.f32.mrb[24].mxu0 }
 0x122   : > { %v740_v3 = vpop.f32.mrb[25].mxu0 }
 0x123   : > { %v1354_v4 = vpop.f32.mrb[26].mxu0 }
 0x124   : > { %v743_v5 = vpop.f32.mrb[27].mxu0 }
 0x129   : > { %v1357_v6 = vpop.f32.mrb[28].mxu0 }
 0x12a   : > { %v756_v7 = vpop.f32.mrb[29].mxu0 }
 0x12b   : > { %v1358_v8 = vpop.f32.mrb[30].mxu0 }
 0x12c   : > { %v759_v9 = vpop.f32.mrb[31].mxu0 }
 0x1cb   : > { %v1377_v10 = vpop.f32.mrb[0].mxu1 }
 0x1cc   : > { %v862_v11 = vadd.f32 %v1377_v10, %v1345_v58  ;;  %v853_v12 = vpop.f32.mrb[1].mxu1 }
 0x1cd   : > { %v854_v14 = vadd.f32 %v853_v12, %v708_v59  ;;  %v1378_v15 = vpop.f32.mrb[2].mxu1 }
 0x1ce   : > { %v865_v16 = vadd.f32 %v1378_v15, %v1346_v60  ;;  %v856_v17 = vpop.f32.mrb[3].mxu1  ;;  %v925_v19 = vadd.f32 %v1183_v13, %v862_v11 }
 0x1cf   : > { %v857_v18 = vadd.f32 %v856_v17, %v711_v61  ;;  %v923_v21 = vadd.f32 %v1183_v13, %v854_v14 }
 0x1d0   : > { %v926_v20 = vadd.f32 %v1183_v13, %v865_v16 }
 0x1d1   : > { %v924_v22 = vadd.f32 %v1183_v13, %v857_v18 }
 0x1d2   : > { %v1226_v23 = vpack.c.bf16 %v926_v20, %v925_v19 }
 0x1d3   : > { %v1221_v24 = vpack.c.bf16 %v924_v22, %v923_v21  ;;  %v1381_v25 = vpop.f32.mrb[4].mxu1 }
 0x1d4   : > { %1258 = vst [vmem:[%s1703_s17 + $0x8] sm:$0xff] %v1226_v23   ;;  %v878_v26 = vadd.f32 %v1381_v25, %v1349_v62  ;;  %v869_v27 = vpop.f32.mrb[5].mxu1 }
 0x1d5   : > { %1222 = vst [vmem:[%s1703_s17] sm:$0xff] %v1221_v24   ;;  %v870_v28 = vadd.f32 %v869_v27, %v724_v63  ;;  %v1382_v29 = vpop.f32.mrb[6].mxu1 }
 0x1d6   : > { %v881_v30 = vadd.f32 %v1382_v29, %v1350_v0  ;;  %v872_v31 = vpop.f32.mrb[7].mxu1  ;;  %v929_v33 = vadd.f32 %v1183_v13, %v878_v26 }
 0x1d7   : > { %v873_v32 = vadd.f32 %v872_v31, %v727_v1  ;;  %v927_v35 = vadd.f32 %v1183_v13, %v870_v28 }
 0x1d8   : > { %v930_v34 = vadd.f32 %v1183_v13, %v881_v30 }
 0x1d9   : > { %v928_v36 = vadd.f32 %v1183_v13, %v873_v32 }
 0x1da   : > { %v1236_v37 = vpack.c.bf16 %v930_v34, %v929_v33 }
 0x1db   : > { %v1231_v38 = vpack.c.bf16 %v928_v36, %v927_v35  ;;  %v1385_v39 = vpop.f32.mrb[8].mxu1 }
 0x1dc   : > { %1260 = vst [vmem:[%s1703_s17 + $0x18] sm:$0xff] %v1236_v37   ;;  %v894_v40 = vadd.f32 %v1385_v39, %v1353_v2  ;;  %v885_v41 = vpop.f32.mrb[9].mxu1 }
 0x1dd   : > { %1259 = vst [vmem:[%s1703_s17 + $0x10] sm:$0xff] %v1231_v38   ;;  %v886_v42 = vadd.f32 %v885_v41, %v740_v3  ;;  %v1386_v43 = vpop.f32.mrb[10].mxu1 }
 0x1de   : > { %v897_v44 = vadd.f32 %v1386_v43, %v1354_v4  ;;  %v888_v45 = vpop.f32.mrb[11].mxu1  ;;  %v933_v47 = vadd.f32 %v1183_v13, %v894_v40 }
 0x1df   : > { %v889_v46 = vadd.f32 %v888_v45, %v743_v5  ;;  %v931_v49 = vadd.f32 %v1183_v13, %v886_v42 }
 0x1e0   : > { %v934_v48 = vadd.f32 %v1183_v13, %v897_v44 }
 0x1e1   : > { %v932_v50 = vadd.f32 %v1183_v13, %v889_v46 }
 0x1e2   : > { %v1246_v51 = vpack.c.bf16 %v934_v48, %v933_v47 }
 0x1e3   : > { %v1241_v52 = vpack.c.bf16 %v932_v50, %v931_v49  ;;  %v1389_v53 = vpop.f32.mrb[12].mxu1 }
 0x1e4   : > { %1262 = vst [vmem:[%s1703_s17 + $0x28] sm:$0xff] %v1246_v51   ;;  %v910_v54 = vadd.f32 %v1389_v53, %v1357_v6  ;;  %v901_v55 = vpop.f32.mrb[13].mxu1 }
 0x1e5   : > { %1261 = vst [vmem:[%s1703_s17 + $0x20] sm:$0xff] %v1241_v52   ;;  %v902_v56 = vadd.f32 %v901_v55, %v756_v7  ;;  %v1390_v57 = vpop.f32.mrb[14].mxu1 }
 0x1e6   : > { %v913_v58 = vadd.f32 %v1390_v57, %v1358_v8  ;;  %v904_v59 = vpop.f32.mrb[15].mxu1  ;;  %v937_v61 = vadd.f32 %v1183_v13, %v910_v54 }
 0x1e7   : > { %v905_v60 = vadd.f32 %v904_v59, %v759_v9  ;;  %v935_v63 = vadd.f32 %v1183_v13, %v902_v56 }
 0x1e8   : > { %v938_v62 = vadd.f32 %v1183_v13, %v913_v58 }
 0x1e9   : > { %v936_v0 = vadd.f32 %v1183_v13, %v905_v60 }
 0x1ea   : > { %v1256_v1 = vpack.c.bf16 %v938_v62, %v937_v61 }
 0x1eb   : > { %v1251_v2 = vpack.c.bf16 %v936_v0, %v935_v63 }
 0x1ec   : > { %1264 = vst [vmem:[%s1703_s17 + $0x38] sm:$0xff] %v1256_v1  }
 0x1ed   : > { %1263 = vst [vmem:[%s1703_s17 + $0x30] sm:$0xff] %v1251_v2  }
 0x1ee PF: > { %s16_s25 = sadd.s32 1, %s1519_s25   ;;  %s1735_s21 = smov %s1511_s23 }
 0x1ef   : > { %p13_p8 = scmp.ge.s32.totalorder %s16_s25, 6   ;;  %s1736_s22 = smov %s1515_s24 }
 0x1f0   : > { %s1737_s23 = smov %s1740_s26  ;;  %s1738_s24 = smov %s1744_s27 }
 0x1f1   :  { %15 = sbr.rel (!%p13_p8) target bundleno = 3 (0x3), region = 77 }

// kernel: darknet_forward.14
= control target key start
LH: loop header
LB: loop body
LE: loop exit
PB: predicated region body
PF: predicated region fallthrough
CT: control target
= control target key end

     0   :  { %s428_s9 = smov 0   ;;  %s471_s0 = inlined_call_operand.vmem [shape: bf16[128,128], index: 0, kind: input, shape index: {}]   ;;  %s472_s1 = inlined_call_operand.vmem [shape: f32[8,128], index: 1, kind: input, shape index: {}]   ;;  %s473_s2 = inlined_call_operand.vmem [shape: f32[128,128], index: 2, kind: output, shape index: {}]  }
   0x1 LB: > { %s344_s10 = sadd.s32 4294967295, %s411_s9   ;;  %p348_p0 = scmp.ge.s32.totalorder %s411_s9, 1  ;;  %s411_s9 = sphi %s428_s9, %s12_s9  }
   0x2   : > { %p113_p1 = scmp.lt.s32.totalorder %s411_s9, 5 }
   0x4   : > { %p114_p2 = pnand %p348_p0, %p113_p1 }
   0x5   : > { %s349_s11 = sshll.u32 (!%p114_p2), %s344_s10, 2  ;;  %v148_v0 = vlaneseq (!%p114_p2)  ;;  %s353_s16 = sshll.u32 (!%p114_p2), %s344_s10, 5  ;;  %v358_v44 = vld [vmem:[%s472_s1] ss:$0 sm:$0xff] (!%p114_p2)  ;;  %v359_v50 = vld [vmem:[%s472_s1 + $0x1] ss:$0 sm:$0xff] (!%p114_p2) }
   0x6   : > { %117 = sbr.rel (%p114_p2) target bundleno = 59 (0x3b), region = 28  ;;  %p136_p3 = scmp.lt.s32.totalorder (!%p114_p2), %s349_s11, 15  ;;  %v153_v12 = vstv (!%p114_p2), %s353_s16  ;;  %v180_v51 = vld [vmem:[%s472_s1 + $0x2] sm:$0x1] (!%p114_p2)  ;;  %v361_v59 = vld [vmem:[%s472_s1 + $0x3] ss:$0 sm:$0xff] (!%p114_p2) }
   0x7   : > { %v442_v5 = vshrl.u32 (!%p114_p2), %v148_v0, 7  ;;  %v271_v0 = vsub.f32 (!%p114_p2), 1.0, %v180_v51 }
   0x9   : > { %v150_v13 = vadd.s32 (!%p114_p2), 8, %v442_v5  ;;  %v151_v14 = vadd.s32 (!%p114_p2), 16, %v442_v5  ;;  %v152_v15 = vadd.s32 (!%p114_p2), 24, %v442_v5  ;;  %v154_v16 = vadd.s32 (!%p114_p2), %v153_v12, %v442_v5 }
   0xa   : > { %v265_v56 = vsub.s32 (!%p114_p2), 0, %v442_v5 }
   0xb   : > { %v155_v18 = vadd.s32 (!%p114_p2), %v153_v12, %v150_v13  ;;  %v156_v20 = vadd.s32 (!%p114_p2), %v153_v12, %v151_v14  ;;  %v157_v22 = vadd.s32 (!%p114_p2), %v153_v12, %v152_v15  ;;  %v158_v23 = vand.u32 (!%p114_p2), 63, %v154_v16 }
   0xc   : > { %v266_v5 = vrot.slane (!%p114_p2), %v180_v51, %v265_v56 }
   0xd   : > { %s475_s11 = smov (!%p136_p3, %s349_s11), 15  ;;  %v159_v25 = vand.u32 63, %v155_v18  ;;  %v160_v27 = vand.u32 63, %v156_v20  ;;  %v161_v30 = vand.u32 63, %v157_v22  ;;  %v162_v32 = vand.u32 7, %v158_v23 }
   0xe   : > { %s350_s12 = sshll.u32 %s475_s11, 2  ;;  %v170_v37 = vshra.s32 %v158_v23, 3  ;;  %s352_s27 = sshll.u32 %s475_s11, 3 }
   0xf   : > { %s139_s15 = scalar_lea.vmem %s471_s0, %s350_s12  ;;  %v163_v36 = vand.u32 7, %v159_v25  ;;  %v164_v39 = vand.u32 7, %v160_v27  ;;  %v171_v40 = vshra.s32 %v159_v25, 3  ;;  %v165_v41 = vand.u32 7, %v161_v30  ;;  %s145_s30 = scalar_lea.vmem %s473_s2, %s352_s27 }
  0x10   : > { %v365_v1 = vld [vmem:[%s139_s15] sm:$0xff]   ;;  %v372_v2 = vld [vmem:[%s139_s15 + $0x8] sm:$0xff]   ;;  %v166_v42 = vcvt.s32.f32 %v162_v32  ;;  %v172_v43 = vshra.s32 %v160_v27, 3  ;;  %v173_v46 = vshra.s32 %v161_v30, 3  ;;  %v174_v47 = vcvt.s32.f32 %v170_v37 }
  0x11   : > { %v366_v3 = vunpack.c.l.bf16 %v365_v1  ;;  %v367_v4 = vunpack.c.h.bf16 %v365_v1  ;;  %v370_v6 = vunpack.c.l.bf16 %v372_v2  ;;  %v371_v7 = vunpack.c.h.bf16 %v372_v2 }
  0x12   : > { %v167_v45 = vcvt.s32.f32 %v163_v36  ;;  %v168_v48 = vcvt.s32.f32 %v164_v39  ;;  %v175_v52 = vcvt.s32.f32 %v171_v40  ;;  %v169_v53 = vcvt.s32.f32 %v165_v41 }
  0x13   : > { %v354_v8 = vmul.f32 -1.442695, %v366_v3  ;;  %v355_v9 = vmul.f32 -1.442695, %v367_v4  ;;  %v356_v10 = vmul.f32 -1.442695, %v370_v6  ;;  %v227_v55 = vmul.f32 %v358_v44, %v166_v42 }
  0x14   : > { %v357_v11 = vmul.f32 -1.442695, %v371_v7  ;;  %v215_v17 = vmul.f32 1.442695, %v366_v3  ;;  %v217_v19 = vmul.f32 1.442695, %v367_v4  ;;  %v176_v57 = vcvt.s32.f32 %v172_v43 }
  0x15   : > { %381 = vpow2.f32 %v354_v8  ;;  %v219_v21 = vmul.f32 1.442695, %v370_v6  ;;  %v221_v24 = vmul.f32 1.442695, %v371_v7  ;;  %v228_v60 = vmul.f32 %v358_v44, %v167_v45 }
  0x16   : > { %383 = vpow2.f32 %v355_v9  ;;  %v177_v61 = vcvt.s32.f32 %v173_v46  ;;  %v239_v63 = vmul.f32 %v359_v50, %v174_v47  ;;  %v229_v1 = vmul.f32 %v358_v44, %v168_v48 }
  0x17   : > { %385 = vpow2.f32 %v356_v10  ;;  %v240_v3 = vmul.f32 %v359_v50, %v175_v52  ;;  %v230_v4 = vmul.f32 %v358_v44, %v169_v53  ;;  %v241_v9 = vmul.f32 %v359_v50, %v176_v57 }
  0x18   : > { %387 = vpow2.f32 %v357_v11  ;;  %v360_v11 = vld [vmem:[%s472_s1 + $0x4] ss:$0 sm:$0xff]  ;;  %v242_v14 = vmul.f32 %v359_v50, %v177_v61 }
  0x19   : > { %389 = vpow2.f32 %v215_v17  ;;  %v275_v17 = vrot.slane %v271_v0, %v265_v56 }
  0x1a   : > { %391 = vpow2.f32 %v217_v19 }
  0x1b   : > { %393 = vpow2.f32 %v219_v21 }
  0x1c   : > { %395 = vpow2.f32 %v221_v24 }
  0x1f   : > { %v382_v26 = vpop.eup %381 }
  0x20   : > { %v384_v28 = vpop.eup %383  ;;  %v203_v29 = vadd.f32 1.0, %v382_v26 }
  0x21   : > { %v386_v31 = vpop.eup %385  ;;  %v204_v33 = vadd.f32 1.0, %v384_v28 }
  0x22   : > { %v388_v34 = vpop.eup %387  ;;  %v205_v35 = vadd.f32 1.0, %v386_v31  ;;  %397 = vrcp.f32 %v203_v29 }
  0x23   : > { %v206_v38 = vadd.f32 1.0, %v388_v34  ;;  %399 = vrcp.f32 %v204_v33  ;;  %v390_v49 = vpop.eup %389 }
  0x24   : > { %401 = vrcp.f32 %v205_v35  ;;  %v392_v54 = vpop.eup %391  ;;  %v259_v8 = vmul.f32 %v390_v49, %v361_v59 }
  0x25   : > { %403 = vrcp.f32 %v206_v38  ;;  %v394_v58 = vpop.eup %393  ;;  %v260_v13 = vmul.f32 %v392_v54, %v361_v59 }
  0x26   : > { %v396_v62 = vpop.eup %395  ;;  %v261_v19 = vmul.f32 %v394_v58, %v361_v59  ;;  %v267_v24 = vmul.f32 %v266_v5, %v259_v8 }
  0x27   : > { %v262_v22 = vmul.f32 %v396_v62, %v361_v59  ;;  %v268_v27 = vmul.f32 %v266_v5, %v260_v13 }
  0x28   : > { %v269_v31 = vmul.f32 %v266_v5, %v261_v19 }
  0x29   : > { %v270_v34 = vmul.f32 %v266_v5, %v262_v22 }
  0x2c   : > { %v398_v2 = vpop.eup %397 }
  0x2d   : > { %v400_v6 = vpop.eup %399  ;;  %v231_v7 = vadd.f32 %v398_v2, %v227_v55 }
  0x2e   : > { %v402_v10 = vpop.eup %401  ;;  %v232_v12 = vadd.f32 %v400_v6, %v228_v60 }
  0x2f   : > { %v404_v15 = vpop.eup %403  ;;  %v243_v16 = vadd.f32 %v239_v63, %v231_v7  ;;  %v233_v18 = vadd.f32 %v402_v10, %v229_v1 }
  0x30   : > { %v244_v20 = vadd.f32 %v240_v3, %v232_v12  ;;  %v234_v21 = vadd.f32 %v404_v15, %v230_v4 }
  0x31   : > { %v251_v23 = vmul.f32 %v360_v11, %v243_v16  ;;  %v245_v25 = vadd.f32 %v241_v9, %v233_v18 }
  0x32   : > { %v252_v26 = vmul.f32 %v360_v11, %v244_v20  ;;  %v246_v28 = vadd.f32 %v242_v14, %v234_v21 }
  0x33   : > { %v276_v29 = vmul.f32 %v275_v17, %v251_v23  ;;  %v253_v30 = vmul.f32 %v360_v11, %v245_v25 }
  0x34   : > { %v277_v32 = vmul.f32 %v275_v17, %v252_v26  ;;  %v254_v33 = vmul.f32 %v360_v11, %v246_v28 }
  0x35   : > { %v280_v35 = vadd.f32 %v276_v29, %v267_v24  ;;  %v278_v36 = vmul.f32 %v275_v17, %v253_v30 }
  0x36   : > { %v281_v37 = vadd.f32 %v277_v32, %v268_v27  ;;  %v279_v38 = vmul.f32 %v275_v17, %v254_v33 }
  0x37   : > { %284 = vst [vmem:[%s145_s30] sm:$0xff] %v280_v35  ;;  %v282_v39 = vadd.f32 %v278_v36, %v269_v31 }
  0x38   : > { %285 = vst [vmem:[%s145_s30 + $0x8] sm:$0xff] %v281_v37  ;;  %v283_v40 = vadd.f32 %v279_v38, %v270_v34 }
  0x39   : > { %286 = vst [vmem:[%s145_s30 + $0x10] sm:$0xff] %v282_v39 }
  0x3a   : > { %287 = vst [vmem:[%s145_s30 + $0x18] sm:$0xff] %v283_v40 }
  0x3b PF: > { %s12_s9 = sadd.s32 1, %s411_s9  }
  0x3c   : > { %p9_p4 = scmp.ge.s32.totalorder %s12_s9, 6  }
  0x3e   :  { %11 = sbr.rel (!%p9_p4) target bundleno = 1 (0x1), region = 58 }

// kernel: darknet_forward.9
= control target key start
LH: loop header
LB: loop body
LE: loop exit
PB: predicated region body
PF: predicated region fallthrough
CT: control target
= control target key end

     0   :  { %s5017_s15 = smov 0   ;;  %s5019_s16 = smov 0   ;;  %s6034_s0 = inlined_call_operand.vmem [shape: bf16[2,18,18,128], index: 0, kind: input, shape index: {}]   ;;  %s6035_s1 = inlined_call_operand.vmem [shape: bf16[1152,128], index: 1, kind: input, shape index: {}]   ;;  %s6036_s2 = inlined_call_operand.vmem [shape: f32[1,128], index: 2, kind: input, shape index: {}]   ;;  %s6037_s3 = inlined_call_operand.vmem [shape: bf16[2,256,128], index: 3, kind: output, shape index: {0}]   ;;  %s6038_s4 = inlined_call_operand.vmem [shape: bf16[2,64,128], index: 4, kind: output, shape index: {1}]  }
   0x1   :  { %s5021_s17 = smov 0   ;;  %s5023_s18 = smov 0  }
   0x2   :  { %s5025_s19 = smov 0  }
   0x3 LB: > { %s24_s20 = sadd.s32 1, %s4981_s17  ;;  %s27_s21 = sadd.s32 1, %s4985_s18  ;;  %s4989_s19 = sphi %s5025_s19, %s15_s19   ;;  %s4985_s18 = sphi %s5023_s18, %s6050_s18   ;;  %s4981_s17 = sphi %s5021_s17, %s6049_s17   ;;  %s4977_s16 = sphi %s5019_s16, %s6048_s16   ;;  %s4973_s15 = sphi %s5017_s15, %s6047_s15  }
   0x4   : > { %p25_p0 = scmp.ge.s32.totalorder %s24_s20, 2  ;;  %p3971_p1 = scmp.ge.s32.totalorder %s4989_s19, 1 }
   0x5   : > { %p181_p2 = scmp.lt.s32.totalorder %s4989_s19, 5 }
   0x6   : > { %s6052_s20 = smov (%p25_p0, %s24_s20), 0  ;;  %s6054_s21 = smov (!%p25_p0, %s27_s21), %s4985_s18 }
   0x7   : > { %p182_p3 = pnand %p3971_p1, %p181_p2  ;;  %p29_p4 = scmp.ge.s32.totalorder %s6054_s21, 2 }
   0x9   : > { %s6056_s21 = smov (%p29_p4, %s6054_s21), 0  ;;  %185 = sbr.rel (%p182_p3) target bundleno = 513 (0x201), region = 32 }
  0x10   : > { %v4855_v0 = vld [vmem:[%s6035_s1 + $0x40] sm:$0xff]   ;;  %v4859_v4 = vld [vmem:[%s6035_s1 + $0x48] sm:$0xff]   ;;  %v4863_v8 = vld [vmem:[%s6035_s1 + $0x50] sm:$0xff]   ;;  %p220_p5 = scmp.lt.s32.totalorder %s4977_s16, 1  ;;  %s4397_s11 = smul.u32 96, %s4973_s15  ;;  %vm629_vm0 = vcmask 1042432  }
  0x11   : > { %v4856_v1 = vld [vmem:[%s6035_s1 + $0xc0] sm:$0xff]   ;;  %4493 = vmatprep.subr.bf16.mxu0 %v4855_v0  ;;  %v4860_v5 = vld [vmem:[%s6035_s1 + $0xc8] sm:$0xff]   ;;  %v4864_v9 = vld [vmem:[%s6035_s1 + $0xd0] sm:$0xff]   ;;  %vm630_vm1 = vcmask 1046532   ;;  %vm346_vm2 = vsmask.f32 3328 }
  0x12   : > { %v4857_v2 = vld [vmem:[%s6035_s1] sm:$0xff]   ;;  %4557 = vmatprep.subr.bf16.mxu1 %v4856_v1  ;;  %v4861_v6 = vld [vmem:[%s6035_s1 + $0x8] sm:$0xff]   ;;  %v4865_v10 = vld [vmem:[%s6035_s1 + $0x10] sm:$0xff]   ;;  %s6058_s16 = smov (!%p220_p5, %s4977_s16), 1  ;;  %vm347_vm3 = vsmask.f32 7440 }
  0x13   : > { %v4858_v3 = vld [vmem:[%s6035_s1 + $0x80] sm:$0xff]   ;;  %4494 = vmatpush3.bf16.msra.mxu0 %v4857_v2  ;;  %v4862_v7 = vld [vmem:[%s6035_s1 + $0x88] sm:$0xff]   ;;  %v4866_v11 = vld [vmem:[%s6035_s1 + $0x90] sm:$0xff]   ;;  %s4813_s30 = smul.u32 216, %s6058_s16  ;;  %s3973_s25 = sshll.u32 %s4973_s15, 4  ;;  %vm3749_vm11 = vcmask 1041409  }
  0x14   : > { %4558 = vmatpush3.bf16.msra.mxu1 %v4858_v3  ;;  %4495 = vmatprep.subr.bf16.mxu0 %v4859_v4  ;;  %v4867_v12 = vld [vmem:[%s6035_s1 + $0x58] sm:$0xff]   ;;  %v4871_v16 = vld [vmem:[%s6035_s1 + $0x60] sm:$0xff]   ;;  %v4875_v20 = vld [vmem:[%s6035_s1 + $0x68] sm:$0xff]   ;;  %p5831_p6 = scmp.lt.s32.totalorder %s3973_s25, 31  ;;  %vm3752_vm12 = vcmask 1042434   ;;  %s3974_s27 = sshll.u32 %s6058_s16, 5 }
  0x15   : > { %4559 = vmatprep.subr.bf16.mxu1 %v4860_v5  ;;  %v4868_v13 = vld [vmem:[%s6035_s1 + $0xd8] sm:$0xff]   ;;  %v4872_v17 = vld [vmem:[%s6035_s1 + $0xe0] sm:$0xff]   ;;  %v4876_v21 = vld [vmem:[%s6035_s1 + $0xe8] sm:$0xff]   ;;  %s224_s23 = scalar_lea.vmem %s6034_s0, %s4813_s30  ;;  %vm3755_vm14 = vcmask 1043459   ;;  %s3976_s8 = sshll.u32 %s4973_s15, 2 }
  0x16   : > { %v4869_v14 = vld [vmem:[%s6035_s1 + $0x18] sm:$0xff]   ;;  %v4873_v18 = vld [vmem:[%s6035_s1 + $0x20] sm:$0xff]   ;;  %v4877_v22 = vld [vmem:[%s6035_s1 + $0x28] sm:$0xff]   ;;  %s5150_s5 = scalar_lea.vmem %s224_s23, %s4397_s11  ;;  %s6060_s25 = smov (!%p5831_p6, %s3973_s25), 31 }
  0x17   : > { %4496 = vmatpush3.bf16.msra.mxu0 %v4861_v6  ;;  %v4870_v15 = vld [vmem:[%s6035_s1 + $0x98] sm:$0xff]   ;;  %v4874_v19 = vld [vmem:[%s6035_s1 + $0xa0] sm:$0xff]   ;;  %v4878_v23 = vld [vmem:[%s6035_s1 + $0xa8] sm:$0xff]   ;;  %s231_s28 = sadd.s32 %s3974_s27, %s6060_s25  ;;  %p5904_p7 = scmp.lt.s32.totalorder %s3976_s8, 7 }
  0x18   : > { %4560 = vmatpush3.bf16.msra.mxu1 %v4862_v7  ;;  %4497 = vmatprep.subr.bf16.mxu0 %v4863_v8  ;;  %v4879_v24 = vld [vmem:[%s6035_s1 + $0x70] sm:$0xff]   ;;  %v4883_v28 = vld [vmem:[%s6035_s1 + $0x78] sm:$0xff]   ;;  %v322_v32 = vld [vmem:[%s5150_s5] sm:$0xf]  ;;  %s3975_s29 = sshll.u32 %s231_s28, 2  ;;  %s3977_s10 = sshll.u32 %s6058_s16, 3 }
  0x19   : > { %4561 = vmatprep.subr.bf16.mxu1 %v4864_v9  ;;  %v4880_v25 = vld [vmem:[%s6035_s1 + $0xf0] sm:$0xff]   ;;  %v4884_v29 = vld [vmem:[%s6035_s1 + $0xf8] sm:$0xff]   ;;  %v323_v33 = vld [vmem:[%s5150_s5 + $0x4] sm:$0xf]  ;;  %v350_v35 = vshrl.u32 %v322_v32, 16  ;;  %v353_v36 = vshll.u32 %v322_v32, 16  ;;  %s5854_s7 = scalar_lea.vmem %s6037_s3, %s3975_s29 }
  0x1a   : > { %v4881_v26 = vld [vmem:[%s6035_s1 + $0x30] sm:$0xff]   ;;  %v4885_v30 = vld [vmem:[%s6035_s1 + $0x38] sm:$0xff]   ;;  %v324_v34 = vld [vmem:[%s5150_s5 + $0x8] sm:$0x1]  ;;  %v359_v37 = vshll.u32 %v323_v33, 16  ;;  %v363_v38 = vshrl.u32 %v323_v33, 16 }
  0x1b   : > { %4498 = vmatpush3.bf16.msra.mxu0 %v4865_v10  ;;  %v4882_v27 = vld [vmem:[%s6035_s1 + $0xb0] sm:$0xff]   ;;  %v4886_v31 = vld [vmem:[%s6035_s1 + $0xb8] sm:$0xff]   ;;  %v369_v39 = vshll.u32 %v324_v34, 16  ;;  %v352_v41 = vrot.slane %v350_v35, 4  ;;  %v355_v42 = vrot.slane %v353_v36, 5  ;;  %vm5164_vm4 = vmor %vm629_vm0, %vm630_vm1  ;;  %vm3758_vm1 = vcmask 1044484  }
  0x1c   : > { %4562 = vmatpush3.bf16.msra.mxu1 %v4866_v11  ;;  %4499 = vmatprep.subr.bf16.mxu0 %v4867_v12  ;;  %v4887_v40 = vld [vmem:[%s5150_s5 + $0xc] sm:$0xff]   ;;  %v361_v43 = vrot.slane %v359_v37, 5  ;;  %v365_v44 = vrot.slane %v363_v38, 4  ;;  %v581_v48 = vld [vmem:[%s5150_s5] sm:$0xe]  ;;  %vm5173_vm5 = vmor %vm346_vm2, %vm347_vm3  ;;  %vm3761_vm3 = vcmask 1045509  }
  0x1d   : > { %4563 = vmatprep.subr.bf16.mxu1 %v4868_v13  ;;  %v371_v45 = vrot.slane %v369_v39, 5  ;;  %2464 = vmatprep.mubr.bf16.mxu1 %v4887_v40  ;;  %v356_v47 = vor.u32 %v355_v42, %v352_v41  ;;  %v582_v49 = vld [vmem:[%s5150_s5 + $0x4] sm:$0xf]  ;;  %v583_v50 = vld [vmem:[%s5150_s5 + $0x8] sm:$0x1]  ;;  %v3998_v53 = vrot.slane %v581_v48, 9 }
  0x1e   : > { %v366_v52 = vor.u32 %v365_v44, %v361_v43  ;;  %v634_v54 = vrot.slane %v582_v49, 5  ;;  %v637_v55 = vrot.slane %v583_v50, 5  ;;  %v4889_v56 = vld [vmem:[%s6035_s1 + $0x140] sm:$0xff]   ;;  %v325_v4 = vld [vmem:[%s5150_s5 + $0xc] sm:$0xf]  ;;  %s6062_s8 = smov (!%p5904_p7, %s3976_s8), 7 }
  0x1f   : > { %4500 = vmatpush3.bf16.msra.mxu0 %v4869_v14  ;;  %v357_v57 = vrot.slane %v356_v47, 4  ;;  %v4890_v58 = vld [vmem:[%s6035_s1 + $0x1c0] sm:$0xff]   ;;  %v326_v7 = vld [vmem:[%s5150_s5 + $0x10] sm:$0xf]  ;;  %v327_v8 = vld [vmem:[%s5150_s5 + $0x14] sm:$0x1]  ;;  %s241_s15 = sadd.s32 %s3977_s10, %s6062_s8 }
  0x20   : > { %4564 = vmatpush3.bf16.msra.mxu1 %v4870_v15  ;;  %4501 = vmatprep.subr.bf16.mxu0 %v4871_v16  ;;  %v367_v59 = vrot.slane %v366_v52, 4  ;;  %v4888_v60 = vld [vmem:[%s5150_s5] sm:$0xff]   ;;  %v635_v61 = vsel %vm5164_vm4, %v3998_v53, %v634_v54  ;;  %v636_v62 = vrot.slane %v634_v54, 4  ;;  %v374_v9 = vshrl.u32 %v325_v4, 16  ;;  %v4893_v14 = vld [vmem:[%s5150_s5 + $0x18] sm:$0xff]   ;;  %v4894_v32 = vld [vmem:[%s5150_s5 + $0xc] sm:$0xff]  }
  0x21   : > { %4565 = vmatprep.subr.bf16.mxu1 %v4872_v17  ;;  %v362_v63 = vsel %vm5173_vm5, %v357_v57, %v361_v43  ;;  %v4891_v0 = vld [vmem:[%s6035_s1 + $0x100] sm:$0xff]   ;;  %v377_v10 = vshll.u32 %v325_v4, 16  ;;  %v383_v11 = vshll.u32 %v326_v7, 16  ;;  %v387_v12 = vshrl.u32 %v326_v7, 16  ;;  %v4897_v36 = vld [vmem:[%s6035_s1 + $0x108] sm:$0xff]   ;;  %v4902_v4 = vld [vmem:[%s6035_s1 + $0x1d0] sm:$0xff]  }
  0x22   : > { %v372_v1 = vsel %vm5173_vm5, %v367_v59, %v371_v45  ;;  %v638_v2 = vsel %vm5164_vm4, %v636_v62, %v637_v55  ;;  %v4892_v3 = vld [vmem:[%s6035_s1 + $0x180] sm:$0xff]   ;;  %v393_v13 = vshll.u32 %v327_v8, 16  ;;  %v376_v15 = vrot.slane %v374_v9, 4  ;;  %v4898_v39 = vld [vmem:[%s6035_s1 + $0x188] sm:$0xff]   ;;  %v328_v40 = vld [vmem:[%s5150_s5 + $0x18] sm:$0xf] }
  0x23   : > { %4502 = vmatpush3.bf16.msra.mxu0 %v4873_v18  ;;  %v3990_v5 = vcombine.low %v362_v63, %v372_v1  ;;  %v4006_v6 = vcombine.low %v635_v61, %v638_v2  ;;  %v379_v16 = vrot.slane %v377_v10, 5  ;;  %v385_v17 = vrot.slane %v383_v11, 5  ;;  %v329_v43 = vld [vmem:[%s5150_s5 + $0x1c] sm:$0xf]  ;;  %v330_v44 = vld [vmem:[%s5150_s5 + $0x20] sm:$0x1] }
  0x24   : > { %4566 = vmatpush3.bf16.msra.mxu1 %v4874_v19  ;;  %4503 = vmatprep.subr.bf16.mxu0 %v4875_v20  ;;  %v389_v18 = vrot.slane %v387_v12, 4  ;;  %v395_v19 = vrot.slane %v393_v13, 5  ;;  %v398_v45 = vshrl.u32 %v328_v40, 16  ;;  %v401_v47 = vshll.u32 %v328_v40, 16  ;;  %v4899_v52 = vld [vmem:[%s5150_s5 + $0x24] sm:$0xff]   ;;  %v4901_v2 = vld [vmem:[%s6035_s1 + $0x150] sm:$0xff]  }
  0x25   : > { %4567 = vmatprep.subr.bf16.mxu1 %v4876_v21  ;;  %2367 = vmatprep.mubr.bf16.mxu0 %v3990_v5  ;;  %v380_v20 = vor.u32 %v379_v16, %v376_v15  ;;  %v584_v21 = vld [vmem:[%s5150_s5 + $0xc] sm:$0xe]  ;;  %v407_v48 = vshll.u32 %v329_v43, 16  ;;  %v411_v49 = vshrl.u32 %v329_v43, 16  ;;  %v417_v50 = vshll.u32 %v330_v44, 16  ;;  %v4903_v10 = vld [vmem:[%s6035_s1 + $0x110] sm:$0xff]  }
  0x26   : > { %v400_v53 = vrot.slane %v398_v45, 4  ;;  %v403_v54 = vrot.slane %v401_v47, 5  ;;  %v587_v59 = vld [vmem:[%s5150_s5 + $0x18] sm:$0xe]  ;;  %v589_v61 = vld [vmem:[%s5150_s5 + $0x20] sm:$0x1] }
  0x27   : > { %4504 = vmatpush3.bf16.msra.mxu0 %v4877_v22  ;;  %v585_v22 = vld [vmem:[%s5150_s5 + $0x10] sm:$0xf]  ;;  %v409_v55 = vrot.slane %v407_v48, 5  ;;  %v419_v57 = vrot.slane %v417_v50, 5  ;;  %v4000_v63 = vrot.slane %v587_v59, 9  ;;  %v651_v1 = vrot.slane %v589_v61, 5 }
  0x28   : > { %4568 = vmatpush3.bf16.msra.mxu1 %v4878_v23  ;;  %4505 = vmatprep.subr.bf16.mxu0 %v4879_v24  ;;  %v586_v23 = vld [vmem:[%s5150_s5 + $0x14] sm:$0x1]  ;;  %v390_v24 = vor.u32 %v389_v18, %v385_v17  ;;  %v333_v18 = vld [vmem:[%s5150_s5 + $0x2c] sm:$0x1]  ;;  %v4908_v40 = vld [vmem:[%s6035_s1 + $0x1d8] sm:$0xff]   ;;  %s3978_s16 = sshll.u32 %s241_s15, 2 }
  0x29   : > { %4569 = vmatprep.subr.bf16.mxu1 %v4880_v25  ;;  %v3999_v25 = vrot.slane %v584_v21, 9  ;;  %v4904_v13 = vld [vmem:[%s6035_s1 + $0x190] sm:$0xff]   ;;  %v4909_v47 = vld [vmem:[%s6035_s1 + $0x118] sm:$0xff]   ;;  %v4190_v51 = vld [vmem:[%s5150_s5 + $0x68] sm:$0x1]  ;;  %s5931_s13 = scalar_lea.vmem %s6038_s4, %s3978_s16 }
  0x2a   : > { %v4910_v50 = vld [vmem:[%s6035_s1 + $0x198] sm:$0xff]  }
  0x2b   : > { %4506 = vmatpush3.bf16.msra.mxu0 %v4881_v26  ;;  %v641_v26 = vrot.slane %v585_v22, 5 }
  0x2c   : > { %4570 = vmatpush3.bf16.msra.mxu1 %v4882_v27  ;;  %4507 = vmatprep.subr.bf16.mxu0 %v4883_v28  ;;  %v644_v27 = vrot.slane %v586_v23, 5  ;;  %v4895_v28 = vld [vmem:[%s6035_s1 + $0x148] sm:$0xff]   ;;  %v441_v23 = vshll.u32 %v333_v18, 16 }
  0x2d   : > { %4571 = vmatprep.subr.bf16.mxu1 %v4884_v29  ;;  %v381_v29 = vrot.slane %v380_v20, 4  ;;  %v642_v33 = vsel %vm5164_vm4, %v3999_v25, %v641_v26  ;;  %v643_v34 = vrot.slane %v641_v26, 4 }
  0x2f   : > { %4508 = vmatpush3.bf16.msra.mxu0 %v4885_v30  ;;  %v4896_v30 = vld [vmem:[%s6035_s1 + $0x1c8] sm:$0xff]   ;;  %v386_v35 = vsel %vm5173_vm5, %v381_v29, %v385_v17  ;;  %v645_v38 = vsel %vm5164_vm4, %v643_v34, %v644_v27  ;;  %v443_v29 = vrot.slane %v441_v23, 5  ;;  %v4916_v23 = vld [vmem:[%s6035_s1 + $0x1a0] sm:$0xff]  }
  0x30   : > { %4572 = vmatpush3.bf16.msra.mxu1 %v4886_v31  ;;  %4621 = vmatprep.subr.bf16.mxu0 %v4889_v56  ;;  %v391_v31 = vrot.slane %v390_v24, 4  ;;  %v4007_v42 = vcombine.low %v642_v33, %v645_v38  ;;  %v413_v56 = vrot.slane %v411_v49, 4  ;;  %v332_v17 = vld [vmem:[%s5150_s5 + $0x28] sm:$0xf]  ;;  %v4905_v24 = vld [vmem:[%s5150_s5 + $0x30] sm:$0xff]   ;;  %v4907_v38 = vld [vmem:[%s6035_s1 + $0x158] sm:$0xff]  }
  0x31   : > { %4685 = vmatprep.subr.bf16.mxu1 %v4890_v58  ;;  %v404_v58 = vor.u32 %v403_v54, %v400_v53  ;;  %v431_v21 = vshll.u32 %v332_v17, 16  ;;  %v435_v22 = vshrl.u32 %v332_v17, 16  ;;  %v592_v33 = vld [vmem:[%s5150_s5 + $0x2c] sm:$0x1] }
  0x32   : > { %2368 = vmatmul.mubr.bf16.vlgmr.msra.gmra.mrb[0].mxu0 %v4888_v60  ;;  %v396_v37 = vsel %vm5173_vm5, %v391_v31, %v395_v19  ;;  %v588_v60 = vld [vmem:[%s5150_s5 + $0x1c] sm:$0xf]  ;;  %v414_v62 = vor.u32 %v413_v56, %v409_v55  ;;  %v590_v31 = vld [vmem:[%s5150_s5 + $0x24] sm:$0xe]  ;;  %v336_v56 = vld [vmem:[%s5150_s5 + $0x38] sm:$0x1] }
  0x33   : > { %2465 = vmatmul.mubr.bf16.vlgmr.msra.gmra.mrb[0].mxu1 %v4006_v6  ;;  %4622 = vmatpush3.bf16.msra.mxu0 %v4891_v0  ;;  %v3991_v41 = vcombine.low %v386_v35, %v396_v37  ;;  %v648_v0 = vrot.slane %v588_v60, 5  ;;  %v4900_v6 = vld [vmem:[%s5150_s5 + $0x18] sm:$0xff]   ;;  %v433_v27 = vrot.slane %v431_v21, 5  ;;  %v4001_v35 = vrot.slane %v590_v31, 9 }
  0x34   : > { %4686 = vmatpush3.bf16.msra.mxu1 %v4892_v3  ;;  %2472 = vmatprep.mubr.bf16.mxu1 %v4893_v14  ;;  %v405_v3 = vrot.slane %v404_v58, 4  ;;  %v415_v5 = vrot.slane %v414_v62, 4  ;;  %v331_v14 = vld [vmem:[%s5150_s5 + $0x24] sm:$0xf]  ;;  %v658_v37 = vrot.slane %v592_v33, 5  ;;  %v465_v61 = vshll.u32 %v336_v56, 16 }
  0x35   : > { %4623 = vmatprep.subr.bf16.mxu0 %v4895_v28  ;;  %4687 = vmatprep.subr.bf16.mxu1 %v4896_v30  ;;  %v649_v7 = vsel %vm5164_vm4, %v4000_v63, %v648_v0  ;;  %v650_v8 = vrot.slane %v648_v0, 4  ;;  %v422_v19 = vshrl.u32 %v331_v14, 16  ;;  %v425_v20 = vshll.u32 %v331_v14, 16  ;;  %v4911_v62 = vld [vmem:[%s5150_s5 + $0x3c] sm:$0xff]  }
  0x36   : > { %2375 = vmatprep.mubr.bf16.mxu0 %v3991_v41  ;;  %v410_v9 = vsel %vm5173_vm5, %v405_v3, %v409_v55  ;;  %v420_v11 = vsel %vm5173_vm5, %v415_v5, %v419_v57  ;;  %v437_v28 = vrot.slane %v435_v22, 4  ;;  %v335_v55 = vld [vmem:[%s5150_s5 + $0x34] sm:$0xf]  ;;  %v467_v3 = vrot.slane %v465_v61, 5  ;;  %v593_v5 = vld [vmem:[%s5150_s5 + $0x30] sm:$0xe] }
  0x37   : > { %4624 = vmatpush3.bf16.msra.mxu0 %v4897_v36  ;;  %v652_v12 = vsel %vm5164_vm4, %v650_v8, %v651_v1  ;;  %v3992_v15 = vcombine.low %v410_v9, %v420_v11  ;;  %v424_v25 = vrot.slane %v422_v19, 4  ;;  %v427_v26 = vrot.slane %v425_v20, 5  ;;  %v4914_v14 = vld [vmem:[%s6035_s1 + $0x1e0] sm:$0xff]   ;;  %v4922_v61 = vld [vmem:[%s6035_s1 + $0x1a8] sm:$0xff]  }
  0x38   : > { %4688 = vmatpush3.bf16.msra.mxu1 %v4898_v39  ;;  %4625 = vmatprep.subr.bf16.mxu0 %v4901_v2  ;;  %v4008_v16 = vcombine.low %v649_v7, %v652_v12  ;;  %v438_v34 = vor.u32 %v437_v28, %v433_v27  ;;  %v455_v59 = vshll.u32 %v335_v55, 16  ;;  %v459_v60 = vshrl.u32 %v335_v55, 16  ;;  %v595_v7 = vld [vmem:[%s5150_s5 + $0x38] sm:$0x1]  ;;  %v4913_v12 = vld [vmem:[%s6035_s1 + $0x160] sm:$0xff]  }
  0x39   : > { %4689 = vmatprep.subr.bf16.mxu1 %v4902_v4  ;;  %v428_v30 = vor.u32 %v427_v26, %v424_v25  ;;  %v4002_v9 = vrot.slane %v593_v5, 9  ;;  %v665_v11 = vrot.slane %v595_v7, 5  ;;  %v4915_v20 = vld [vmem:[%s6035_s1 + $0x120] sm:$0xff]  }
  0x3a   : > { %2376 = vmatmul.mubr.bf16.gmra.mrb[4].mxu0 %v4894_v32  ;;  %v591_v32 = vld [vmem:[%s5150_s5 + $0x28] sm:$0xf]  ;;  %v439_v41 = vrot.slane %v438_v34, 4  ;;  %v457_v1 = vrot.slane %v455_v59, 5  ;;  %v461_v2 = vrot.slane %v459_v60, 4 }
  0x3b   : > { %2473 = vmatmul.mubr.bf16.gmra.mrb[4].mxu1 %v4007_v42  ;;  %4626 = vmatpush3.bf16.msra.mxu0 %v4903_v10  ;;  %v655_v36 = vrot.slane %v591_v32, 5  ;;  %v429_v39 = vrot.slane %v428_v30, 4  ;;  %v4906_v42 = vld [vmem:[%s5150_s5 + $0x24] sm:$0xff]  }
  0x3c   : > { %2480 = vmatprep.mubr.bf16.mxu1 %v4899_v52  ;;  %4690 = vmatpush3.bf16.msra.mxu1 %v4904_v13  ;;  %v444_v48 = vsel %vm5173_vm5, %v439_v41, %v443_v29  ;;  %v334_v52 = vld [vmem:[%s5150_s5 + $0x30] sm:$0xf]  ;;  %v462_v8 = vor.u32 %v461_v2, %v457_v1  ;;  %v339_v28 = vld [vmem:[%s5150_s5 + $0x44] sm:$0x1]  ;;  %v4917_v34 = vld [vmem:[%s5150_s5 + $0x48] sm:$0xff]  }
  0x3d   : > { %2383 = vmatprep.mubr.bf16.mxu0 %v3992_v15  ;;  %v656_v43 = vsel %vm5164_vm4, %v4001_v35, %v655_v36  ;;  %v657_v44 = vrot.slane %v655_v36, 4  ;;  %4627 = vmatprep.subr.bf16.mxu0 %v4907_v38  ;;  %v434_v45 = vsel %vm5173_vm5, %v429_v39, %v433_v27  ;;  %v446_v57 = vshrl.u32 %v334_v52, 16  ;;  %v338_v27 = vld [vmem:[%s5150_s5 + $0x40] sm:$0xf]  ;;  %v596_v41 = vld [vmem:[%s5150_s5 + $0x3c] sm:$0xe] }
  0x3e   : > { %4691 = vmatprep.subr.bf16.mxu1 %v4908_v40  ;;  %v3993_v53 = vcombine.low %v434_v45, %v444_v48  ;;  %v449_v58 = vshll.u32 %v334_v52, 16  ;;  %v463_v15 = vrot.slane %v462_v8, 4  ;;  %v479_v31 = vshll.u32 %v338_v27, 16  ;;  %v4920_v52 = vld [vmem:[%s6035_s1 + $0x1e8] sm:$0xff]   ;;  %v342_v2 = vld [vmem:[%s5150_s5 + $0x50] sm:$0x1] }
  0x3f   : > { %v659_v49 = vsel %vm5164_vm4, %v657_v44, %v658_v37  ;;  %4628 = vmatpush3.bf16.msra.mxu0 %v4909_v47  ;;  %v448_v63 = vrot.slane %v446_v57, 4  ;;  %v483_v32 = vshrl.u32 %v338_v27, 16  ;;  %v489_v33 = vshll.u32 %v339_v28, 16  ;;  %v4923_v8 = vld [vmem:[%s5150_s5 + $0x54] sm:$0xff]  }
  0x40   : > { %v4009_v54 = vcombine.low %v656_v43, %v659_v49  ;;  %4692 = vmatpush3.bf16.msra.mxu1 %v4910_v50  ;;  %v451_v0 = vrot.slane %v449_v58, 5  ;;  %4629 = vmatprep.subr.bf16.mxu0 %v4913_v12  ;;  %v468_v21 = vsel %vm5173_vm5, %v463_v15, %v467_v3  ;;  %v481_v37 = vrot.slane %v479_v31, 5  ;;  %v598_v43 = vld [vmem:[%s5150_s5 + $0x44] sm:$0x1]  ;;  %v4919_v49 = vld [vmem:[%s6035_s1 + $0x168] sm:$0xff]  }
  0x41   : > { %4693 = vmatprep.subr.bf16.mxu1 %v4914_v14  ;;  %v485_v38 = vrot.slane %v483_v32, 4  ;;  %v491_v39 = vrot.slane %v489_v33, 5  ;;  %v4003_v45 = vrot.slane %v596_v41, 9  ;;  %v672_v48 = vrot.slane %v598_v43, 5  ;;  %v4921_v58 = vld [vmem:[%s6035_s1 + $0x128] sm:$0xff]   ;;  %v4928_v33 = vld [vmem:[%s6035_s1 + $0x1b0] sm:$0xff]  }
  0x42   : > { %2384 = vmatmul.mubr.bf16.gmra.mrb[8].mxu0 %v4900_v6  ;;  %v452_v4 = vor.u32 %v451_v0, %v448_v63  ;;  %v594_v6 = vld [vmem:[%s5150_s5 + $0x34] sm:$0xf]  ;;  %v513_v7 = vshll.u32 %v342_v2, 16  ;;  %v599_v15 = vld [vmem:[%s5150_s5 + $0x48] sm:$0xe] }
  0x43   : > { %2481 = vmatmul.mubr.bf16.gmra.mrb[8].mxu1 %v4008_v16  ;;  %2391 = vmatprep.mubr.bf16.mxu0 %v3993_v53  ;;  %v662_v10 = vrot.slane %v594_v6, 5  ;;  %v4912_v16 = vld [vmem:[%s5150_s5 + $0x30] sm:$0xff]   ;;  %v486_v44 = vor.u32 %v485_v38, %v481_v37  ;;  %v345_v38 = vld [vmem:[%s5150_s5 + $0x5c] sm:$0x1] }
  0x44   : > { %2488 = vmatprep.mubr.bf16.mxu1 %v4905_v24  ;;  %v453_v13 = vrot.slane %v452_v4, 4  ;;  %v337_v24 = vld [vmem:[%s5150_s5 + $0x3c] sm:$0xf]  ;;  %4630 = vmatpush3.bf16.msra.mxu0 %v4915_v20  ;;  %v537_v43 = vshll.u32 %v345_v38, 16 }
  0x45   : > { %v663_v17 = vsel %vm5164_vm4, %v4002_v9, %v662_v10  ;;  %v664_v18 = vrot.slane %v662_v10, 4  ;;  %v470_v29 = vshrl.u32 %v337_v24, 16  ;;  %v473_v30 = vshll.u32 %v337_v24, 16  ;;  %4694 = vmatpush3.bf16.msra.mxu1 %v4916_v23  ;;  %4631 = vmatprep.subr.bf16.mxu0 %v4919_v49  ;;  %v4926_v24 = vld [vmem:[%s6035_s1 + $0x1f0] sm:$0xff]  }
  0x46   : > { %v458_v19 = vsel %vm5173_vm5, %v453_v13, %v457_v1  ;;  %v487_v53 = vrot.slane %v486_v44, 4  ;;  %4695 = vmatprep.subr.bf16.mxu1 %v4920_v52  ;;  %v341_v1 = vld [vmem:[%s5150_s5 + $0x4c] sm:$0xf]  ;;  %v515_v13 = vrot.slane %v513_v7, 5  ;;  %v4929_v44 = vld [vmem:[%s5150_s5 + $0x60] sm:$0xff]   ;;  %v4934_v7 = vld [vmem:[%s6035_s1 + $0x1b8] sm:$0xff]  }
  0x47   : > { %v666_v22 = vsel %vm5164_vm4, %v664_v18, %v665_v11  ;;  %v3994_v25 = vcombine.low %v458_v19, %v468_v21  ;;  %v472_v35 = vrot.slane %v470_v29, 4  ;;  %v475_v36 = vrot.slane %v473_v30, 5  ;;  %v4927_v30 = vld [vmem:[%s6035_s1 + $0x130] sm:$0xff]  }
  0x48   : > { %v4010_v26 = vcombine.low %v663_v17, %v666_v22  ;;  %v492_v59 = vsel %vm5173_vm5, %v487_v53, %v491_v39  ;;  %4632 = vmatpush3.bf16.msra.mxu0 %v4921_v58  ;;  %v503_v5 = vshll.u32 %v341_v1, 16  ;;  %v507_v6 = vshrl.u32 %v341_v1, 16  ;;  %v601_v17 = vld [vmem:[%s5150_s5 + $0x50] sm:$0x1]  ;;  %v602_v53 = vld [vmem:[%s5150_s5 + $0x54] sm:$0xe] }
  0x49   : > { %v476_v40 = vor.u32 %v475_v36, %v472_v35  ;;  %4696 = vmatpush3.bf16.msra.mxu1 %v4922_v61  ;;  %v4004_v19 = vrot.slane %v599_v15, 9  ;;  %v679_v21 = vrot.slane %v601_v17, 5  ;;  %v4925_v22 = vld [vmem:[%s6035_s1 + $0x170] sm:$0xff]   ;;  %v4139_v17 = vld [vmem:[%s5150_s5 + $0x1c] sm:$0xf] }
  0x4a   : > { %2392 = vmatmul.mubr.bf16.gmra.mrb[12].mxu0 %v4906_v42  ;;  %v597_v42 = vld [vmem:[%s5150_s5 + $0x40] sm:$0xf]  ;;  %v505_v11 = vrot.slane %v503_v5, 5  ;;  %v509_v12 = vrot.slane %v507_v6, 4  ;;  %4633 = vmatprep.subr.bf16.mxu0 %v4925_v22  ;;  %v1318_v22 = vshrl.u32 %v4139_v17, 16 }
  0x4b   : > { %2489 = vmatmul.mubr.bf16.gmra.mrb[12].mxu1 %v4009_v54  ;;  %2399 = vmatprep.mubr.bf16.mxu0 %v3994_v25  ;;  %v669_v47 = vrot.slane %v597_v42, 5  ;;  %v477_v50 = vrot.slane %v476_v40, 4  ;;  %v4918_v54 = vld [vmem:[%s5150_s5 + $0x3c] sm:$0xff]  }
  0x4c   : > { %2496 = vmatprep.mubr.bf16.mxu1 %v4911_v62  ;;  %v340_v62 = vld [vmem:[%s5150_s5 + $0x48] sm:$0xf]  ;;  %v510_v18 = vor.u32 %v509_v12, %v505_v11  ;;  %4697 = vmatprep.subr.bf16.mxu1 %v4926_v24  ;;  %v4074_v12 = vld [vmem:[%s5150_s5 + $0x14] sm:$0x1] }
  0x4d   : > { %v670_v55 = vsel %vm5164_vm4, %v4003_v45, %v669_v47  ;;  %v671_v56 = vrot.slane %v669_v47, 4  ;;  %v482_v57 = vsel %vm5173_vm5, %v477_v50, %v481_v37  ;;  %v494_v3 = vshrl.u32 %v340_v62, 16  ;;  %4634 = vmatpush3.bf16.msra.mxu0 %v4927_v30  ;;  %v344_v37 = vld [vmem:[%s5150_s5 + $0x58] sm:$0xf]  ;;  %4698 = vmatpush3.bf16.msra.mxu1 %v4928_v33 }
  0x4e   : > { %v3995_v63 = vcombine.low %v482_v57, %v492_v59  ;;  %v497_v4 = vshll.u32 %v340_v62, 16  ;;  %v511_v25 = vrot.slane %v510_v18, 4  ;;  %v527_v41 = vshll.u32 %v344_v37, 16  ;;  %v4932_v62 = vld [vmem:[%s6035_s1 + $0x1f8] sm:$0xff]   ;;  %v4140_v18 = vld [vmem:[%s5150_s5 + $0x20] sm:$0x1] }
  0x4f   : > { %v673_v60 = vsel %vm5164_vm4, %v671_v56, %v672_v48  ;;  %v496_v9 = vrot.slane %v494_v3, 4  ;;  %v531_v42 = vshrl.u32 %v344_v37, 16  ;;  %v539_v50 = vrot.slane %v537_v43, 5  ;;  %4699 = vmatprep.subr.bf16.mxu1 %v4932_v62  ;;  %v5410_v37 = vld [vmem:[%s6035_s1 + $0x200] sm:$0xff]  }
  0x50   : > { %v4011_v0 = vcombine.low %v670_v55, %v673_v60  ;;  %v499_v10 = vrot.slane %v497_v4, 5  ;;  %v516_v31 = vsel %vm5173_vm5, %v511_v25, %v515_v13  ;;  %v529_v48 = vrot.slane %v527_v41, 5  ;;  %v604_v55 = vld [vmem:[%s5150_s5 + $0x5c] sm:$0x1]  ;;  %v4141_v62 = vld [vmem:[%s5150_s5 + $0x24] sm:$0xf] }
  0x51   : > { %v533_v49 = vrot.slane %v531_v42, 4  ;;  %v4005_v57 = vrot.slane %v602_v53, 9  ;;  %v686_v59 = vrot.slane %v604_v55, 5  ;;  %v4931_v60 = vld [vmem:[%s6035_s1 + $0x178] sm:$0xff]   ;;  %4700 = vmatpush3.bf16.msra.mxu1 %v4934_v7  ;;  %v1113_v15 = vrot.slane %v4074_v12, 5 }
  0x52   : > { %2400 = vmatmul.mubr.bf16.gmra.mrb[16].mxu0 %v4912_v16  ;;  %v500_v14 = vor.u32 %v499_v10, %v496_v9  ;;  %v600_v16 = vld [vmem:[%s5150_s5 + $0x4c] sm:$0xf]  ;;  %4635 = vmatprep.subr.bf16.mxu0 %v4931_v60  ;;  %v4933_v4 = vld [vmem:[%s6035_s1 + $0x138] sm:$0xff]   ;;  %v1324_v25 = vshll.u32 %v4140_v18, 16 }
  0x53   : > { %2497 = vmatmul.mubr.bf16.gmra.mrb[16].mxu1 %v4010_v26  ;;  %2407 = vmatprep.mubr.bf16.mxu0 %v3995_v63  ;;  %v676_v20 = vrot.slane %v600_v16, 5  ;;  %v4924_v26 = vld [vmem:[%s5150_s5 + $0x48] sm:$0xff]   ;;  %v534_v56 = vor.u32 %v533_v49, %v529_v48  ;;  %v4138_v16 = vld [vmem:[%s5150_s5 + $0x18] sm:$0xf] }
  0x54   : > { %2504 = vmatprep.mubr.bf16.mxu1 %v4917_v34  ;;  %v501_v23 = vrot.slane %v500_v14, 4  ;;  %v343_v34 = vld [vmem:[%s5150_s5 + $0x54] sm:$0xf]  ;;  %4636 = vmatpush3.bf16.msra.mxu0 %v4933_v4  ;;  %v4143_v4 = vld [vmem:[%s5150_s5 + $0x2c] sm:$0x1] }
  0x55   : > { %v677_v27 = vsel %vm5164_vm4, %v4004_v19, %v676_v20  ;;  %v678_v28 = vrot.slane %v676_v20, 4  ;;  %v518_v39 = vshrl.u32 %v343_v34, 16  ;;  %v521_v40 = vshll.u32 %v343_v34, 16  ;;  %4765 = vmatprep.subr.bf16.mxu0 %v5410_v37  ;;  %4797 = vmatprep.subr.bf16.mxu1 %v5410_v37 }
  0x56   : > { %v506_v29 = vsel %vm5173_vm5, %v501_v23, %v505_v11  ;;  %v535_v63 = vrot.slane %v534_v56, 4  ;;  %v4073_v11 = vld [vmem:[%s5150_s5 + $0x10] sm:$0xf]  ;;  %v1305_v19 = vshrl.u32 %v4138_v16, 16  ;;  %v1308_v20 = vshll.u32 %v4138_v16, 16 }
  0x57   : > { %v680_v32 = vsel %vm5164_vm4, %v678_v28, %v679_v21  ;;  %v3996_v35 = vcombine.low %v506_v29, %v516_v31  ;;  %v520_v45 = vrot.slane %v518_v39, 4  ;;  %v523_v47 = vrot.slane %v521_v40, 5  ;;  %v4076_v56 = vld [vmem:[%s5150_s5 + $0x1c] sm:$0xf]  ;;  %v4045_v16 = vld [vmem:[%s5150_s5 + $0x20] sm:$0x1] }
  0x58   : > { %v4012_v36 = vcombine.low %v677_v27, %v680_v32  ;;  %v540_v5 = vsel %vm5173_vm5, %v535_v63, %v539_v50  ;;  %v1110_v14 = vrot.slane %v4073_v11, 5  ;;  %v1314_v21 = vshll.u32 %v4139_v17, 16  ;;  %v4041_v27 = vld [vmem:[%s5150_s5 + $0x10] sm:$0xf]  ;;  %v4042_v32 = vld [vmem:[%s5150_s5 + $0x14] sm:$0x1] }
  0x59   : > { %v524_v52 = vor.u32 %v523_v47, %v520_v45  ;;  %v1307_v28 = vrot.slane %v1305_v19, 4  ;;  %v1310_v29 = vrot.slane %v1308_v20, 5  ;;  %v1320_v31 = vrot.slane %v1318_v22, 4  ;;  %v4935_v50 = vld [vmem:[%s5150_s5 + $0x18] sm:$0xff]   ;;  %v4142_v63 = vld [vmem:[%s5150_s5 + $0x28] sm:$0xf] }
  0x5a   : > { %2408 = vmatmul.mubr.bf16.gmra.mrb[20].mxu0 %v4918_v54  ;;  %v603_v54 = vld [vmem:[%s5150_s5 + $0x58] sm:$0xf]  ;;  %v1112_v24 = vrot.slane %v1110_v14, 4  ;;  %v1316_v30 = vrot.slane %v1314_v21, 5  ;;  %v1326_v34 = vrot.slane %v1324_v25, 5  ;;  %v838_v41 = vshll.u32 %v4041_v27, 16 }
  0x5b   : > { %2505 = vmatmul.mubr.bf16.gmra.mrb[20].mxu1 %v4011_v0  ;;  %2415 = vmatprep.mubr.bf16.mxu0 %v3996_v35  ;;  %v683_v58 = vrot.slane %v603_v54, 5  ;;  %v525_v61 = vrot.slane %v524_v52, 4  ;;  %v4930_v0 = vld [vmem:[%s5150_s5 + $0x54] sm:$0xff]   ;;  %v1311_v39 = vor.u32 %v1310_v29, %v1307_v28  ;;  %v848_v45 = vshll.u32 %v4042_v32, 16  ;;  %v5432_v11 = vld [vmem:[%s6035_s1 + $0x208] sm:$0xff]  }
  0x5c   : > { %2512 = vmatprep.mubr.bf16.mxu1 %v4923_v8  ;;  %v4072_v8 = vld [vmem:[%s5150_s5 + $0xc] sm:$0xe]  ;;  %v1114_v33 = vsel %vm5164_vm4, %v1112_v24, %v1113_v15  ;;  %v1321_v40 = vor.u32 %v1320_v31, %v1316_v30  ;;  %v840_v49 = vrot.slane %v838_v41, 5  ;;  %v4075_v52 = vld [vmem:[%s5150_s5 + $0x18] sm:$0xe]  ;;  %v1342_v15 = vshrl.u32 %v4142_v63, 16 }
  0x5d   : > { %v684_v1 = vsel %vm5164_vm4, %v4005_v57, %v683_v58  ;;  %v685_v2 = vrot.slane %v683_v58, 4  ;;  %v530_v3 = vsel %vm5173_vm5, %v525_v61, %v529_v48  ;;  %v4096_v13 = vrot.slane %v4072_v8, 9  ;;  %v4077_v57 = vld [vmem:[%s5150_s5 + $0x20] sm:$0x1]  ;;  %v4078_v29 = vld [vmem:[%s5150_s5 + $0x24] sm:$0xe] }
  0x5e   : > { %v3997_v9 = vcombine.low %v530_v3, %v540_v5  ;;  %v1312_v47 = vrot.slane %v1311_v39, 4  ;;  %v1322_v48 = vrot.slane %v1321_v40, 4  ;;  %v850_v55 = vrot.slane %v848_v45, 5  ;;  %v4043_v5 = vld [vmem:[%s5150_s5 + $0x18] sm:$0xf] }
  0x5f   : > { %v687_v6 = vsel %vm5164_vm4, %v685_v2, %v686_v59  ;;  %v1111_v23 = vsel %vm5164_vm4, %v4096_v13, %v1110_v14  ;;  %v4097_v60 = vrot.slane %v4075_v52, 9  ;;  %v1117_v61 = vrot.slane %v4076_v56, 5  ;;  %v4080_v40 = vld [vmem:[%s5150_s5 + $0x2c] sm:$0x1]  ;;  %v4145_v52 = vld [vmem:[%s5150_s5 + $0x34] sm:$0xf] }
  0x60   : > { %v4013_v10 = vcombine.low %v684_v1, %v687_v6  ;;  %v4104_v38 = vcombine.low %v1111_v23, %v1114_v33  ;;  %v1317_v58 = vsel %vm5173_vm5, %v1312_v47, %v1316_v30  ;;  %v1327_v59 = vsel %vm5173_vm5, %v1322_v48, %v1326_v34  ;;  %v4079_v34 = vld [vmem:[%s5150_s5 + $0x28] sm:$0xf]  ;;  %v4144_v47 = vld [vmem:[%s5150_s5 + $0x30] sm:$0xf] }
  0x61   : > { %v1120_v3 = vrot.slane %v4077_v57, 5  ;;  %v1118_v6 = vsel %vm5164_vm4, %v4097_v60, %v1117_v61  ;;  %v1119_v7 = vrot.slane %v1117_v61, 4  ;;  %v1329_v8 = vshrl.u32 %v4141_v62, 16  ;;  %v4937_v56 = vld [vmem:[%s5150_s5 + $0x24] sm:$0xff]   ;;  %v4146_v57 = vld [vmem:[%s5150_s5 + $0x38] sm:$0x1] }
  0x62   : > { %2416 = vmatmul.mubr.bf16.gmra.mrb[24].mxu0 %v4924_v26  ;;  %v4040_v26 = vld [vmem:[%s5150_s5 + $0xc] sm:$0xf]  ;;  %v1338_v14 = vshll.u32 %v4142_v63, 16  ;;  %v1348_v20 = vshll.u32 %v4143_v4, 16  ;;  %v1344_v24 = vrot.slane %v1342_v15, 4  ;;  %v853_v28 = vshrl.u32 %v4043_v5, 16 }
  0x63   : > { %2513 = vmatmul.mubr.bf16.gmra.mrb[24].mxu1 %v4012_v36  ;;  %2423 = vmatprep.mubr.bf16.mxu0 %v3997_v9  ;;  %v829_v35 = vshrl.u32 %v4040_v26, 16  ;;  %v832_v36 = vshll.u32 %v4040_v26, 16  ;;  %v1332_v9 = vshll.u32 %v4141_v62, 16  ;;  %v1121_v17 = vsel %vm5164_vm4, %v1119_v7, %v1120_v3  ;;  %v5484_v15 = vld [vmem:[%s6035_s1 + $0x220] sm:$0xff]  }
  0x64   : > { %2520 = vmatprep.mubr.bf16.mxu1 %v4929_v44  ;;  %v842_v44 = vshrl.u32 %v4041_v27, 16  ;;  %v1331_v18 = vrot.slane %v1329_v8, 4  ;;  %v4105_v22 = vcombine.low %v1118_v6, %v1121_v17  ;;  %v1340_v23 = vrot.slane %v1338_v14, 5  ;;  %v4048_v6 = vld [vmem:[%s5150_s5 + $0x2c] sm:$0x1] }
  0x65   : > { %v831_v42 = vrot.slane %v829_v35, 4  ;;  %v834_v43 = vrot.slane %v832_v36, 5  ;;  %v1334_v19 = vrot.slane %v1332_v9, 5  ;;  %v1350_v27 = vrot.slane %v1348_v20, 5  ;;  %v5448_v35 = vld [vmem:[%s6035_s1 + $0x210] sm:$0xff]  }
  0x66   : > { %v844_v54 = vrot.slane %v842_v44, 4  ;;  %v1345_v30 = vor.u32 %v1344_v24, %v1340_v23  ;;  %v856_v31 = vshll.u32 %v4043_v5, 16  ;;  %v872_v39 = vshll.u32 %v4045_v16, 16  ;;  %v4081_v20 = vld [vmem:[%s5150_s5 + $0x30] sm:$0xe] }
  0x67   : > { %v835_v53 = vor.u32 %v834_v43, %v831_v42  ;;  %v1335_v26 = vor.u32 %v1334_v19, %v1331_v18  ;;  %v4098_v41 = vrot.slane %v4078_v29, 9  ;;  %v1356_v63 = vshll.u32 %v4144_v47, 16 }
  0x68   : > { %v845_v2 = vor.u32 %v844_v54, %v840_v49  ;;  %v1346_v42 = vrot.slane %v1345_v30, 4  ;;  %v858_v43 = vrot.slane %v856_v31, 5  ;;  %v1362_v5 = vshll.u32 %v4145_v52, 16  ;;  %v4147_v31 = vld [vmem:[%s5150_s5 + $0x3c] sm:$0xf] }
  0x69   : > { %v836_v1 = vrot.slane %v835_v53, 4  ;;  %v1336_v36 = vrot.slane %v1335_v26, 4  ;;  %v1358_v8 = vrot.slane %v1356_v63, 5  ;;  %v1366_v9 = vshrl.u32 %v4145_v52, 16  ;;  %v4083_v26 = vld [vmem:[%s5150_s5 + $0x38] sm:$0x1] }
  0x6a   : > { %2424 = vmatmul.mubr.bf16.gmra.mrb[28].mxu0 %v4930_v0  ;;  %v4162_v0 = vcombine.low %v1317_v58, %v1327_v59  ;;  %v846_v13 = vrot.slane %v845_v2, 4  ;;  %v1351_v53 = vsel %vm5173_vm5, %v1346_v42, %v1350_v27  ;;  %v1353_v58 = vshrl.u32 %v4144_v47, 16  ;;  %v5466_v59 = vld [vmem:[%s6035_s1 + $0x218] sm:$0xff]   ;;  %v4946_v42 = vld [vmem:[%s6035_s1 + $0x228] sm:$0xff]   ;;  %v4148_v47 = vld [vmem:[%s5150_s5 + $0x40] sm:$0xf] }
  0x6b   : > { %2521 = vmatmul.mubr.bf16.gmra.mrb[28].mxu1 %v4013_v10  ;;  %2561 = vmatprep.mubr.bf16.mxu0 %v4104_v38  ;;  %v4044_v10 = vld [vmem:[%s5150_s5 + $0x1c] sm:$0xf]  ;;  %v841_v12 = vsel %vm5173_vm5, %v836_v1, %v840_v49  ;;  %v855_v38 = vrot.slane %v853_v28, 4  ;;  %v1341_v48 = vsel %vm5173_vm5, %v1336_v36, %v1340_v23  ;;  %v874_v49 = vrot.slane %v872_v39, 5  ;;  %v4047_v1 = vld [vmem:[%s5150_s5 + $0x28] sm:$0xf] }
  0x6c   : > { %2658 = vmatprep.mubr.bf16.mxu1 %v4162_v0  ;;  %v851_v21 = vsel %vm5173_vm5, %v846_v13, %v850_v55  ;;  %v862_v32 = vshll.u32 %v4044_v10, 16  ;;  %v866_v33 = vshrl.u32 %v4044_v10, 16  ;;  %v4163_v60 = vcombine.low %v1341_v48, %v1351_v53  ;;  %v4046_v0 = vld [vmem:[%s5150_s5 + $0x24] sm:$0xf] }
  0x6d   : > { %v4064_v25 = vcombine.low %v841_v12, %v851_v21  ;;  %v859_v54 = vor.u32 %v858_v43, %v855_v38  ;;  %v1355_v4 = vrot.slane %v1353_v58, 4  ;;  %v1372_v10 = vshll.u32 %v4146_v57, 16  ;;  %v4082_v21 = vld [vmem:[%s5150_s5 + $0x34] sm:$0xf]  ;;  %v4149_v48 = vld [vmem:[%s5150_s5 + $0x44] sm:$0x1] }
  0x6e   : > { %v864_v44 = vrot.slane %v862_v32, 5  ;;  %v868_v45 = vrot.slane %v866_v33, 4  ;;  %v1364_v14 = vrot.slane %v1362_v5, 5  ;;  %v1368_v18 = vrot.slane %v1366_v9, 4  ;;  %v4948_v5 = vld [vmem:[%s6035_s1 + $0x230] sm:$0xff]  }
  0x6f   : > { %v860_v2 = vrot.slane %v859_v54, 4  ;;  %v1359_v17 = vor.u32 %v1358_v8, %v1355_v4  ;;  %v1374_v19 = vrot.slane %v1372_v10, 5  ;;  %v880_v23 = vshll.u32 %v4046_v0, 16  ;;  %v4049_v54 = vld [vmem:[%s5150_s5 + $0x30] sm:$0xf] }
  0x70   : > { %v869_v55 = vor.u32 %v868_v45, %v864_v44  ;;  %v886_v24 = vshll.u32 %v4047_v1, 16  ;;  %v1369_v28 = vor.u32 %v1368_v18, %v1364_v14  ;;  %v896_v29 = vshll.u32 %v4048_v6, 16  ;;  %v4051_v4 = vld [vmem:[%s5150_s5 + $0x38] sm:$0x1]  ;;  %v4084_v10 = vld [vmem:[%s5150_s5 + $0x3c] sm:$0xe] }
  0x71   : > { %v865_v12 = vsel %vm5173_vm5, %v860_v2, %v864_v44  ;;  %v1360_v27 = vrot.slane %v1359_v17, 4  ;;  %v4099_v30 = vrot.slane %v4081_v20, 9  ;;  %v882_v33 = vrot.slane %v880_v23, 5  ;;  %v4086_v17 = vld [vmem:[%s5150_s5 + $0x44] sm:$0x1] }
  0x72   : > { %2562 = vmatmul.mubr.bf16.vlgmr.msra.gmra.mrb[32].mxu0 %v4064_v25  ;;  %v870_v3 = vrot.slane %v869_v55, 4  ;;  %v890_v25 = vshrl.u32 %v4047_v1, 16  ;;  %v1370_v38 = vrot.slane %v1369_v28, 4  ;;  %v898_v39 = vrot.slane %v896_v29, 5  ;;  %v4050_v55 = vld [vmem:[%s5150_s5 + $0x34] sm:$0xf] }
  0x73   : > { %2659 = vmatmul.mubr.bf16.vlgmr.msra.gmra.mrb[32].mxu1 %v4935_v50  ;;  %4766 = vmatpush3.bf16.msra.mxu0 %v5410_v37  ;;  %v1124_v50 = vrot.slane %v4079_v34, 5  ;;  %v888_v34 = vrot.slane %v886_v24, 5  ;;  %v1134_v45 = vrot.slane %v4083_v26, 5  ;;  %v1380_v53 = vshll.u32 %v4147_v31, 16 }
  0x74   : > { %4805 = vmatpush3.bf16.msra.mxu1 %v5410_v37  ;;  %2569 = vmatprep.mubr.bf16.mxu0 %v4105_v22  ;;  %v1127_v37 = vrot.slane %v4080_v40, 5  ;;  %v877_v22 = vshrl.u32 %v4046_v0, 16  ;;  %v892_v36 = vrot.slane %v890_v25, 4  ;;  %v4939_v40 = vld [vmem:[%s5150_s5 + $0x30] sm:$0xff]   ;;  %v1390_v63 = vshrl.u32 %v4148_v47, 16 }
  0x75   : > { %4798 = vmatprep.subr.bf16.mxu1 %v5432_v11  ;;  %4767 = vmatprep.subr.bf16.mxu0 %v5432_v11  ;;  %v1125_v61 = vsel %vm5164_vm4, %v4098_v41, %v1124_v50  ;;  %v1126_v62 = vrot.slane %v1124_v50, 4  ;;  %v1131_v41 = vrot.slane %v4082_v21, 5  ;;  %v1375_v50 = vsel %vm5173_vm5, %v1370_v38, %v1374_v19  ;;  %v4150_v21 = vld [vmem:[%s5150_s5 + $0x48] sm:$0xf] }
  0x76   : > { %2666 = vmatprep.mubr.bf16.mxu1 %v4163_v60  ;;  %v879_v32 = vrot.slane %v877_v22, 4  ;;  %v893_v44 = vor.u32 %v892_v36, %v888_v34  ;;  %v1392_v9 = vrot.slane %v1390_v63, 4  ;;  %v914_v19 = vshrl.u32 %v4050_v55, 16  ;;  %v4950_v22 = vld [vmem:[%s6035_s1 + $0x238] sm:$0xff]   ;;  %v4087_v63 = vld [vmem:[%s5150_s5 + $0x48] sm:$0xe] }
  0x77   : > { %4768 = vmatpush3.bf16.msra.mxu0 %v5432_v11  ;;  %v1128_v7 = vsel %vm5164_vm4, %v1126_v62, %v1127_v37  ;;  %v1132_v37 = vsel %vm5164_vm4, %v4099_v30, %v1131_v41  ;;  %v1133_v52 = vrot.slane %v1131_v41, 4  ;;  %v1386_v62 = vshll.u32 %v4148_v47, 16 }
  0x78   : > { %4806 = vmatpush3.bf16.msra.mxu1 %v5432_v11  ;;  %4769 = vmatprep.subr.bf16.mxu0 %v5448_v35  ;;  %v875_v11 = vsel %vm5173_vm5, %v870_v3, %v874_v49  ;;  %v4106_v13 = vcombine.low %v1125_v61, %v1128_v7  ;;  %v883_v43 = vor.u32 %v882_v33, %v879_v32  ;;  %v1377_v49 = vshrl.u32 %v4147_v31, 16  ;;  %v4941_v33 = vld [vmem:[%s5150_s5 + $0x3c] sm:$0xff]  }
  0x79   : > { %4799 = vmatprep.subr.bf16.mxu1 %v5448_v35  ;;  %v4065_v16 = vcombine.low %v865_v12, %v875_v11  ;;  %v894_v58 = vrot.slane %v893_v44, 4  ;;  %v1382_v61 = vrot.slane %v1380_v53, 5  ;;  %v1396_v3 = vshll.u32 %v4149_v48, 16  ;;  %v4085_v12 = vld [vmem:[%s5150_s5 + $0x40] sm:$0xf] }
  0x7a   : > { %v884_v57 = vrot.slane %v883_v43, 4  ;;  %v1379_v60 = vrot.slane %v1377_v49, 4  ;;  %v1388_v8 = vrot.slane %v1386_v62, 5  ;;  %v920_v20 = vshll.u32 %v4051_v4, 16  ;;  %v4052_v43 = vld [vmem:[%s5150_s5 + $0x3c] sm:$0xf] }
  0x7b   : > { %2667 = vmatmul.mubr.bf16.gmra.mrb[36].mxu1 %v4937_v56  ;;  %4770 = vmatpush3.bf16.msra.mxu0 %v5448_v35  ;;  %v899_v1 = vsel %vm5173_vm5, %v894_v58, %v898_v39  ;;  %v1398_v11 = vrot.slane %v1396_v3, 5  ;;  %v4100_v26 = vrot.slane %v4084_v10, 9  ;;  %v916_v30 = vrot.slane %v914_v19, 4  ;;  %v4088_v4 = vld [vmem:[%s5150_s5 + $0x4c] sm:$0xf] }
  0x7c   : > { %4807 = vmatpush3.bf16.msra.mxu1 %v5448_v35  ;;  %2570 = vmatmul.mubr.bf16.gmra.mrb[36].mxu0 %v4065_v16  ;;  %v1365_v35 = vsel %vm5173_vm5, %v1360_v27, %v1364_v14  ;;  %v889_v0 = vsel %vm5173_vm5, %v884_v57, %v888_v34  ;;  %v1383_v7 = vor.u32 %v1382_v61, %v1379_v60  ;;  %v904_v14 = vshll.u32 %v4049_v54, 16  ;;  %v4151_v27 = vld [vmem:[%s5150_s5 + $0x4c] sm:$0xf]  ;;  %v4053_v57 = vld [vmem:[%s5150_s5 + $0x40] sm:$0xf] }
  0x7d   : > { %4800 = vmatprep.subr.bf16.mxu1 %v5466_v59  ;;  %4771 = vmatprep.subr.bf16.mxu0 %v5466_v59  ;;  %v4164_v56 = vcombine.low %v1365_v35, %v1375_v50  ;;  %v4066_v6 = vcombine.low %v889_v0, %v899_v1  ;;  %v910_v16 = vshll.u32 %v4050_v55, 16  ;;  %v1393_v18 = vor.u32 %v1392_v9, %v1388_v8  ;;  %v4152_v35 = vld [vmem:[%s5150_s5 + $0x50] sm:$0x1]  ;;  %v4054_v61 = vld [vmem:[%s5150_s5 + $0x44] sm:$0x1] }
  0x7e   : > { %2577 = vmatprep.mubr.bf16.mxu0 %v4106_v13  ;;  %v901_v13 = vshrl.u32 %v4049_v54, 16  ;;  %v906_v24 = vrot.slane %v904_v14, 5  ;;  %v922_v31 = vrot.slane %v920_v20, 5  ;;  %v1138_v34 = vrot.slane %v4085_v12, 5  ;;  %v4089_v9 = vld [vmem:[%s5150_s5 + $0x50] sm:$0x1] }
  0x7f   : > { %4772 = vmatpush3.bf16.msra.mxu0 %v5466_v59  ;;  %2674 = vmatprep.mubr.bf16.mxu1 %v4164_v56  ;;  %v912_v25 = vrot.slane %v910_v16, 5  ;;  %v1394_v29 = vrot.slane %v1393_v18, 4  ;;  %v1141_v36 = vrot.slane %v4086_v17, 5  ;;  %v1401_v38 = vshrl.u32 %v4150_v21, 16  ;;  %v4153_v14 = vld [vmem:[%s5150_s5 + $0x54] sm:$0xf] }
  0x80   : > { %4808 = vmatpush3.bf16.msra.mxu1 %v5466_v59  ;;  %4773 = vmatprep.subr.bf16.mxu0 %v5484_v15  ;;  %v1135_v59 = vsel %vm5164_vm4, %v1133_v52, %v1134_v45  ;;  %v903_v23 = vrot.slane %v901_v13, 4  ;;  %v1404_v41 = vshll.u32 %v4150_v21, 16  ;;  %v1139_v47 = vsel %vm5164_vm4, %v4100_v26, %v1138_v34  ;;  %v4154_v19 = vld [vmem:[%s5150_s5 + $0x58] sm:$0xf] }
  0x81   : > { %4801 = vmatprep.subr.bf16.mxu1 %v5484_v15  ;;  %v4107_v2 = vcombine.low %v1132_v37, %v1135_v59  ;;  %v1399_v39 = vsel %vm5173_vm5, %v1394_v29, %v1398_v11  ;;  %v1140_v48 = vrot.slane %v1138_v34, 4  ;;  %v1403_v50 = vrot.slane %v1401_v38, 4 }
  0x82   : > { %v907_v32 = vor.u32 %v906_v24, %v903_v23  ;;  %v1406_v37 = vrot.slane %v1404_v41, 5  ;;  %v1414_v55 = vshrl.u32 %v4151_v27, 16  ;;  %v1420_v56 = vshll.u32 %v4152_v35, 16  ;;  %v4155_v24 = vld [vmem:[%s5150_s5 + $0x5c] sm:$0x1] }
  0x83   : > { %4774 = vmatpush3.bf16.msra.mxu0 %v5484_v15  ;;  %2675 = vmatmul.mubr.bf16.gmra.mrb[40].mxu1 %v4939_v40  ;;  %v917_v40 = vor.u32 %v916_v30, %v912_v25  ;;  %v1142_v54 = vsel %vm5164_vm4, %v1140_v48, %v1141_v36  ;;  %v925_v62 = vshrl.u32 %v4052_v43, 16  ;;  %v928_v3 = vshll.u32 %v4052_v43, 16 }
  0x84   : > { %4809 = vmatpush3.bf16.msra.mxu1 %v5484_v15  ;;  %4775 = vmatprep.subr.bf16.mxu0 %v4946_v42  ;;  %v1384_v15 = vrot.slane %v1383_v7, 4  ;;  %v908_v45 = vrot.slane %v907_v32, 4  ;;  %v4108_v60 = vcombine.low %v1139_v47, %v1142_v54  ;;  %v1407_v59 = vor.u32 %v1406_v37, %v1403_v50  ;;  %v4943_v32 = vld [vmem:[%s5150_s5 + $0x48] sm:$0xff]  }
  0x85   : > { %4802 = vmatprep.subr.bf16.mxu1 %v4946_v42  ;;  %2578 = vmatmul.mubr.bf16.gmra.mrb[40].mxu0 %v4066_v6  ;;  %v918_v49 = vrot.slane %v917_v40, 4  ;;  %v1416_v1 = vrot.slane %v1414_v55, 4  ;;  %v927_v6 = vrot.slane %v925_v62, 4  ;;  %v934_v7 = vshll.u32 %v4053_v57, 16  ;;  %v4056_v40 = vld [vmem:[%s5150_s5 + $0x4c] sm:$0xf] }
  0x86   : > { %2585 = vmatprep.mubr.bf16.mxu0 %v4107_v2  ;;  %v1389_v28 = vsel %vm5173_vm5, %v1384_v15, %v1388_v8  ;;  %v913_v53 = vsel %vm5173_vm5, %v908_v45, %v912_v25  ;;  %v1422_v2 = vrot.slane %v1420_v56, 5  ;;  %v938_v8 = vshrl.u32 %v4053_v57, 16  ;;  %v4055_v25 = vld [vmem:[%s5150_s5 + $0x48] sm:$0xf]  ;;  %v4090_v55 = vld [vmem:[%s5150_s5 + $0x54] sm:$0xe] }
  0x87   : > { %4776 = vmatpush3.bf16.msra.mxu0 %v4946_v42  ;;  %v4165_v44 = vcombine.low %v1389_v28, %v1399_v39  ;;  %v923_v58 = vsel %vm5173_vm5, %v918_v49, %v922_v31  ;;  %v930_v12 = vrot.slane %v928_v3, 5  ;;  %v944_v11 = vshll.u32 %v4054_v61, 16  ;;  %v4057_v49 = vld [vmem:[%s5150_s5 + $0x50] sm:$0x1]  ;;  %v4091_v56 = vld [vmem:[%s5150_s5 + $0x58] sm:$0xf] }
  0x88   : > { %4810 = vmatpush3.bf16.msra.mxu1 %v4946_v42  ;;  %4777 = vmatprep.subr.bf16.mxu0 %v4948_v5  ;;  %v1410_v42 = vshll.u32 %v4151_v27, 16  ;;  %v4067_v0 = vcombine.low %v913_v53, %v923_v58  ;;  %v4101_v13 = vrot.slane %v4087_v63, 9  ;;  %v936_v17 = vrot.slane %v934_v7, 5  ;;  %v4092_v61 = vld [vmem:[%s5150_s5 + $0x5c] sm:$0x1] }
  0x89   : > { %4803 = vmatprep.subr.bf16.mxu1 %v4948_v5  ;;  %2682 = vmatprep.mubr.bf16.mxu1 %v4165_v44  ;;  %v940_v15 = vrot.slane %v938_v8, 4  ;;  %v1145_v18 = vrot.slane %v4088_v4, 5  ;;  %v931_v21 = vor.u32 %v930_v12, %v927_v6  ;;  %v1148_v23 = vrot.slane %v4089_v9, 5  ;;  %v4157_v7 = vld [vmem:[%s5150_s5 + $0x64] sm:$0xf] }
  0x8a   : > { %v1412_v52 = vrot.slane %v1410_v42, 5  ;;  %v1425_v29 = vshrl.u32 %v4153_v14, 16  ;;  %v1434_v34 = vshll.u32 %v4154_v19, 16  ;;  %v1438_v47 = vshrl.u32 %v4154_v19, 16 }
  0x8b   : > { %4778 = vmatpush3.bf16.msra.mxu0 %v4948_v5  ;;  %2683 = vmatmul.mubr.bf16.gmra.mrb[44].mxu1 %v4941_v33  ;;  %v941_v26 = vor.u32 %v940_v15, %v936_v17  ;;  %v1146_v27 = vsel %vm5164_vm4, %v4101_v13, %v1145_v18  ;;  %v1147_v28 = vrot.slane %v1145_v18, 4  ;;  %v932_v31 = vrot.slane %v931_v21, 4  ;;  %v4945_v15 = vld [vmem:[%s5150_s5 + $0x54] sm:$0xff]  }
  0x8c   : > { %4811 = vmatpush3.bf16.msra.mxu1 %v4948_v5  ;;  %4779 = vmatprep.subr.bf16.mxu0 %v4950_v22  ;;  %v1408_v5 = vrot.slane %v1407_v59, 4  ;;  %v1417_v10 = vor.u32 %v1416_v1, %v1412_v52  ;;  %v1428_v33 = vshll.u32 %v4153_v14, 16  ;;  %v1427_v39 = vrot.slane %v1425_v29, 4 }
  0x8d   : > { %4804 = vmatprep.subr.bf16.mxu1 %v4950_v22  ;;  %2586 = vmatmul.mubr.bf16.gmra.mrb[44].mxu0 %v4067_v0  ;;  %v942_v35 = vrot.slane %v941_v26, 4  ;;  %v1149_v38 = vsel %vm5164_vm4, %v1147_v28, %v1148_v23  ;;  %v937_v41 = vsel %vm5173_vm5, %v932_v31, %v936_v17  ;;  %v1436_v44 = vrot.slane %v1434_v34, 5  ;;  %v4058_v26 = vld [vmem:[%s5150_s5 + $0x54] sm:$0xf]  ;;  %v4059_v31 = vld [vmem:[%s5150_s5 + $0x58] sm:$0xf] }
  0x8e   : > { %2593 = vmatprep.mubr.bf16.mxu0 %v4108_v60  ;;  %v1413_v16 = vsel %vm5173_vm5, %v1408_v5, %v1412_v52  ;;  %v1418_v20 = vrot.slane %v1417_v10, 4  ;;  %v4109_v42 = vcombine.low %v1146_v27, %v1149_v38  ;;  %v1430_v43 = vrot.slane %v1428_v33, 5 }
  0x8f   : > { %4780 = vmatpush3.bf16.msra.mxu0 %v4950_v22  ;;  %v1444_v48 = vshll.u32 %v4155_v24, 16  ;;  %v949_v50 = vshrl.u32 %v4055_v25, 16  ;;  %v952_v53 = vshll.u32 %v4055_v25, 16  ;;  %v958_v54 = vshll.u32 %v4056_v40, 16  ;;  %v4158_v24 = vld [vmem:[%s5150_s5 + $0x68] sm:$0x1] }
  0x90   : > { %4812 = vmatpush3.bf16.msra.mxu1 %v4950_v22  ;;  %v946_v22 = vrot.slane %v944_v11, 5  ;;  %v1423_v30 = vsel %vm5173_vm5, %v1418_v20, %v1422_v2  ;;  %v1431_v52 = vor.u32 %v1430_v43, %v1427_v39  ;;  %v1440_v57 = vrot.slane %v1438_v47, 4  ;;  %v4156_v2 = vld [vmem:[%s5150_s5 + $0x60] sm:$0xf] }
  0x91   : > { %v4166_v36 = vcombine.low %v1413_v16, %v1423_v30  ;;  %v1446_v58 = vrot.slane %v1444_v48, 5  ;;  %v951_v60 = vrot.slane %v949_v50, 4  ;;  %v962_v59 = vshrl.u32 %v4056_v40, 16  ;;  %v4094_v48 = vld [vmem:[%s5150_s5 + $0x64] sm:$0xf] }
  0x92   : > { %v947_v45 = vsel %vm5173_vm5, %v942_v35, %v946_v22  ;;  %v1432_v62 = vrot.slane %v1431_v52, 4  ;;  %v954_v63 = vrot.slane %v952_v53, 5  ;;  %v960_v0 = vrot.slane %v958_v54, 5  ;;  %v4060_v35 = vld [vmem:[%s5150_s5 + $0x5c] sm:$0x1] }
  0x93   : > { %2690 = vmatprep.mubr.bf16.mxu1 %v4166_v36  ;;  %v4068_v37 = vcombine.low %v937_v41, %v947_v45  ;;  %v968_v1 = vshll.u32 %v4057_v49, 16  ;;  %v1441_v3 = vor.u32 %v1440_v57, %v1436_v44  ;;  %v964_v4 = vrot.slane %v962_v59, 4  ;;  %v4095_v49 = vld [vmem:[%s5150_s5 + $0x68] sm:$0x1]  ;;  %v4159_v54 = vld [vmem:[%s5150_s5 + $0x6c] sm:$0xf] }
  0x94   : > { %2691 = vmatmul.mubr.bf16.gmra.mrb[48].mxu1 %v4943_v32  ;;  %v4102_v5 = vrot.slane %v4090_v55, 9  ;;  %v1152_v6 = vrot.slane %v4091_v56, 5  ;;  %v1437_v8 = vsel %vm5173_vm5, %v1432_v62, %v1436_v44  ;;  %v955_v9 = vor.u32 %v954_v63, %v951_v60  ;;  %v4160_v55 = vld [vmem:[%s5150_s5 + $0x70] sm:$0xf] }
  0x95   : > { %2594 = vmatmul.mubr.bf16.gmra.mrb[48].mxu0 %v4068_v37  ;;  %v970_v10 = vrot.slane %v968_v1, 5  ;;  %v1155_v12 = vrot.slane %v4092_v61, 5  ;;  %v1442_v11 = vrot.slane %v1441_v3, 4  ;;  %v965_v13 = vor.u32 %v964_v4, %v960_v0  ;;  %v4947_v3 = vld [vmem:[%s5150_s5 + $0x60] sm:$0xff]  }
  0x96   : > { %2601 = vmatprep.mubr.bf16.mxu0 %v4109_v42  ;;  %v1153_v14 = vsel %vm5164_vm4, %v4102_v5, %v1152_v6  ;;  %v1154_v16 = vrot.slane %v1152_v6, 4  ;;  %v956_v17 = vrot.slane %v955_v9, 4  ;;  %v1449_v18 = vshrl.u32 %v4156_v2, 16  ;;  %v4093_v42 = vld [vmem:[%s5150_s5 + $0x60] sm:$0xe] }
  0x97   : > { %v1452_v19 = vshll.u32 %v4156_v2, 16  ;;  %v1458_v20 = vshll.u32 %v4157_v7, 16  ;;  %v1447_v21 = vsel %vm5173_vm5, %v1442_v11, %v1446_v58  ;;  %v966_v22 = vrot.slane %v965_v13, 4  ;;  %v4161_v5 = vld [vmem:[%s5150_s5 + $0x74] sm:$0x1] }
  0x98   : > { %v1156_v23 = vsel %vm5164_vm4, %v1154_v16, %v1155_v12  ;;  %v1462_v25 = vshrl.u32 %v4157_v7, 16  ;;  %v4167_v27 = vcombine.low %v1437_v8, %v1447_v21  ;;  %v961_v28 = vsel %vm5173_vm5, %v956_v17, %v960_v0 }
  0x99   : > { %v4110_v29 = vcombine.low %v1153_v14, %v1156_v23  ;;  %v1451_v30 = vrot.slane %v1449_v18, 4  ;;  %v971_v32 = vsel %vm5173_vm5, %v966_v22, %v970_v10  ;;  %v1454_v33 = vrot.slane %v1452_v19, 5  ;;  %v4061_v18 = vld [vmem:[%s5150_s5 + $0x60] sm:$0xf]  ;;  %v4062_v19 = vld [vmem:[%s5150_s5 + $0x64] sm:$0xf] }
  0x9a   : > { %v1460_v34 = vrot.slane %v1458_v20, 5  ;;  %v1464_v36 = vrot.slane %v1462_v25, 4  ;;  %2698 = vmatprep.mubr.bf16.mxu1 %v4167_v27  ;;  %v4069_v38 = vcombine.low %v961_v28, %v971_v32  ;;  %v1468_v39 = vshll.u32 %v4158_v24, 16  ;;  %v4063_v24 = vld [vmem:[%s5150_s5 + $0x68] sm:$0x1] }
  0x9b   : > { %v973_v40 = vshrl.u32 %v4058_v26, 16  ;;  %v976_v41 = vshll.u32 %v4058_v26, 16  ;;  %v1455_v43 = vor.u32 %v1454_v33, %v1451_v30  ;;  %v982_v45 = vshll.u32 %v4059_v31, 16  ;;  %v4170_v25 = vld [vmem:[%s5150_s5 + $0x18] sm:$0xe] }
  0x9c   : > { %2699 = vmatmul.mubr.bf16.gmra.mrb[52].mxu1 %v4945_v15  ;;  %v1465_v44 = vor.u32 %v1464_v36, %v1460_v34  ;;  %v986_v47 = vshrl.u32 %v4059_v31, 16  ;;  %v1470_v50 = vrot.slane %v1468_v39, 5  ;;  %v992_v53 = vshll.u32 %v4060_v35, 16  ;;  %v4171_v30 = vld [vmem:[%s5150_s5 + $0x1c] sm:$0xf] }
  0x9d   : > { %2602 = vmatmul.mubr.bf16.gmra.mrb[52].mxu0 %v4069_v38  ;;  %v975_v37 = vrot.slane %v973_v40, 4  ;;  %v978_v52 = vrot.slane %v976_v41, 5  ;;  %v1456_v56 = vrot.slane %v1455_v43, 4  ;;  %v984_v58 = vrot.slane %v982_v45, 5  ;;  %v4172_v36 = vld [vmem:[%s5150_s5 + $0x20] sm:$0x1] }
  0x9e   : > { %2609 = vmatprep.mubr.bf16.mxu0 %v4110_v29  ;;  %v1466_v57 = vrot.slane %v1465_v44, 4  ;;  %v988_v60 = vrot.slane %v986_v47, 4  ;;  %v994_v61 = vrot.slane %v992_v53, 5  ;;  %v4103_v62 = vrot.slane %v4093_v42, 9  ;;  %v4182_v41 = vld [vmem:[%s5150_s5 + $0x48] sm:$0xe] }
  0x9f   : > { %v979_v59 = vor.u32 %v978_v52, %v975_v37  ;;  %v1159_v63 = vrot.slane %v4094_v48, 5  ;;  %v1461_v0 = vsel %vm5173_vm5, %v1456_v56, %v1460_v34  ;;  %v1162_v4 = vrot.slane %v4095_v49, 5  ;;  %v4183_v47 = vld [vmem:[%s5150_s5 + $0x4c] sm:$0xf]  ;;  %v4184_v52 = vld [vmem:[%s5150_s5 + $0x50] sm:$0x1] }
  0xa0   : > { %v1471_v1 = vsel %vm5173_vm5, %v1466_v57, %v1470_v50  ;;  %v989_v2 = vor.u32 %v988_v60, %v984_v58  ;;  %v1473_v12 = vshrl.u32 %v4159_v54, 16  ;;  %v1476_v11 = vshll.u32 %v4159_v54, 16  ;;  %v4173_v57 = vld [vmem:[%s5150_s5 + $0x24] sm:$0xe] }
  0xa1   : > { %v4168_v6 = vcombine.low %v1461_v0, %v1471_v1  ;;  %v980_v7 = vrot.slane %v979_v59, 4  ;;  %v1160_v8 = vsel %vm5164_vm4, %v4103_v62, %v1159_v63  ;;  %v1161_v9 = vrot.slane %v1159_v63, 4  ;;  %v4175_v0 = vld [vmem:[%s5150_s5 + $0x2c] sm:$0x1]  ;;  %v4185_v1 = vld [vmem:[%s5150_s5 + $0x54] sm:$0xe] }
  0xa2   : > { %v990_v10 = vrot.slane %v989_v2, 4  ;;  %v1482_v13 = vshll.u32 %v4160_v55, 16  ;;  %v1486_v17 = vshrl.u32 %v4160_v55, 16  ;;  %v1492_v15 = vshll.u32 %v4161_v5, 16 }
  0xa3   : > { %2706 = vmatprep.mubr.bf16.mxu1 %v4168_v6  ;;  %v985_v14 = vsel %vm5173_vm5, %v980_v7, %v984_v58  ;;  %v1163_v16 = vsel %vm5164_vm4, %v1161_v9, %v1162_v4  ;;  %v1475_v22 = vrot.slane %v1473_v12, 4  ;;  %v1478_v23 = vrot.slane %v1476_v11, 5  ;;  %v4174_v58 = vld [vmem:[%s5150_s5 + $0x28] sm:$0xf]  ;;  %v4186_v6 = vld [vmem:[%s5150_s5 + $0x58] sm:$0xf] }
  0xa4   : > { %v995_v20 = vsel %vm5173_vm5, %v990_v10, %v994_v61  ;;  %2707 = vmatmul.mubr.bf16.gmra.mrb[56].mxu1 %v4947_v3  ;;  %v4111_v21 = vcombine.low %v1160_v8, %v1163_v16  ;;  %v1484_v27 = vrot.slane %v1482_v13, 5  ;;  %v1488_v28 = vrot.slane %v1486_v17, 4  ;;  %v4949_v61 = vld [vmem:[%s5150_s5 + $0x6c] sm:$0xff]   ;;  %v4187_v12 = vld [vmem:[%s5150_s5 + $0x5c] sm:$0x1] }
  0xa5   : > { %v4070_v26 = vcombine.low %v985_v14, %v995_v20  ;;  %v1494_v29 = vrot.slane %v1492_v15, 5  ;;  %v1479_v31 = vor.u32 %v1478_v23, %v1475_v22  ;;  %v997_v32 = vshrl.u32 %v4061_v18, 16  ;;  %v4176_v17 = vld [vmem:[%s5150_s5 + $0x30] sm:$0xe]  ;;  %v4177_v15 = vld [vmem:[%s5150_s5 + $0x34] sm:$0xf] }
  0xa6   : > { %v1000_v33 = vshll.u32 %v4061_v18, 16  ;;  %v1006_v34 = vshll.u32 %v4062_v19, 16  ;;  %v1489_v35 = vor.u32 %v1488_v28, %v1484_v27  ;;  %v1010_v38 = vshrl.u32 %v4062_v19, 16  ;;  %v4178_v22 = vld [vmem:[%s5150_s5 + $0x38] sm:$0x1] }
  0xa7   : > { %2610 = vmatmul.mubr.bf16.gmra.mrb[56].mxu0 %v4070_v26  ;;  %v1016_v39 = vshll.u32 %v4063_v24, 16  ;;  %v4194_v40 = vrot.slane %v4170_v25, 9  ;;  %v1480_v42 = vrot.slane %v1479_v31, 4  ;;  %v999_v43 = vrot.slane %v997_v32, 4  ;;  %v4188_v23 = vld [vmem:[%s5150_s5 + $0x60] sm:$0xe] }
  0xa8   : > { %2617 = vmatprep.mubr.bf16.mxu0 %v4111_v21  ;;  %v1002_v44 = vrot.slane %v1000_v33, 5  ;;  %v1008_v45 = vrot.slane %v1006_v34, 5  ;;  %v1490_v48 = vrot.slane %v1489_v35, 4  ;;  %v1012_v49 = vrot.slane %v1010_v38, 4  ;;  %v4189_v28 = vld [vmem:[%s5150_s5 + $0x64] sm:$0xf] }
  0xa9   : > { %v1018_v50 = vrot.slane %v1016_v39, 5  ;;  %v1586_v37 = vrot.slane %v4171_v30, 5  ;;  %v1485_v53 = vsel %vm5173_vm5, %v1480_v42, %v1484_v27  ;;  %v1589_v55 = vrot.slane %v4172_v36, 5  ;;  %v4179_v33 = vld [vmem:[%s5150_s5 + $0x3c] sm:$0xe] }
  0xaa   : > { %v1003_v54 = vor.u32 %v1002_v44, %v999_v43  ;;  %v4198_v56 = vrot.slane %v4182_v41, 9  ;;  %v1495_v60 = vsel %vm5173_vm5, %v1490_v48, %v1494_v29  ;;  %v1013_v59 = vor.u32 %v1012_v49, %v1008_v45  ;;  %v4180_v38 = vld [vmem:[%s5150_s5 + $0x40] sm:$0xf]  ;;  %v4191_v39 = vld [vmem:[%s5150_s5 + $0x6c] sm:$0xe] }
  0xab   : > { %v1587_v62 = vsel %vm5164_vm4, %v4194_v40, %v1586_v37  ;;  %v1588_v63 = vrot.slane %v1586_v37, 4  ;;  %v4169_v2 = vcombine.low %v1485_v53, %v1495_v60  ;;  %v1614_v4 = vrot.slane %v4183_v47, 5  ;;  %v4192_v44 = vld [vmem:[%s5150_s5 + $0x70] sm:$0xf] }
  0xac   : > { %v1004_v3 = vrot.slane %v1003_v54, 4  ;;  %v1617_v5 = vrot.slane %v4184_v52, 5  ;;  %v1014_v7 = vrot.slane %v1013_v59, 4  ;;  %v4195_v9 = vrot.slane %v4173_v57, 9 }
  0xad   : > { %v1590_v8 = vsel %vm5164_vm4, %v1588_v63, %v1589_v55  ;;  %v1593_v10 = vrot.slane %v4174_v58, 5  ;;  %2714 = vmatprep.mubr.bf16.mxu1 %v4169_v2  ;;  %v1615_v14 = vsel %vm5164_vm4, %v4198_v56, %v1614_v4  ;;  %v1616_v16 = vrot.slane %v1614_v4, 4  ;;  %v4193_v55 = vld [vmem:[%s5150_s5 + $0x74] sm:$0x1] }
  0xae   : > { %v1009_v11 = vsel %vm5173_vm5, %v1004_v3, %v1008_v45  ;;  %v4202_v13 = vcombine.low %v1587_v62, %v1590_v8  ;;  %v1019_v18 = vsel %vm5173_vm5, %v1014_v7, %v1018_v50  ;;  %2715 = vmatmul.mubr.bf16.gmra.mrb[60].mxu1 %v4949_v61  ;;  %v1596_v21 = vrot.slane %v4175_v0, 5  ;;  %v4181_v50 = vld [vmem:[%s5150_s5 + $0x44] sm:$0x1] }
  0xaf   : > { %v1594_v19 = vsel %vm5164_vm4, %v4195_v9, %v1593_v10  ;;  %v1595_v20 = vrot.slane %v1593_v10, 4  ;;  %v4071_v24 = vcombine.low %v1009_v11, %v1019_v18  ;;  %v1618_v25 = vsel %vm5164_vm4, %v1616_v16, %v1617_v5  ;;  %v5683_v11 = vld [vmem:[%s6036_s2] ss:$0 sm:$0xff] }
  0xb0   : > { %v4199_v26 = vrot.slane %v4185_v1, 9  ;;  %v1621_v27 = vrot.slane %v4186_v6, 5  ;;  %v4206_v29 = vcombine.low %v1615_v14, %v1618_v25  ;;  %v1624_v31 = vrot.slane %v4187_v12, 5 }
  0xb1   : > { %v1597_v30 = vsel %vm5164_vm4, %v1595_v20, %v1596_v21  ;;  %v4196_v32 = vrot.slane %v4176_v17, 9  ;;  %2618 = vmatmul.mubr.bf16.gmra.mrb[60].mxu0 %v4071_v24  ;;  %v1600_v35 = vrot.slane %v4177_v15, 5  ;;  %v1603_v40 = vrot.slane %v4178_v22, 5 }
  0xb2   : > { %v1622_v34 = vsel %vm5164_vm4, %v4199_v26, %v1621_v27  ;;  %v1623_v36 = vrot.slane %v1621_v27, 4  ;;  %4781 = vmatprep.mubr.bf16.mxu0 %v4202_v13  ;;  %4789 = vmatprep.mubr.bf16.mxu1 %v4206_v29  ;;  %v4200_v41 = vrot.slane %v4188_v23, 9  ;;  %v1628_v42 = vrot.slane %v4189_v28, 5 }
  0xb3   : > { %v1631_v43 = vrot.slane %v4190_v51, 5  ;;  %v4203_v45 = vcombine.low %v1594_v19, %v1597_v30  ;;  %v1601_v48 = vsel %vm5164_vm4, %v4196_v32, %v1600_v35  ;;  %v1602_v49 = vrot.slane %v1600_v35, 4 }
  0xb4   : > { %v1625_v47 = vsel %vm5164_vm4, %v1623_v36, %v1624_v31  ;;  %v1629_v52 = vsel %vm5164_vm4, %v4200_v41, %v1628_v42  ;;  %v1630_v53 = vrot.slane %v1628_v42, 4  ;;  %v1607_v54 = vrot.slane %v4180_v38, 5 }
  0xb5   : > { %v4207_v37 = vcombine.low %v1622_v34, %v1625_v47  ;;  %v1604_v56 = vsel %vm5164_vm4, %v1602_v49, %v1603_v40  ;;  %v4197_v57 = vrot.slane %v4179_v33, 9  ;;  %v4201_v58 = vrot.slane %v4191_v39, 9 }
  0xb6   : > { %v1635_v60 = vrot.slane %v4192_v44, 5  ;;  %v4204_v59 = vcombine.low %v1601_v48, %v1604_v56  ;;  %v1632_v61 = vsel %vm5164_vm4, %v1630_v53, %v1631_v43  ;;  %v1609_v62 = vrot.slane %v1607_v54, 4 }
  0xb7   : > { %4790 = vmatmul.mubr.bf16.vlgmr.msra.gmra.mrb[64].mxu1 %v4207_v37  ;;  %v1610_v63 = vrot.slane %v4181_v50, 5  ;;  %v4208_v0 = vcombine.low %v1629_v52, %v1632_v61  ;;  %v1638_v3 = vrot.slane %v4193_v55, 5  ;;  %v1608_v5 = vsel %vm5164_vm4, %v4197_v57, %v1607_v54 }
  0xb8   : > { %v1636_v1 = vsel %vm5164_vm4, %v4201_v58, %v1635_v60  ;;  %v1637_v2 = vrot.slane %v1635_v60, 4  ;;  %vm3767_vm5 = vcmask 1047559  }
  0xb9   : > { %4782 = vmatmul.mubr.bf16.vlgmr.msra.gmra.mrb[64].mxu0 %v4203_v45  ;;  %4793 = vmatprep.mubr.bf16.mxu1 %v4208_v0  ;;  %v1611_v6 = vsel %vm5164_vm4, %v1609_v62, %v1610_v63 }
  0xba   : > { %v1639_v4 = vsel %vm5164_vm4, %v1637_v2, %v1638_v3  ;;  %4785 = vmatprep.mubr.bf16.mxu0 %v4204_v59  ;;  %v4205_v8 = vcombine.low %v1608_v5, %v1611_v6  ;;  %vm3764_vm4 = vcmask 1046534  }
  0xbb   : > { %v4209_v7 = vcombine.low %v1636_v1, %v1639_v4 }
  0xbf   : > { %4794 = vmatmul.mubr.bf16.gmra.mrb[68].mxu1 %v4209_v7 }
  0xc1   : > { %4786 = vmatmul.mubr.bf16.gmra.mrb[68].mxu0 %v4205_v8 }
 0x105   : > { %v4509_v10 = vpop.f32.mrb[0].mxu0 }
 0x106   : > { %v4573_v9 = vpop.f32.mrb[0].mxu1  ;;  %v4510_v13 = vpop.f32.mrb[1].mxu0 }
 0x107   : > { %v4574_v12 = vpop.f32.mrb[1].mxu1  ;;  %v4511_v17 = vadd.f32 %v4510_v13, %v4509_v10  ;;  %v4512_v15 = vpop.f32.mrb[2].mxu0 }
 0x108   : > { %v4575_v14 = vadd.f32 %v4574_v12, %v4573_v9  ;;  %v4576_v16 = vpop.f32.mrb[2].mxu1  ;;  %v4513_v46 = vpop.f32.mrb[3].mxu0 }
 0x109   : > { %v4577_v18 = vpop.f32.mrb[3].mxu1  ;;  %v2370_v20 = vadd.f32 %v4511_v17, %v5683_v11  ;;  %v4514_v21 = vadd.f32 %v4513_v46, %v4512_v15 }
 0x10a   : > { %v4578_v19 = vadd.f32 %v4577_v18, %v4576_v16 }
 0x10b   : > { %v5686_v22 = vadd.f32 %v4575_v14, %v2370_v20  ;;  %v2373_v23 = vadd.f32 %v4514_v21, %v5683_v11 }
 0x10d   : > { %v5689_v24 = vadd.f32 %v4578_v19, %v2373_v23  ;;  %v4515_v26 = vpop.f32.mrb[4].mxu0 }
 0x10e   : > { %v4579_v25 = vpop.f32.mrb[4].mxu1  ;;  %v4516_v28 = vpop.f32.mrb[5].mxu0 }
 0x10f   : > { %v4580_v27 = vpop.f32.mrb[5].mxu1  ;;  %v4517_v30 = vadd.f32 %v4516_v28, %v4515_v26  ;;  %v4518_v31 = vpop.f32.mrb[6].mxu0 }
 0x110   : > { %v4581_v51 = vadd.f32 %v4580_v27, %v4579_v25  ;;  %v4582_v29 = vpop.f32.mrb[6].mxu1  ;;  %v4519_v33 = vpop.f32.mrb[7].mxu0 }
 0x111   : > { %v4583_v32 = vpop.f32.mrb[7].mxu1  ;;  %v2378_v36 = vadd.f32 %v4517_v30, %v5683_v11  ;;  %v4520_v35 = vadd.f32 %v4519_v33, %v4518_v31 }
 0x112   : > { %v4584_v34 = vadd.f32 %v4583_v32, %v4582_v29 }
 0x113   : > { %v5692_v38 = vadd.f32 %v4581_v51, %v2378_v36  ;;  %v2381_v39 = vadd.f32 %v4520_v35, %v5683_v11 }
 0x115   : > { %v5695_v40 = vadd.f32 %v4584_v34, %v2381_v39  ;;  %v4521_v42 = vpop.f32.mrb[8].mxu0 }
 0x116   : > { %v4585_v41 = vpop.f32.mrb[8].mxu1  ;;  %v4522_v44 = vpop.f32.mrb[9].mxu0 }
 0x117   : > { %v4586_v43 = vpop.f32.mrb[9].mxu1  ;;  %v4523_v48 = vadd.f32 %v4522_v44, %v4521_v42  ;;  %v4524_v49 = vpop.f32.mrb[10].mxu0 }
 0x118   : > { %v4587_v45 = vadd.f32 %v4586_v43, %v4585_v41  ;;  %v4588_v47 = vpop.f32.mrb[10].mxu1  ;;  %v4525_v37 = vpop.f32.mrb[11].mxu0 }
 0x119   : > { %v4589_v50 = vpop.f32.mrb[11].mxu1  ;;  %v2386_v53 = vadd.f32 %v4523_v48, %v5683_v11  ;;  %v4526_v54 = vadd.f32 %v4525_v37, %v4524_v49 }
 0x11a   : > { %v4590_v52 = vadd.f32 %v4589_v50, %v4588_v47 }
 0x11b   : > { %v5698_v55 = vadd.f32 %v4587_v45, %v2386_v53  ;;  %v2389_v56 = vadd.f32 %v4526_v54, %v5683_v11 }
 0x11d   : > { %v5701_v57 = vadd.f32 %v4590_v52, %v2389_v56  ;;  %v4527_v60 = vpop.f32.mrb[12].mxu0 }
 0x11e   : > { %v4591_v58 = vpop.f32.mrb[12].mxu1  ;;  %v4528_v61 = vpop.f32.mrb[13].mxu0 }
 0x11f   : > { %v4592_v59 = vpop.f32.mrb[13].mxu1  ;;  %v4529_v0 = vadd.f32 %v4528_v61, %v4527_v60  ;;  %v4530_v1 = vpop.f32.mrb[14].mxu0 }
 0x120   : > { %v4593_v62 = vadd.f32 %v4592_v59, %v4591_v58  ;;  %v4594_v63 = vpop.f32.mrb[14].mxu1  ;;  %v4531_v3 = vpop.f32.mrb[15].mxu0 }
 0x121   : > { %v4595_v2 = vpop.f32.mrb[15].mxu1  ;;  %v2394_v5 = vadd.f32 %v4529_v0, %v5683_v11  ;;  %v4532_v6 = vadd.f32 %v4531_v3, %v4530_v1 }
 0x122   : > { %v4596_v4 = vadd.f32 %v4595_v2, %v4594_v63 }
 0x123   : > { %v5704_v7 = vadd.f32 %v4593_v62, %v2394_v5  ;;  %v2397_v8 = vadd.f32 %v4532_v6, %v5683_v11 }
 0x125   : > { %v5707_v9 = vadd.f32 %v4596_v4, %v2397_v8  ;;  %v4533_v12 = vpop.f32.mrb[16].mxu0 }
 0x126   : > { %v4597_v10 = vpop.f32.mrb[16].mxu1  ;;  %v4534_v14 = vpop.f32.mrb[17].mxu0 }
 0x127   : > { %v4598_v13 = vpop.f32.mrb[17].mxu1  ;;  %v4535_v15 = vadd.f32 %v4534_v14, %v4533_v12  ;;  %v4536_v18 = vpop.f32.mrb[18].mxu0 }
 0x128   : > { %v4599_v16 = vadd.f32 %v4598_v13, %v4597_v10  ;;  %v4600_v17 = vpop.f32.mrb[18].mxu1  ;;  %v4537_v19 = vpop.f32.mrb[19].mxu0 }
 0x129   : > { %v4601_v46 = vpop.f32.mrb[19].mxu1  ;;  %v2402_v21 = vadd.f32 %v4535_v15, %v5683_v11  ;;  %v4538_v23 = vadd.f32 %v4537_v19, %v4536_v18 }
 0x12a   : > { %v4602_v20 = vadd.f32 %v4601_v46, %v4600_v17 }
 0x12b   : > { %v5710_v25 = vadd.f32 %v4599_v16, %v2402_v21  ;;  %v2405_v26 = vadd.f32 %v4538_v23, %v5683_v11 }
 0x12d   : > { %v5713_v27 = vadd.f32 %v4602_v20, %v2405_v26  ;;  %v4539_v51 = vpop.f32.mrb[20].mxu0 }
 0x12e   : > { %v4603_v28 = vpop.f32.mrb[20].mxu1  ;;  %v4540_v30 = vpop.f32.mrb[21].mxu0 }
 0x12f   : > { %v4604_v29 = vpop.f32.mrb[21].mxu1  ;;  %v4541_v33 = vadd.f32 %v4540_v30, %v4539_v51  ;;  %v4542_v34 = vpop.f32.mrb[22].mxu0 }
 0x130   : > { %v4605_v31 = vadd.f32 %v4604_v29, %v4603_v28  ;;  %v4606_v32 = vpop.f32.mrb[22].mxu1  ;;  %v4543_v35 = vpop.f32.mrb[23].mxu0 }
 0x131   : > { %v4607_v36 = vpop.f32.mrb[23].mxu1  ;;  %v2410_v41 = vadd.f32 %v4541_v33, %v5683_v11  ;;  %v4544_v42 = vadd.f32 %v4543_v35, %v4542_v34 }
 0x132   : > { %v4608_v39 = vadd.f32 %v4607_v36, %v4606_v32 }
 0x133   : > { %v5716_v43 = vadd.f32 %v4605_v31, %v2410_v41  ;;  %v2413_v44 = vadd.f32 %v4544_v42, %v5683_v11 }
 0x135   : > { %v5719_v45 = vadd.f32 %v4608_v39, %v2413_v44  ;;  %v4545_v48 = vpop.f32.mrb[24].mxu0 }
 0x136   : > { %v4609_v47 = vpop.f32.mrb[24].mxu1  ;;  %v4546_v50 = vpop.f32.mrb[25].mxu0 }
 0x137   : > { %v4610_v49 = vpop.f32.mrb[25].mxu1  ;;  %v4547_v53 = vadd.f32 %v4546_v50, %v4545_v48  ;;  %v4548_v54 = vpop.f32.mrb[26].mxu0 }
 0x138   : > { %v4611_v37 = vadd.f32 %v4610_v49, %v4609_v47  ;;  %v4612_v52 = vpop.f32.mrb[26].mxu1  ;;  %v4549_v58 = vpop.f32.mrb[27].mxu0 }
 0x139   : > { %v4613_v56 = vpop.f32.mrb[27].mxu1  ;;  %v2418_v59 = vadd.f32 %v4547_v53, %v5683_v11  ;;  %v4550_v61 = vadd.f32 %v4549_v58, %v4548_v54 }
 0x13a   : > { %v4614_v60 = vadd.f32 %v4613_v56, %v4612_v52 }
 0x13b   : > { %v5722_v62 = vadd.f32 %v4611_v37, %v2418_v59  ;;  %v2421_v63 = vadd.f32 %v4550_v61, %v5683_v11 }
 0x13d   : > { %v5725_v0 = vadd.f32 %v4614_v60, %v2421_v63  ;;  %v4551_v2 = vpop.f32.mrb[28].mxu0 }
 0x13e   : > { %v4615_v1 = vpop.f32.mrb[28].mxu1  ;;  %v4552_v4 = vpop.f32.mrb[29].mxu0 }
 0x13f   : > { %v4616_v3 = vpop.f32.mrb[29].mxu1  ;;  %v4553_v8 = vadd.f32 %v4552_v4, %v4551_v2  ;;  %v4554_v10 = vpop.f32.mrb[30].mxu0 }
 0x140   : > { %v4617_v5 = vadd.f32 %v4616_v3, %v4615_v1  ;;  %v4618_v6 = vpop.f32.mrb[30].mxu1  ;;  %v4555_v13 = vpop.f32.mrb[31].mxu0 }
 0x141   : > { %v4619_v12 = vpop.f32.mrb[31].mxu1  ;;  %v2426_v16 = vadd.f32 %v4553_v8, %v5683_v11  ;;  %v4556_v17 = vadd.f32 %v4555_v13, %v4554_v10 }
 0x142   : > { %v4620_v14 = vadd.f32 %v4619_v12, %v4618_v6 }
 0x143   : > { %v5728_v15 = vadd.f32 %v4617_v5, %v2426_v16  ;;  %v2429_v18 = vadd.f32 %v4556_v17, %v5683_v11 }
 0x145   : > { %v5731_v46 = vadd.f32 %v4620_v14, %v2429_v18  ;;  %v4637_v28 = vpop.f32.mrb[32].mxu0 }
 0x146   : > { %v4701_v19 = vpop.f32.mrb[32].mxu1  ;;  %v4638_v29 = vpop.f32.mrb[33].mxu0 }
 0x147   : > { %v4702_v20 = vpop.f32.mrb[33].mxu1  ;;  %v4639_v30 = vadd.f32 %v4638_v29, %v4637_v28  ;;  %v4640_v31 = vpop.f32.mrb[34].mxu0 }
 0x148   : > { %v4703_v21 = vadd.f32 %v4702_v20, %v4701_v19  ;;  %v4704_v23 = vpop.f32.mrb[34].mxu1  ;;  %v4641_v32 = vpop.f32.mrb[35].mxu0 }
 0x149   : > { %v4705_v26 = vpop.f32.mrb[35].mxu1  ;;  %v2564_v33 = vadd.f32 %v4639_v30, %v5686_v22  ;;  %v4642_v34 = vadd.f32 %v4641_v32, %v4640_v31 }
 0x14a   : > { %v4706_v51 = vadd.f32 %v4705_v26, %v4704_v23 }
 0x14b   : > { %v2567_v36 = vadd.f32 %v4642_v34, %v5689_v24  ;;  %v5735_v35 = vadd.f32 %v4703_v21, %v2564_v33 }
 0x14d   : > { %v5737_v41 = vadd.f32 %v4706_v51, %v2567_v36 }
 0x14e   : > { %v4707_v11 = vpop.f32.mrb[36].mxu1 }
 0x14f   : > { %v4708_v39 = vpop.f32.mrb[37].mxu1  ;;  %v4643_v47 = vpop.f32.mrb[36].mxu0 }
 0x150   : > { %v4709_v42 = vadd.f32 %v4708_v39, %v4707_v11  ;;  %v4710_v44 = vpop.f32.mrb[38].mxu1  ;;  %v4644_v49 = vpop.f32.mrb[37].mxu0 }
 0x151   : > { %v4711_v48 = vpop.f32.mrb[39].mxu1  ;;  %v4645_v37 = vadd.f32 %v4644_v49, %v4643_v47  ;;  %v4646_v52 = vpop.f32.mrb[38].mxu0 }
 0x152   : > { %v4712_v50 = vadd.f32 %v4711_v48, %v4710_v44  ;;  %v4647_v53 = vpop.f32.mrb[39].mxu0 }
 0x153   : > { %v2572_v22 = vadd.f32 %v4645_v37, %v5692_v38  ;;  %v4648_v54 = vadd.f32 %v4647_v53, %v4646_v52 }
 0x155   : > { %v2575_v24 = vadd.f32 %v4648_v54, %v5695_v40  ;;  %v5741_v56 = vadd.f32 %v4709_v42, %v2572_v22 }
 0x156   : > { %v4713_v58 = vpop.f32.mrb[40].mxu1 }
 0x157   : > { %v5743_v60 = vadd.f32 %v4712_v50, %v2575_v24  ;;  %v4714_v59 = vpop.f32.mrb[41].mxu1 }
 0x158   : > { %v4649_v61 = vpop.f32.mrb[40].mxu0  ;;  %v4715_v63 = vadd.f32 %v4714_v59, %v4713_v58  ;;  %v4716_v1 = vpop.f32.mrb[42].mxu1 }
 0x159   : > { %v4650_v2 = vpop.f32.mrb[41].mxu0  ;;  %v4717_v3 = vpop.f32.mrb[43].mxu1 }
 0x15a   : > { %v4651_v4 = vadd.f32 %v4650_v2, %v4649_v61  ;;  %v4652_v5 = vpop.f32.mrb[42].mxu0  ;;  %v4718_v6 = vadd.f32 %v4717_v3, %v4716_v1 }
 0x15b   : > { %v4653_v8 = vpop.f32.mrb[43].mxu0 }
 0x15c   : > { %v2580_v38 = vadd.f32 %v4651_v4, %v5698_v55  ;;  %v4654_v10 = vadd.f32 %v4653_v8, %v4652_v5 }
 0x15e   : > { %v2583_v40 = vadd.f32 %v4654_v10, %v5701_v57  ;;  %v5747_v12 = vadd.f32 %v4715_v63, %v2580_v38  ;;  %v4719_v13 = vpop.f32.mrb[44].mxu1 }
 0x15f   : > { %v4720_v16 = vpop.f32.mrb[45].mxu1 }
 0x160   : > { %v5749_v14 = vadd.f32 %v4718_v6, %v2583_v40  ;;  %v4721_v17 = vadd.f32 %v4720_v16, %v4719_v13  ;;  %v4722_v18 = vpop.f32.mrb[46].mxu1  ;;  %v4655_v19 = vpop.f32.mrb[44].mxu0 }
 0x161   : > { %v4723_v20 = vpop.f32.mrb[47].mxu1  ;;  %v4656_v21 = vpop.f32.mrb[45].mxu0 }
 0x162   : > { %v4724_v23 = vadd.f32 %v4723_v20, %v4722_v18  ;;  %v4657_v26 = vadd.f32 %v4656_v21, %v4655_v19  ;;  %v4658_v28 = vpop.f32.mrb[46].mxu0 }
 0x163   : > { %v4659_v51 = vpop.f32.mrb[47].mxu0 }
 0x164   : > { %v2588_v55 = vadd.f32 %v4657_v26, %v5704_v7  ;;  %v4660_v29 = vadd.f32 %v4659_v51, %v4658_v28 }
 0x166   : > { %v2591_v57 = vadd.f32 %v4660_v29, %v5707_v9  ;;  %v5753_v30 = vadd.f32 %v4721_v17, %v2588_v55 }
 0x167   : > { %v4725_v31 = vpop.f32.mrb[48].mxu1 }
 0x168   : > { %v5755_v32 = vadd.f32 %v4724_v23, %v2591_v57  ;;  %v4726_v33 = vpop.f32.mrb[49].mxu1  ;;  %v4661_v34 = vpop.f32.mrb[48].mxu0 }
 0x169   : > { %v4727_v36 = vadd.f32 %v4726_v33, %v4725_v31  ;;  %v4728_v11 = vpop.f32.mrb[50].mxu1  ;;  %v4662_v39 = vpop.f32.mrb[49].mxu0  ;;  %v4991_v31 = vmov 1983009808  }
 0x16a   : > { %v4729_v42 = vpop.f32.mrb[51].mxu1  ;;  %v4663_v44 = vadd.f32 %v4662_v39, %v4661_v34  ;;  %v4664_v47 = vpop.f32.mrb[50].mxu0  ;;  %v2966_v33 = vunpack.c.l.s4 %v4991_v31  ;;  %v2968_v34 = vlaneseq }
 0x16b   : > { %v4730_v48 = vadd.f32 %v4729_v42, %v4728_v11  ;;  %v4665_v49 = vpop.f32.mrb[51].mxu0 }
 0x16c   : > { %v2596_v7 = vadd.f32 %v4663_v44, %v5710_v25  ;;  %v4666_v50 = vadd.f32 %v4665_v49, %v4664_v47 }
 0x16e   : > { %v2599_v9 = vadd.f32 %v4666_v50, %v5713_v27  ;;  %v2693_v37 = vadd.f32 %v4727_v36, %v2596_v7 }
 0x16f   : > { %v4731_v53 = vpop.f32.mrb[52].mxu1 }
 0x170   : > { %v5759_v52 = vadd.f32 %v4730_v48, %v2599_v9  ;;  %v4667_v22 = vpop.f32.mrb[52].mxu0  ;;  %v4732_v54 = vpop.f32.mrb[53].mxu1  ;;  %v2967_v48 = vunpack.c.0.s8 %v2966_v33 }
 0x171   : > { %v4668_v24 = vpop.f32.mrb[53].mxu0  ;;  %v4733_v58 = vadd.f32 %v4732_v54, %v4731_v53  ;;  %v4734_v59 = vpop.f32.mrb[54].mxu1 }
 0x172   : > { %v4669_v61 = vadd.f32 %v4668_v24, %v4667_v22  ;;  %v4670_v63 = vpop.f32.mrb[54].mxu0  ;;  %v4735_v1 = vpop.f32.mrb[55].mxu1 }
 0x173   : > { %v4671_v2 = vpop.f32.mrb[55].mxu0  ;;  %v4736_v3 = vadd.f32 %v4735_v1, %v4734_v59 }
 0x174   : > { %v2604_v4 = vadd.f32 %v4669_v61, %v5716_v43  ;;  %v4672_v25 = vadd.f32 %v4671_v2, %v4670_v63 }
 0x176   : > { %v2607_v5 = vadd.f32 %v4672_v25, %v5719_v45  ;;  %v2701_v27 = vadd.f32 %v4733_v58, %v2604_v4 }
 0x177   : > { %v4737_v6 = vpop.f32.mrb[56].mxu1 }
 0x178   : > { %v4738_v8 = vpop.f32.mrb[57].mxu1  ;;  %v2704_v38 = vadd.f32 %v4736_v3, %v2607_v5 }
 0x179   : > { %v4739_v10 = vadd.f32 %v4738_v8, %v4737_v6  ;;  %v4740_v40 = vpop.f32.mrb[58].mxu1 }
 0x17a   : > { %v4673_v13 = vpop.f32.mrb[56].mxu0  ;;  %v4741_v16 = vpop.f32.mrb[59].mxu1 }
 0x17b   : > { %v4674_v17 = vpop.f32.mrb[57].mxu0  ;;  %v4742_v18 = vadd.f32 %v4741_v16, %v4740_v40 }
 0x17c   : > { %v4675_v19 = vadd.f32 %v4674_v17, %v4673_v13  ;;  %v4676_v20 = vpop.f32.mrb[58].mxu0 }
 0x17d   : > { %v4677_v21 = vpop.f32.mrb[59].mxu0 }
 0x17e   : > { %v2612_v23 = vadd.f32 %v4675_v19, %v5722_v62  ;;  %v4678_v26 = vadd.f32 %v4677_v21, %v4676_v20 }
 0x180   : > { %v2615_v43 = vadd.f32 %v4678_v26, %v5725_v0  ;;  %v5765_v28 = vadd.f32 %v4739_v10, %v2612_v23  ;;  %v2969_v0 = vshrl.u32 %v2968_v34, 7 }
 0x181   : > { %v4743_v45 = vpop.f32.mrb[60].mxu1 }
 0x182   : > { %v5767_v51 = vadd.f32 %v4742_v18, %v2615_v43  ;;  %v4744_v55 = vpop.f32.mrb[61].mxu1  ;;  %v5773_v24 = vsub.s32 %v2967_v48, %v2969_v0 }
 0x183   : > { %v4745_v29 = vadd.f32 %v4744_v55, %v4743_v45  ;;  %v4746_v57 = vpop.f32.mrb[62].mxu1 }
 0x184   : > { %v4679_v36 = vpop.f32.mrb[60].mxu0  ;;  %v4747_v11 = vpop.f32.mrb[63].mxu1 }
 0x185   : > { %v4680_v39 = vpop.f32.mrb[61].mxu0  ;;  %v4748_v42 = vadd.f32 %v4747_v11, %v4746_v57 }
 0x186   : > { %v4681_v44 = vadd.f32 %v4680_v39, %v4679_v36  ;;  %v4682_v62 = vpop.f32.mrb[62].mxu0 }
 0x187   : > { %v4683_v47 = vpop.f32.mrb[63].mxu0 }
 0x188   : > { %v2620_v49 = vadd.f32 %v4681_v44, %v5728_v15  ;;  %v4684_v7 = vadd.f32 %v4683_v47, %v4682_v62 }
 0x18a   : > { %v4791_v50 = vpop.f32.mrb[64].mxu1  ;;  %v2623_v9 = vadd.f32 %v4684_v7, %v5731_v46  ;;  %v5771_v54 = vadd.f32 %v4745_v29, %v2620_v49 }
 0x18b   : > { %v2798_v53 = vadd.f32 %v4791_v50, %v2701_v27  ;;  %v2789_v22 = vpop.f32.mrb[65].mxu1 }
 0x18c   : > { %v2790_v58 = vadd.f32 %v2789_v22, %v2693_v37  ;;  %v4792_v59 = vpop.f32.mrb[66].mxu1  ;;  %v4783_v61 = vpop.f32.mrb[64].mxu0  ;;  %v5777_v3 = vadd.f32 %v4748_v42, %v2623_v9 }
 0x18d   : > { %vm2830_vm6 = vcmp.ge.f32.partialorder %v2798_v53, 0.0  ;;  %v2846_v63 = vmul.f32 0.1, %v2798_v53  ;;  %v5775_v1 = vadd.f32 %v4792_v59, %v2704_v38  ;;  %v2792_v2 = vpop.f32.mrb[67].mxu1  ;;  %v2766_v15 = vadd.f32 %v4783_v61, %v5741_v56  ;;  %v2757_v4 = vpop.f32.mrb[65].mxu0 }
 0x18e   : > { %vm2828_vm7 = vcmp.ge.f32.partialorder %v2790_v58, 0.0  ;;  %v2844_v46 = vmul.f32 0.1, %v2790_v58  ;;  %v5781_v25 = vadd.f32 %v2792_v2, %v5759_v52  ;;  %v2758_v37 = vadd.f32 %v2757_v4, %v5735_v35  ;;  %v4784_v27 = vpop.f32.mrb[66].mxu0 }
 0x18f   : > { %v5783_v5 = vsel %vm2830_vm6, %v2798_v53, %v2846_v63  ;;  %v5787_v6 = vmul.f32 0.1, %v5775_v1  ;;  %vm2822_vm8 = vcmp.ge.f32.partialorder %v2766_v15, 0.0  ;;  %v2838_v8 = vmul.f32 0.1, %v2766_v15  ;;  %v5793_v10 = vpop.f32.mrb[67].mxu0 }
 0x190   : > { %v3134_v38 = vcombine.high %v5783_v5, %v5783_v5  ;;  %v3141_v56 = vrot.slane %v5783_v5, %v5773_v24  ;;  %vm2820_vm9 = vcmp.ge.f32.partialorder %v2758_v37, 0.0  ;;  %v2836_v52 = vmul.f32 0.1, %v2758_v37 }
 0x191   : > { %v5795_v40 = vsel %vm2828_vm7, %v2790_v58, %v2844_v46  ;;  %v5798_v35 = vadd.f32 %v4784_v27, %v5743_v60  ;;  %v5800_v13 = vsel %vm2822_vm8, %v2766_v15, %v2838_v8  ;;  %vm2831_vm10 = vcmp.ge.f32.partialorder %v5775_v1, 0.0 }
 0x192   : > { %v3148_v16 = vrot.slane %v3134_v38, %v5773_v24  ;;  %v3149_v17 = vcombine.high %v3141_v56, %v3141_v56  ;;  %v4339_v18 = vrot.slane %v3141_v56, 9  ;;  %v5803_v19 = vpop.f32.mrb[68].mxu1  ;;  %v2998_v20 = vcombine.high %v5800_v13, %v5800_v13 }
 0x193   : > { %v3005_v21 = vrot.slane %v5800_v13, %v5773_v24  ;;  %v5809_v23 = vsel %vm2820_vm9, %v2758_v37, %v2836_v52  ;;  %v3100_v60 = vcombine.high %v5795_v40, %v5795_v40  ;;  %v5813_v26 = vpop.f32.mrb[69].mxu1  ;;  %v3107_v4 = vrot.slane %v5795_v40, %v5773_v24 }
 0x194   : > { %v3150_v43 = vcombine.high %v3148_v16, %v3148_v16  ;;  %v4340_v45 = vrot.slane %v3149_v17, 9  ;;  %v4341_v55 = vrot.slane %v3148_v16, 9  ;;  %v3532_v29 = vmax.f32 %v3141_v56, %v4339_v18  ;;  %v5816_v57 = vpop.f32.mrb[70].mxu1  ;;  %v5821_v11 = vpop.f32.mrb[68].mxu0 }
 0x195   : > { %v3012_v31 = vrot.slane %v2998_v20, %v5773_v24  ;;  %v3013_v33 = vcombine.high %v3005_v21, %v3005_v21  ;;  %v4307_v34 = vrot.slane %v3005_v21, 9  ;;  %v2964_v36 = vcombine.high %v5809_v23, %v5809_v23  ;;  %v5823_v39 = vpop.f32.mrb[71].mxu1  ;;  %v5827_v48 = vpop.f32.mrb[69].mxu0 }
 0x196   : > { %6043 = vst [vmem:[#allocation3_spill] sm:$0xff] %v5823_v39  ;;  %v4342_v42 = vrot.slane %v3150_v43, 9  ;;  %v3533_v44 = vmax.f32 %v3149_v17, %v4340_v45  ;;  %v3534_v62 = vmax.f32 %v3148_v16, %v4341_v55  ;;  %v2971_v47 = vrot.slane %v5809_v23, %v5773_v24  ;;  %v5835_v9 = vpop.f32.mrb[70].mxu0 }
 0x197   : > { %v3014_v0 = vcombine.high %v3012_v31, %v3012_v31  ;;  %v4308_v49 = vrot.slane %v3013_v33, 9  ;;  %v4309_v7 = vrot.slane %v3012_v31, 9  ;;  %v3500_v50 = vmax.f32 %v3005_v21, %v4307_v34  ;;  %v5838_v61 = vpop.f32.mrb[71].mxu0 }
 0x198   : > { %v3535_v53 = vmax.f32 %v3150_v43, %v4342_v42  ;;  %v2978_v22 = vrot.slane %v2964_v36, %v5773_v24  ;;  %v2979_v58 = vcombine.high %v2971_v47, %v2971_v47  ;;  %v4299_v59 = vrot.slane %v2971_v47, 9 }
 0x199   : > { %v4310_v63 = vrot.slane %v3014_v0, 9  ;;  %v3501_v2 = vmax.f32 %v3013_v33, %v4308_v49  ;;  %v3502_v15 = vmax.f32 %v3012_v31, %v4309_v7  ;;  %v3114_v56 = vrot.slane %v3100_v60, %v5773_v24 }
 0x19a   : > { %v2980_v46 = vcombine.high %v2978_v22, %v2978_v22  ;;  %v4300_v37 = vrot.slane %v2979_v58, 9  ;;  %v4301_v27 = vrot.slane %v2978_v22, 9  ;;  %v3492_v8 = vmax.f32 %v2971_v47, %v4299_v59 }
 0x19b   : > { %v3503_v38 = vmax.f32 %v3014_v0, %v4310_v63  ;;  %v3115_v52 = vcombine.high %v3107_v4, %v3107_v4  ;;  %v4331_v16 = vrot.slane %v3107_v4, 9  ;;  %v3116_v43 = vcombine.high %v3114_v56, %v3114_v56 }
 0x19c   : > { %v4302_v17 = vrot.slane %v2980_v46, 9  ;;  %v3493_v18 = vmax.f32 %v2979_v58, %v4300_v37  ;;  %v3494_v20 = vmax.f32 %v2978_v22, %v4301_v27  ;;  %v3556_v21 = vmax.f32 %v3492_v8, %v3500_v50 }
 0x19d   : > { %v4332_v45 = vrot.slane %v3115_v52, 9  ;;  %v4333_v55 = vrot.slane %v3114_v56, 9  ;;  %v3524_v31 = vmax.f32 %v3107_v4, %v4331_v16  ;;  %v4334_v60 = vrot.slane %v3116_v43, 9 }
 0x19e   : > { %v3495_v33 = vmax.f32 %v2980_v46, %v4302_v17  ;;  %v3557_v34 = vmax.f32 %v3493_v18, %v3501_v2  ;;  %v3558_v36 = vmax.f32 %v3494_v20, %v3502_v15  ;;  %v4414_v42 = vpack.c.bf16 %v3556_v21, %v3556_v21 }
 0x19f   : > { %v3525_v47 = vmax.f32 %v3115_v52, %v4332_v45  ;;  %v3526_v0 = vmax.f32 %v3114_v56, %v4333_v55  ;;  %v3572_v49 = vmax.f32 %v3524_v31, %v3532_v29  ;;  %v3527_v50 = vmax.f32 %v3116_v43, %v4334_v60 }
 0x1a0   : > { %v3559_v7 = vmax.f32 %v3495_v33, %v3503_v38  ;;  %v4415_v59 = vpack.c.bf16 %v3557_v34, %v3557_v34  ;;  %v4416_v58 = vpack.c.bf16 %v3558_v36, %v3558_v36  ;;  %v3716_v22 = vunpack.c.l.b16 %v4414_v42 }
 0x1a1   : > { %v3573_v63 = vmax.f32 %v3525_v47, %v3533_v44  ;;  %v3574_v37 = vmax.f32 %v3526_v0, %v3534_v62  ;;  %v4430_v27 = vpack.c.bf16 %v3572_v49, %v3572_v49  ;;  %vm2823_vm13 = vcmp.ge.f32.partialorder %v5798_v35, 0.0 }
 0x1a2   : > { %v4417_v8 = vpack.c.bf16 %v3559_v7, %v3559_v7  ;;  %v3717_v39 = vunpack.c.l.b16 %v4415_v59  ;;  %v3718_v4 = vunpack.c.l.b16 %v4416_v58  ;;  %v3575_v2 = vmax.f32 %v3527_v50, %v3535_v53 }
 0x1a3   : > { %v4431_v15 = vpack.c.bf16 %v3573_v63, %v3573_v63  ;;  %v4432_v46 = vpack.c.bf16 %v3574_v37, %v3574_v37  ;;  %v3732_v56 = vunpack.c.l.b16 %v4430_v27  ;;  %v2839_v16 = vmul.f32 0.1, %v5798_v35 }
 0x1a4   : > { %v3719_v29 = vunpack.c.l.b16 %v4417_v8  ;;  %v3748_v52 = vrot.slane %v3717_v39, 7  ;;  %v3751_v38 = vrot.slane %v3718_v4, 6  ;;  %v4433_v17 = vpack.c.bf16 %v3575_v2, %v3575_v2 }
 0x1a5   : > { %v3733_v44 = vunpack.c.l.b16 %v4431_v15  ;;  %v3734_v62 = vunpack.c.l.b16 %v4432_v46  ;;  %v2863_v53 = vsel %vm2831_vm10, %v5775_v1, %v5787_v6  ;;  %v2855_v20 = vsel %vm2823_vm13, %v5798_v35, %v2839_v16 }
 0x1a6   : > { %v3750_v39 = vsel %vm3749_vm11, %v3748_v52, %v3716_v22  ;;  %v3754_v18 = vrot.slane %v3719_v29, 5  ;;  %v4474_v21 = vpack.c.bf16 %v2863_v53, %v5783_v5  ;;  %v3735_v45 = vunpack.c.l.b16 %v4433_v17 }
 0x1a7   : > { %v3753_v43 = vsel %vm3752_vm12, %v3751_v38, %v3750_v39  ;;  %v3783_v55 = vrot.slane %v3733_v44, 7  ;;  %v3785_v31 = vrot.slane %v3734_v62, 6  ;;  %v4454_v33 = vpack.c.bf16 %v2855_v20, %v5800_v13 }
 0x1a8   : > { %v3015_v34 = vcombine.high %v2855_v20, %v2855_v20  ;;  %v3022_v1 = vrot.slane %v2855_v20, %v5773_v24  ;;  %4490 = vst [vmem:[%s5854_s7 + $0x28] sm:$0xff] %v4474_v21   ;;  %v3151_v6 = vcombine.high %v2863_v53, %v2863_v53  ;;  %v3787_v42 = vrot.slane %v3735_v45, 5 }
 0x1a9   : > { %v3784_v36 = vsel %vm3749_vm11, %v3783_v55, %v3732_v56  ;;  %v3158_v35 = vrot.slane %v2863_v53, %v5773_v24  ;;  %v2761_v5 = vadd.f32 %v5793_v10, %v5737_v41  ;;  %4486 = vst [vmem:[%s5854_s7 + $0x8] sm:$0xff] %v4454_v33   ;;  %v5878_v52 = vsel %vm3755_vm14, %v3754_v18, %v3753_v43 }
 0x1aa   : > { %v3786_v60 = vsel %vm3752_vm12, %v3785_v31, %v3784_v36  ;;  %v3029_v47 = vrot.slane %v3015_v34, %v5773_v24  ;;  %v3030_v0 = vcombine.high %v3022_v1, %v3022_v1  ;;  %v4311_v13 = vrot.slane %v3022_v1, 9 }
 0x1ab   : > { %v3165_v49 = vrot.slane %v3151_v6, %v5773_v24  ;;  %v3166_v7 = vcombine.high %v3158_v35, %v3158_v35  ;;  %v4343_v59 = vrot.slane %v3158_v35, 9  ;;  %vm2821_vm15 = vcmp.ge.f32.partialorder %v2761_v5, 0.0 }
 0x1ac   : > { %v3031_v58 = vcombine.high %v3029_v47, %v3029_v47  ;;  %v4312_v22 = vrot.slane %v3030_v0, 9  ;;  %v4313_v50 = vrot.slane %v3029_v47, 9  ;;  %v3504_v63 = vmax.f32 %v3022_v1, %v4311_v13 }
 0x1ad   : > { %v3167_v37 = vcombine.high %v3165_v49, %v3165_v49  ;;  %v4344_v27 = vrot.slane %v3166_v7, 9  ;;  %v4345_v8 = vrot.slane %v3165_v49, 9  ;;  %v3536_v41 = vmax.f32 %v3158_v35, %v4343_v59 }
 0x1ae   : > { %v4314_v10 = vrot.slane %v3031_v58, 9  ;;  %v3505_v4 = vmax.f32 %v3030_v0, %v4312_v22  ;;  %v3506_v2 = vmax.f32 %v3029_v47, %v4313_v50  ;;  %v2837_v15 = vmul.f32 0.1, %v2761_v5 }
 0x1af   : > { %v4346_v46 = vrot.slane %v3167_v37, 9  ;;  %v3537_v56 = vmax.f32 %v3166_v7, %v4344_v27  ;;  %v3538_v29 = vmax.f32 %v3165_v49, %v4345_v8  ;;  %vm2829_vm0 = vcmp.ge.f32.partialorder %v5781_v25, 0.0 }
 0x1b0   : > { %v3507_v38 = vmax.f32 %v3031_v58, %v4314_v10  ;;  %v2853_v16 = vsel %vm2821_vm15, %v2761_v5, %v2837_v15  ;;  %v2845_v17 = vmul.f32 0.1, %v5781_v25  ;;  %v5890_v18 = vsel %vm3755_vm14, %v3787_v42, %v3786_v60 }
 0x1b1   : > { %v5883_v44 = vmax.f32 %v3167_v37, %v4346_v46  ;;  %v4449_v62 = vpack.c.bf16 %v2853_v16, %v5809_v23  ;;  %v2981_v53 = vcombine.high %v2853_v16, %v2853_v16  ;;  %v2988_v39 = vrot.slane %v2853_v16, %v5773_v24 }
 0x1b2   : > { %v2861_v20 = vsel %vm2829_vm0, %v5781_v25, %v2845_v17  ;;  %v2782_v21 = vadd.f32 %v5821_v11, %v5753_v30  ;;  %v5896_v43 = vadd.f32 %v5803_v19, %v5771_v54 }
 0x1b3   : > { %4450 = vst [vmem:[%s5854_s7] sm:$0xff] %v4449_v62   ;;  %v2995_v23 = vrot.slane %v2981_v53, %v5773_v24  ;;  %v2996_v45 = vcombine.high %v2988_v39, %v2988_v39  ;;  %v4303_v55 = vrot.slane %v2988_v39, 9  ;;  %v4469_v31 = vpack.c.bf16 %v2861_v20, %v5795_v40 }
 0x1b4   : > { %v3117_v25 = vcombine.high %v2861_v20, %v2861_v20  ;;  %v3124_v33 = vrot.slane %v2861_v20, %v5773_v24  ;;  %vm2826_vm2 = vcmp.ge.f32.partialorder %v2782_v21, 0.0  ;;  %v2842_v34 = vmul.f32 0.1, %v2782_v21 }
 0x1b5   : > { %v2997_v30 = vcombine.high %v2995_v23, %v2995_v23  ;;  %v4304_v54 = vrot.slane %v2996_v45, 9  ;;  %v4305_v19 = vrot.slane %v2995_v23, 9  ;;  %v3496_v11 = vmax.f32 %v2988_v39, %v4303_v55  ;;  %4489 = vst [vmem:[%s5854_s7 + $0x20] sm:$0xff] %v4469_v31  }
 0x1b6   : > { %v3131_v40 = vrot.slane %v3117_v25, %v5773_v24  ;;  %v3132_v1 = vcombine.high %v3124_v33, %v3124_v33  ;;  %v4335_v6 = vrot.slane %v3124_v33, 9  ;;  %v5910_v36 = vsel %vm2826_vm2, %v2782_v21, %v2842_v34 }
 0x1b7   : > { %v4306_v42 = vrot.slane %v2997_v30, 9  ;;  %v3497_v35 = vmax.f32 %v2996_v45, %v4304_v54  ;;  %v3498_v5 = vmax.f32 %v2995_v23, %v4305_v19  ;;  %v3560_v60 = vmax.f32 %v3496_v11, %v3504_v63 }
 0x1b8   : > { %v3133_v47 = vcombine.high %v3131_v40, %v3131_v40  ;;  %v4336_v0 = vrot.slane %v3132_v1, 9  ;;  %v4337_v13 = vrot.slane %v3131_v40, 9  ;;  %v3528_v49 = vmax.f32 %v3124_v33, %v4335_v6 }
 0x1b9   : > { %v3499_v7 = vmax.f32 %v2997_v30, %v4306_v42  ;;  %v3561_v59 = vmax.f32 %v3497_v35, %v3505_v4  ;;  %v3562_v58 = vmax.f32 %v3498_v5, %v3506_v2  ;;  %v4418_v22 = vpack.c.bf16 %v3560_v60, %v3560_v60 }
 0x1ba   : > { %v4338_v50 = vrot.slane %v3133_v47, 9  ;;  %v3529_v37 = vmax.f32 %v3132_v1, %v4336_v0  ;;  %v3530_v27 = vmax.f32 %v3131_v40, %v4337_v13  ;;  %v3576_v8 = vmax.f32 %v3528_v49, %v3536_v41 }
 0x1bb   : > { %v3563_v10 = vmax.f32 %v3499_v7, %v3507_v38  ;;  %v4419_v63 = vpack.c.bf16 %v3561_v59, %v3561_v59  ;;  %v4420_v15 = vpack.c.bf16 %v3562_v58, %v3562_v58  ;;  %v3720_v46 = vunpack.c.l.b16 %v4418_v22 }
 0x1bc   : > { %v3531_v16 = vmax.f32 %v3133_v47, %v4338_v50  ;;  %v3577_v17 = vmax.f32 %v3529_v37, %v3537_v56  ;;  %v3578_v62 = vmax.f32 %v3530_v27, %v3538_v29  ;;  %v4434_v53 = vpack.c.bf16 %v3576_v8, %v3576_v8 }
 0x1bd   : > { %v4421_v39 = vpack.c.bf16 %v3563_v10, %v3563_v10  ;;  %v3721_v20 = vunpack.c.l.b16 %v4419_v63  ;;  %v3722_v21 = vunpack.c.l.b16 %v4420_v15  ;;  %v3757_v4 = vrot.slane %v3720_v46, 4 }
 0x1be   : > { %v3579_v2 = vmax.f32 %v3531_v16, %v5883_v44  ;;  %v4435_v23 = vpack.c.bf16 %v3577_v17, %v3577_v17  ;;  %v4436_v45 = vpack.c.bf16 %v3578_v62, %v3578_v62  ;;  %v3736_v55 = vunpack.c.l.b16 %v4434_v53 }
 0x1bf   : > { %v3723_v31 = vunpack.c.l.b16 %v4421_v39  ;;  %v3759_v41 = vsel %vm3758_vm1, %v3757_v4, %v5878_v52  ;;  %v3760_v38 = vrot.slane %v3721_v20, 3  ;;  %v3763_v25 = vrot.slane %v3722_v21, 2 }
 0x1c0   : > { %v4437_v56 = vpack.c.bf16 %v3579_v2, %v3579_v2  ;;  %v3737_v29 = vunpack.c.l.b16 %v4435_v23  ;;  %v3738_v33 = vunpack.c.l.b16 %v4436_v45  ;;  %v3789_v34 = vrot.slane %v3736_v55, 4 }
 0x1c1   : > { %v3762_v30 = vsel %vm3761_vm3, %v3760_v38, %v3759_v41  ;;  %v3766_v54 = vrot.slane %v3723_v31, 1  ;;  %v3066_v44 = vcombine.high %v5910_v36, %v5910_v36  ;;  %v3073_v19 = vrot.slane %v5910_v36, %v5773_v24 }
 0x1c2   : > { %v3765_v11 = vsel %vm3764_vm4, %v3763_v25, %v3762_v30  ;;  %v3739_v40 = vunpack.c.l.b16 %v4437_v56  ;;  %v3790_v52 = vsel %vm3758_vm1, %v3789_v34, %v5890_v18  ;;  %v3791_v1 = vrot.slane %v3737_v29, 3 }
 0x1c3   : > { %v3768_v6 = vsel %vm3767_vm5, %v3766_v54, %v3765_v11  ;;  %v3793_v42 = vrot.slane %v3738_v33, 2  ;;  %v3080_v35 = vrot.slane %v3066_v44, %v5773_v24  ;;  %v3081_v5 = vcombine.high %v3073_v19, %v3073_v19 }
 0x1c4   : > { %v3811_v60 = vpack.c.b16 %v3768_v6, %v3768_v6  ;;  %v3792_v47 = vsel %vm3761_vm3, %v3791_v1, %v3790_v52  ;;  %v3795_v0 = vrot.slane %v3739_v40, 1  ;;  %v4323_v13 = vrot.slane %v3073_v19, 9 }
 0x1c5   : > { %v3794_v18 = vsel %vm3764_vm4, %v3793_v42, %v3792_v47  ;;  %v3082_v49 = vcombine.high %v3080_v35, %v3080_v35  ;;  %v4324_v7 = vrot.slane %v3081_v5, 9  ;;  %v4325_v59 = vrot.slane %v3080_v35, 9 }
 0x1c6   : > { %3819 = vst [vmem:[%s5931_s13] sm:$0xf] %v3811_v60  ;;  %v3796_v58 = vsel %vm3767_vm5, %v3795_v0, %v3794_v18  ;;  %vm2834_vm6 = vcmp.ge.f32.partialorder %v5896_v43, 0.0  ;;  %v2850_v22 = vmul.f32 0.1, %v5896_v43  ;;  %v3516_v27 = vmax.f32 %v3073_v19, %v4323_v13 }
 0x1c7   : > { %v3813_v50 = vpack.c.b16 %v3796_v58, %v3796_v58  ;;  %v4326_v37 = vrot.slane %v3082_v49, 9  ;;  %v3517_v8 = vmax.f32 %v3081_v5, %v4324_v7  ;;  %v2774_v63 = vadd.f32 %v5827_v48, %v5747_v12 }
 0x1c8   : > { %v5942_v10 = vsel %vm2834_vm6, %v5896_v43, %v2850_v22  ;;  %v2806_v15 = vadd.f32 %v5813_v26, %v5765_v28  ;;  %v2785_v46 = vadd.f32 %v5835_v9, %v5755_v32  ;;  %v3518_v16 = vmax.f32 %v3080_v35, %v4325_v59 }
 0x1c9   : > { %3821 = vst [vmem:[%s5931_s13 + $0x8] sm:$0xf] %v3813_v50  ;;  %v3202_v17 = vcombine.high %v5942_v10, %v5942_v10  ;;  %v3209_v62 = vrot.slane %v5942_v10, %v5773_v24  ;;  %v5957_v43 = vadd.f32 %v5816_v57, %v5777_v3  ;;  %vm2824_vm7 = vcmp.ge.f32.partialorder %v2774_v63, 0.0 }
 0x1ca   : > { %v2840_v12 = vmul.f32 0.1, %v2774_v63  ;;  %vm2832_vm8 = vcmp.ge.f32.partialorder %v2806_v15, 0.0  ;;  %v2848_v48 = vmul.f32 0.1, %v2806_v15  ;;  %v3519_v28 = vmax.f32 %v3082_v49, %v4326_v37 }
 0x1cb   : > { %v3216_v26 = vrot.slane %v3202_v17, %v5773_v24  ;;  %v3217_v32 = vcombine.high %v3209_v62, %v3209_v62  ;;  %v4355_v9 = vrot.slane %v3209_v62, 9  ;;  %vm2827_vm9 = vcmp.ge.f32.partialorder %v2785_v46, 0.0 }
 0x1cc   : > { %v5960_v53 = vsel %vm2824_vm7, %v2774_v63, %v2840_v12  ;;  %v5962_v39 = vsel %vm2832_vm8, %v2806_v15, %v2848_v48  ;;  %v2843_v20 = vmul.f32 0.1, %v2785_v46  ;;  %vm2835_vm10 = vcmp.ge.f32.partialorder %v5957_v43, 0.0 }
 0x1cd   : > { %v3218_v21 = vcombine.high %v3216_v26, %v3216_v26  ;;  %v4356_v4 = vrot.slane %v3217_v32, 9  ;;  %v4357_v2 = vrot.slane %v3216_v26, 9  ;;  %v3548_v3 = vmax.f32 %v3209_v62, %v4355_v9 }
 0x1ce   : > { %v3032_v57 = vcombine.high %v5960_v53, %v5960_v53  ;;  %v3039_v23 = vrot.slane %v5960_v53, %v5773_v24  ;;  %v3168_v45 = vcombine.high %v5962_v39, %v5962_v39  ;;  %v3175_v55 = vrot.slane %v5962_v39, %v5773_v24 }
 0x1cf   : > { %v4358_v31 = vrot.slane %v3218_v21, 9  ;;  %v3549_v41 = vmax.f32 %v3217_v32, %v4356_v4  ;;  %v3550_v38 = vmax.f32 %v3216_v26, %v4357_v2  ;;  %v2859_v25 = vsel %vm2827_vm9, %v2785_v46, %v2843_v20 }
 0x1d0   : > { %v3046_v56 = vrot.slane %v3032_v57, %v5773_v24  ;;  %v3047_v29 = vcombine.high %v3039_v23, %v3039_v23  ;;  %v4315_v33 = vrot.slane %v3039_v23, 9  ;;  %v3182_v34 = vrot.slane %v3168_v45, %v5773_v24 }
 0x1d1   : > { %v3551_v30 = vmax.f32 %v3218_v21, %v4358_v31  ;;  %v3183_v54 = vcombine.high %v3175_v55, %v3175_v55  ;;  %v4347_v44 = vrot.slane %v3175_v55, 9  ;;  %v4464_v19 = vpack.c.bf16 %v2859_v25, %v5910_v36 }
 0x1d2   : > { %v3048_v11 = vcombine.high %v3046_v56, %v3046_v56  ;;  %v4316_v40 = vrot.slane %v3047_v29, 9  ;;  %v4317_v52 = vrot.slane %v3046_v56, 9  ;;  %v3508_v1 = vmax.f32 %v3039_v23, %v4315_v33 }
 0x1d3   : > { %v3184_v6 = vcombine.high %v3182_v34, %v3182_v34  ;;  %v4348_v42 = vrot.slane %v3183_v54, 9  ;;  %v4349_v35 = vrot.slane %v3182_v34, 9  ;;  %v3540_v5 = vmax.f32 %v3175_v55, %v4347_v44  ;;  %4488 = vst [vmem:[%s5854_s7 + $0x18] sm:$0xff] %v4464_v19  }
 0x1d4   : > { %v4318_v60 = vrot.slane %v3048_v11, 9  ;;  %v3509_v47 = vmax.f32 %v3047_v29, %v4316_v40  ;;  %v3510_v0 = vmax.f32 %v3046_v56, %v4317_v52  ;;  %v3564_v13 = vmax.f32 %v3508_v1, %v3516_v27 }
 0x1d5   : > { %v4350_v18 = vrot.slane %v3184_v6, 9  ;;  %v3541_v49 = vmax.f32 %v3183_v54, %v4348_v42  ;;  %v3542_v7 = vmax.f32 %v3182_v34, %v4349_v35  ;;  %v3580_v59 = vmax.f32 %v3540_v5, %v3548_v3  ;;  %v6046_v42 = vld [vmem:[#allocation3_spill] sm:$0xff] }
 0x1d6   : > { %v3511_v58 = vmax.f32 %v3048_v11, %v4318_v60  ;;  %v3565_v22 = vmax.f32 %v3509_v47, %v3517_v8  ;;  %v3566_v36 = vmax.f32 %v3510_v0, %v3518_v16  ;;  %v4422_v50 = vpack.c.bf16 %v3564_v13, %v3564_v13 }
 0x1d7   : > { %v3543_v37 = vmax.f32 %v3184_v6, %v4350_v18  ;;  %v3581_v63 = vmax.f32 %v3541_v49, %v3549_v41  ;;  %v3582_v15 = vmax.f32 %v3542_v7, %v3550_v38  ;;  %v4438_v46 = vpack.c.bf16 %v3580_v59, %v3580_v59 }
 0x1d8   : > { %v3567_v17 = vmax.f32 %v3511_v58, %v3519_v28  ;;  %v4423_v62 = vpack.c.bf16 %v3565_v22, %v3565_v22  ;;  %v4424_v12 = vpack.c.bf16 %v3566_v36, %v3566_v36  ;;  %v3724_v48 = vunpack.c.l.b16 %v4422_v50 }
 0x1d9   : > { %v3583_v26 = vmax.f32 %v3543_v37, %v3551_v30  ;;  %v4439_v32 = vpack.c.bf16 %v3581_v63, %v3581_v63  ;;  %v4440_v9 = vpack.c.bf16 %v3582_v15, %v3582_v15  ;;  %v3740_v27 = vunpack.c.l.b16 %v4438_v46 }
 0x1da   : > { %v4425_v20 = vpack.c.bf16 %v3567_v17, %v3567_v17  ;;  %v3725_v21 = vunpack.c.l.b16 %v4423_v62  ;;  %v3726_v4 = vunpack.c.l.b16 %v4424_v12  ;;  %v3083_v2 = vcombine.high %v2859_v25, %v2859_v25 }
 0x1db   : > { %v4441_v3 = vpack.c.bf16 %v3583_v26, %v3583_v26  ;;  %v3741_v8 = vunpack.c.l.b16 %v4439_v32  ;;  %v3742_v16 = vunpack.c.l.b16 %v4440_v9  ;;  %v3090_v57 = vrot.slane %v2859_v25, %v5773_v24 }
 0x1dc   : > { %v3727_v23 = vunpack.c.l.b16 %v4425_v20  ;;  %v3769_v45 = vrot.slane %v3725_v21, 7  ;;  %v3771_v55 = vrot.slane %v3726_v4, 6  ;;  %v3097_v28 = vrot.slane %v3083_v2, %v5773_v24 }
 0x1dd   : > { %v3743_v31 = vunpack.c.l.b16 %v4441_v3  ;;  %v3797_v41 = vrot.slane %v3741_v8, 7  ;;  %v3799_v38 = vrot.slane %v3742_v16, 6  ;;  %v3098_v56 = vcombine.high %v3090_v57, %v3090_v57 }
 0x1de   : > { %v3770_v29 = vsel %vm3749_vm11, %v3769_v45, %v3724_v48  ;;  %v3773_v33 = vrot.slane %v3727_v23, 5  ;;  %v3099_v44 = vcombine.high %v3097_v28, %v3097_v28  ;;  %v4327_v19 = vrot.slane %v3090_v57, 9 }
 0x1df   : > { %v3772_v34 = vsel %vm3752_vm12, %v3771_v55, %v3770_v29  ;;  %v3798_v30 = vsel %vm3749_vm11, %v3797_v41, %v3740_v27  ;;  %v3801_v54 = vrot.slane %v3743_v31, 5  ;;  %v4328_v11 = vrot.slane %v3098_v56, 9 }
 0x1e0   : > { %v3800_v25 = vsel %vm3752_vm12, %v3799_v38, %v3798_v30  ;;  %v2851_v40 = vmul.f32 0.1, %v5957_v43  ;;  %v2777_v52 = vadd.f32 %v5838_v61, %v5749_v14  ;;  %v5987_v1 = vsel %vm3755_vm14, %v3773_v33, %v3772_v34 }
 0x1e1   : > { %v4329_v6 = vrot.slane %v3097_v28, 9  ;;  %v2809_v35 = vadd.f32 %v6046_v42, %v5767_v51  ;;  %v5992_v5 = vsel %vm3755_vm14, %v3801_v54, %v3800_v25  ;;  %v4330_v60 = vrot.slane %v3099_v44, 9 }
 0x1e2   : > { %v2867_v47 = vsel %vm2835_vm10, %v5957_v43, %v2851_v40  ;;  %vm2825_vm11 = vcmp.ge.f32.partialorder %v2777_v52, 0.0  ;;  %v2841_v0 = vmul.f32 0.1, %v2777_v52  ;;  %v3520_v61 = vmax.f32 %v3090_v57, %v4327_v19 }
 0x1e3   : > { %v4484_v13 = vpack.c.bf16 %v2867_v47, %v5942_v10  ;;  %v3219_v18 = vcombine.high %v2867_v47, %v2867_v47  ;;  %v3226_v14 = vrot.slane %v2867_v47, %v5773_v24  ;;  %vm2833_vm12 = vcmp.ge.f32.partialorder %v2809_v35, 0.0 }
 0x1e4   : > { %v3521_v49 = vmax.f32 %v3098_v56, %v4328_v11  ;;  %v2857_v7 = vsel %vm2825_vm11, %v2777_v52, %v2841_v0  ;;  %v2849_v59 = vmul.f32 0.1, %v2809_v35  ;;  %v3522_v36 = vmax.f32 %v3097_v28, %v4329_v6 }
 0x1e5   : > { %4492 = vst [vmem:[%s5854_s7 + $0x38] sm:$0xff] %v4484_v13   ;;  %v3233_v51 = vrot.slane %v3219_v18, %v5773_v24  ;;  %v3234_v58 = vcombine.high %v3226_v14, %v3226_v14  ;;  %v4359_v22 = vrot.slane %v3226_v14, 9  ;;  %v4459_v43 = vpack.c.bf16 %v2857_v7, %v5960_v53 }
 0x1e6   : > { %v3049_v50 = vcombine.high %v2857_v7, %v2857_v7  ;;  %v3056_v10 = vrot.slane %v2857_v7, %v5773_v24  ;;  %v2865_v37 = vsel %vm2833_vm12, %v2809_v35, %v2849_v59  ;;  %v3523_v63 = vmax.f32 %v3099_v44, %v4330_v60 }
 0x1e7   : > { %v3235_v15 = vcombine.high %v3233_v51, %v3233_v51  ;;  %v4360_v46 = vrot.slane %v3234_v58, 9  ;;  %v4361_v17 = vrot.slane %v3233_v51, 9  ;;  %4487 = vst [vmem:[%s5854_s7 + $0x10] sm:$0xff] %v4459_v43   ;;  %v4479_v26 = vpack.c.bf16 %v2865_v37, %v5962_v39 }
 0x1e8   : > { %v3063_v62 = vrot.slane %v3049_v50, %v5773_v24  ;;  %v3064_v12 = vcombine.high %v3056_v10, %v3056_v10  ;;  %v4319_v48 = vrot.slane %v3056_v10, 9  ;;  %v3552_v9 = vmax.f32 %v3226_v14, %v4359_v22 }
 0x1e9   : > { %v4362_v32 = vrot.slane %v3235_v15, 9  ;;  %v3553_v53 = vmax.f32 %v3234_v58, %v4360_v46  ;;  %v3185_v27 = vcombine.high %v2865_v37, %v2865_v37  ;;  %4491 = vst [vmem:[%s5854_s7 + $0x30] sm:$0xff] %v4479_v26   ;;  %v3554_v3 = vmax.f32 %v3233_v51, %v4361_v17 }
 0x1ea   : > { %v3065_v20 = vcombine.high %v3063_v62, %v3063_v62  ;;  %v4320_v21 = vrot.slane %v3064_v12, 9  ;;  %v4321_v4 = vrot.slane %v3063_v62, 9  ;;  %v3512_v2 = vmax.f32 %v3056_v10, %v4319_v48 }
 0x1eb   : > { %v3555_v8 = vmax.f32 %v3235_v15, %v4362_v32  ;;  %v3192_v16 = vrot.slane %v2865_v37, %v5773_v24  ;;  %v3199_v57 = vrot.slane %v3185_v27, %v5773_v24 }
 0x1ec   : > { %v4322_v23 = vrot.slane %v3065_v20, 9  ;;  %v3513_v45 = vmax.f32 %v3064_v12, %v4320_v21  ;;  %v3514_v55 = vmax.f32 %v3063_v62, %v4321_v4  ;;  %v3568_v28 = vmax.f32 %v3512_v2, %v3520_v61 }
 0x1ed   : > { %v3200_v39 = vcombine.high %v3192_v16, %v3192_v16  ;;  %v3201_v31 = vcombine.high %v3199_v57, %v3199_v57  ;;  %v4351_v41 = vrot.slane %v3192_v16, 9  ;;  %v4353_v38 = vrot.slane %v3199_v57, 9 }
 0x1ee   : > { %v3515_v56 = vmax.f32 %v3065_v20, %v4322_v23  ;;  %v3569_v29 = vmax.f32 %v3513_v45, %v3521_v49  ;;  %v3570_v33 = vmax.f32 %v3514_v55, %v3522_v36  ;;  %v4426_v34 = vpack.c.bf16 %v3568_v28, %v3568_v28 }
 0x1ef   : > { %v4352_v30 = vrot.slane %v3200_v39, 9  ;;  %v4354_v54 = vrot.slane %v3201_v31, 9  ;;  %v3544_v44 = vmax.f32 %v3192_v16, %v4351_v41  ;;  %v3546_v25 = vmax.f32 %v3199_v57, %v4353_v38 }
 0x1f0   : > { %v3571_v19 = vmax.f32 %v3515_v56, %v3523_v63  ;;  %v4427_v11 = vpack.c.bf16 %v3569_v29, %v3569_v29  ;;  %v4428_v40 = vpack.c.bf16 %v3570_v33, %v3570_v33  ;;  %v3728_v24 = vunpack.c.l.b16 %v4426_v34 }
 0x1f1   : > { %v3545_v52 = vmax.f32 %v3200_v39, %v4352_v30  ;;  %v3547_v6 = vmax.f32 %v3201_v31, %v4354_v54  ;;  %v3584_v42 = vmax.f32 %v3544_v44, %v3552_v9  ;;  %v3586_v35 = vmax.f32 %v3546_v25, %v3554_v3 }
 0x1f2   : > { %v4429_v60 = vpack.c.bf16 %v3571_v19, %v3571_v19  ;;  %v3729_v47 = vunpack.c.l.b16 %v4427_v11  ;;  %v3730_v0 = vunpack.c.l.b16 %v4428_v40  ;;  %v3775_v13 = vrot.slane %v3728_v24, 4 }
 0x1f3   : > { %v3585_v18 = vmax.f32 %v3545_v52, %v3553_v53  ;;  %v3587_v14 = vmax.f32 %v3547_v6, %v3555_v8  ;;  %v4442_v61 = vpack.c.bf16 %v3584_v42, %v3584_v42  ;;  %v4444_v49 = vpack.c.bf16 %v3586_v35, %v3586_v35 }
 0x1f4   : > { %v3731_v7 = vunpack.c.l.b16 %v4429_v60  ;;  %v3776_v59 = vsel %vm3758_vm1, %v3775_v13, %v5987_v1  ;;  %v3777_v51 = vrot.slane %v3729_v47, 3  ;;  %v3779_v58 = vrot.slane %v3730_v0, 2 }
 0x1f5   : > { %v4443_v22 = vpack.c.bf16 %v3585_v18, %v3585_v18  ;;  %v4445_v43 = vpack.c.bf16 %v3587_v14, %v3587_v14  ;;  %v3744_v36 = vunpack.c.l.b16 %v4442_v61  ;;  %v3746_v37 = vunpack.c.l.b16 %v4444_v49 }
 0x1f6   : > { %v3778_v50 = vsel %vm3761_vm3, %v3777_v51, %v3776_v59  ;;  %v3781_v10 = vrot.slane %v3731_v7, 1 }
 0x1f7   : > { %v3780_v63 = vsel %vm3764_vm4, %v3779_v58, %v3778_v50  ;;  %v3745_v15 = vunpack.c.l.b16 %v4443_v22  ;;  %v3747_v46 = vunpack.c.l.b16 %v4445_v43  ;;  %v3803_v17 = vrot.slane %v3744_v36, 4 }
 0x1f8   : > { %v3782_v62 = vsel %vm3767_vm5, %v3781_v10, %v3780_v63  ;;  %v3807_v26 = vrot.slane %v3746_v37, 2 }
 0x1f9   : > { %v3812_v12 = vpack.c.b16 %v3782_v62, %v3782_v62  ;;  %v3804_v1 = vsel %vm3758_vm1, %v3803_v17, %v5992_v5  ;;  %v3805_v48 = vrot.slane %v3745_v15, 3  ;;  %v3809_v9 = vrot.slane %v3747_v46, 1 }
 0x1fb   : > { %3820 = vst [vmem:[%s5931_s13 + $0x4] sm:$0xf] %v3812_v12  ;;  %v3806_v32 = vsel %vm3761_vm3, %v3805_v48, %v3804_v1 }
 0x1fc   : > { %v3808_v53 = vsel %vm3764_vm4, %v3807_v26, %v3806_v32 }
 0x1fd   : > { %v3810_v27 = vsel %vm3767_vm5, %v3809_v9, %v3808_v53 }
 0x1fe   : > { %v3814_v20 = vpack.c.b16 %v3810_v27, %v3810_v27 }
 0x200   : > { %3822 = vst [vmem:[%s5931_s13 + $0xc] sm:$0xf] %v3814_v20 }
 0x201 PF: > { %s15_s19 = sadd.s32 1, %s4989_s19   ;;  %s6047_s15 = smov %s4981_s17 }
 0x202   : > { %p12_p8 = scmp.ge.s32.totalorder %s15_s19, 6   ;;  %s6048_s16 = smov %s4985_s18 }
 0x203   : > { %s6049_s17 = smov %s6052_s20  ;;  %s6050_s18 = smov %s6056_s21 }
 0x204   :  { %14 = sbr.rel (!%p12_p8) target bundleno = 3 (0x3), region = 77 }

// kernel: darknet_forward.17
= control target key start
LH: loop header
LB: loop body
LE: loop exit
PB: predicated region body
PF: predicated region fallthrough
CT: control target
= control target key end

     0   :  { %s866_s9 = smov 0   ;;  %s1147_s0 = inlined_call_operand.vmem [shape: bf16[512,128], index: 0, kind: input, shape index: {}]   ;;  %s1148_s1 = inlined_call_operand.vmem [shape: f32[8,128], index: 1, kind: input, shape index: {}]   ;;  %s1149_s2 = inlined_call_operand.vmem [shape: f32[512,128], index: 2, kind: output, shape index: {}]  }
   0x1 LB: > { %s668_s10 = sadd.s32 4294967295, %s849_s9   ;;  %p672_p0 = scmp.ge.s32.totalorder %s849_s9, 1  ;;  %s849_s9 = sphi %s866_s9, %s12_s9  }
   0x2   : > { %p113_p1 = scmp.lt.s32.totalorder %s849_s9, 5 }
   0x4   : > { %p114_p2 = pnand %p672_p0, %p113_p1 }
   0x5   : > { %s673_s11 = sshll.u32 (!%p114_p2), %s668_s10, 4  ;;  %s677_s12 = sshll.u32 (!%p114_p2), %s668_s10, 7  ;;  %v148_v0 = vlaneseq (!%p114_p2)  ;;  %v264_v18 = vld [vmem:[%s1148_s1 + $0x2] sm:$0x1] (!%p114_p2)  ;;  %v916_v40 = vld [vmem:[%s1148_s1] ss:$0 sm:$0xff] (!%p114_p2) }
   0x6   : > { %117 = sbr.rel (%p114_p2) target bundleno = 126 (0x7e), region = 28  ;;  %p136_p3 = scmp.lt.s32.totalorder (!%p114_p2), %s673_s11, 63  ;;  %v876_v2 = vstv (!%p114_p2), %s677_s12  ;;  %v559_v27 = vsub.f32 (!%p114_p2), 1.0, %v264_v18  ;;  %v922_v43 = vld [vmem:[%s1148_s1 + $0x1] ss:$0 sm:$0xff] (!%p114_p2) }
   0x7   : > { %v874_v1 = vshrl.u32 (!%p114_p2), %v148_v0, 7 }
   0x9   : > { %v150_v3 = vadd.s32 (!%p114_p2), 8, %v874_v1  ;;  %v166_v4 = vadd.s32 (!%p114_p2), %v876_v2, %v874_v1  ;;  %v151_v5 = vadd.s32 (!%p114_p2), 16, %v874_v1  ;;  %v152_v13 = vadd.s32 (!%p114_p2), 24, %v874_v1 }
   0xa   : > { %v541_v19 = vsub.s32 (!%p114_p2), 0, %v874_v1  ;;  %v153_v23 = vadd.s32 (!%p114_p2), 32, %v874_v1  ;;  %v154_v31 = vadd.s32 (!%p114_p2), 40, %v874_v1  ;;  %v155_v34 = vadd.s32 (!%p114_p2), 48, %v874_v1 }
   0xb   : > { %v167_v7 = vadd.s32 (!%p114_p2), %v876_v2, %v150_v3  ;;  %v182_v10 = vand.u32 (!%p114_p2), 255, %v166_v4  ;;  %v168_v12 = vadd.s32 (!%p114_p2), %v876_v2, %v151_v5  ;;  %v169_v22 = vadd.s32 (!%p114_p2), %v876_v2, %v152_v13 }
   0xc   : > { %v908_v32 = vrot.slane (!%p114_p2), %v264_v18, %v541_v19  ;;  %v170_v38 = vadd.s32 (!%p114_p2), %v876_v2, %v153_v23  ;;  %v171_v47 = vadd.s32 (!%p114_p2), %v876_v2, %v154_v31  ;;  %v928_v52 = vrot.slane (!%p114_p2), %v559_v27, %v541_v19 }
   0xd   : > { %s1151_s11 = smov (!%p136_p3, %s673_s11), 63  ;;  %v183_v16 = vand.u32 255, %v167_v7  ;;  %v198_v20 = vand.u32 15, %v182_v10  ;;  %v184_v21 = vand.u32 255, %v168_v12  ;;  %v230_v24 = vshra.s32 %v182_v10, 4 }
   0xe   : > { %s674_s13 = sshll.u32 %s1151_s11, 2  ;;  %v185_v41 = vand.u32 255, %v169_v22  ;;  %v186_v57 = vand.u32 255, %v170_v38  ;;  %v187_v3 = vand.u32 255, %v171_v47  ;;  %s676_s27 = sshll.u32 %s1151_s11, 3 }
   0xf   : > { %s888_s16 = scalar_lea.vmem %s1147_s0, %s674_s13  ;;  %v199_v28 = vand.u32 15, %v183_v16  ;;  %v231_v29 = vshra.s32 %v183_v16, 4  ;;  %v214_v35 = vcvt.s32.f32 %v198_v20  ;;  %v200_v36 = vand.u32 15, %v184_v21  ;;  %s1007_s30 = scalar_lea.vmem %s1149_s2, %s676_s27 }
  0x10   : > { %v701_v6 = vld [vmem:[%s888_s16] sm:$0xff]   ;;  %v893_v8 = vld [vmem:[%s888_s16 + $0x8] sm:$0xff]   ;;  %v905_v30 = vld [vmem:[%s888_s16 + $0x10] sm:$0xff]   ;;  %v246_v39 = vcvt.s32.f32 %v230_v24  ;;  %v232_v48 = vshra.s32 %v184_v21, 4  ;;  %v201_v56 = vand.u32 15, %v185_v41  ;;  %v233_v0 = vshra.s32 %v185_v41, 4 }
  0x11   : > { %v702_v9 = vunpack.c.l.bf16 %v701_v6  ;;  %v703_v11 = vunpack.c.h.bf16 %v701_v6  ;;  %v706_v15 = vunpack.c.l.bf16 %v893_v8  ;;  %v707_v37 = vunpack.c.h.bf16 %v893_v8  ;;  %v941_v4 = vld [vmem:[%s888_s16 + $0x18] sm:$0xff]   ;;  %v970_v47 = vld [vmem:[%s888_s16 + $0x20] sm:$0xff]  }
  0x12   : > { %v710_v42 = vunpack.c.l.bf16 %v905_v30  ;;  %v215_v44 = vcvt.s32.f32 %v199_v28  ;;  %v247_v45 = vcvt.s32.f32 %v231_v29  ;;  %v926_v51 = vmul.f32 %v916_v40, %v214_v35 }
  0x13   : > { %v678_v14 = vmul.f32 -1.442695, %v702_v9  ;;  %v679_v17 = vmul.f32 -1.442695, %v703_v11  ;;  %v395_v25 = vmul.f32 1.442695, %v702_v9  ;;  %v216_v53 = vcvt.s32.f32 %v200_v36 }
  0x14   : > { %v680_v26 = vmul.f32 -1.442695, %v706_v15  ;;  %v397_v33 = vmul.f32 1.442695, %v703_v11  ;;  %v681_v46 = vmul.f32 -1.442695, %v707_v37  ;;  %v931_v55 = vmul.f32 %v922_v43, %v246_v39 }
  0x15   : > { %747 = vpow2.f32 %v678_v14  ;;  %v399_v49 = vmul.f32 1.442695, %v706_v15  ;;  %v682_v50 = vmul.f32 -1.442695, %v710_v42  ;;  %v711_v58 = vunpack.c.h.bf16 %v905_v30 }
  0x16   : > { %749 = vpow2.f32 %v679_v17  ;;  %v935_v60 = vmul.f32 %v916_v40, %v215_v44  ;;  %v938_v61 = vmul.f32 %v922_v43, %v247_v45  ;;  %v248_v63 = vcvt.s32.f32 %v232_v48  ;;  %v951_v17 = vld [vmem:[%s1148_s1 + $0x3] ss:$0 sm:$0xff] }
  0x17   : > { %751 = vpow2.f32 %v680_v26  ;;  %v944_v6 = vmul.f32 %v916_v40, %v216_v53  ;;  %v683_v7 = vmul.f32 -1.442695, %v711_v58  ;;  %v217_v9 = vcvt.s32.f32 %v201_v56 }
  0x18   : > { %753 = vpow2.f32 %v395_v25  ;;  %v401_v10 = vmul.f32 1.442695, %v707_v37  ;;  %v202_v11 = vand.u32 15, %v186_v57  ;;  %v234_v12 = vshra.s32 %v186_v57, 4 }
  0x19   : > { %755 = vpow2.f32 %v397_v33  ;;  %v172_v14 = vadd.s32 %v876_v2, %v155_v34  ;;  %v714_v15 = vunpack.c.l.bf16 %v941_v4  ;;  %v249_v18 = vcvt.s32.f32 %v233_v0 }
  0x1a   : > { %757 = vpow2.f32 %v681_v46  ;;  %v403_v19 = vmul.f32 1.442695, %v710_v42  ;;  %v203_v20 = vand.u32 15, %v187_v3  ;;  %v954_v21 = vmul.f32 %v922_v43, %v248_v63 }
  0x1b   : > { %759 = vpow2.f32 %v682_v50  ;;  %v235_v22 = vshra.s32 %v187_v3, 4  ;;  %v684_v23 = vmul.f32 -1.442695, %v714_v15  ;;  %v957_v25 = vmul.f32 %v916_v40, %v217_v9 }
  0x1c   : > { %761 = vpow2.f32 %v399_v49  ;;  %v218_v26 = vcvt.s32.f32 %v202_v11  ;;  %v250_v27 = vcvt.s32.f32 %v234_v12  ;;  %v188_v30 = vand.u32 255, %v172_v14 }
  0x1d   : > { %v715_v31 = vunpack.c.h.bf16 %v941_v4  ;;  %v962_v34 = vmul.f32 %v922_v43, %v249_v18  ;;  %v219_v35 = vcvt.s32.f32 %v203_v20  ;;  %v251_v37 = vcvt.s32.f32 %v235_v22 }
  0x1e   : > { %v405_v38 = vmul.f32 1.442695, %v711_v58  ;;  %v156_v39 = vadd.s32 56, %v874_v1  ;;  %v967_v46 = vmul.f32 %v916_v40, %v218_v26  ;;  %v974_v50 = vmul.f32 %v922_v43, %v250_v27 }
  0x1f   : > { %v748_v54 = vpop.eup %747  ;;  %v685_v41 = vmul.f32 -1.442695, %v715_v31  ;;  %v204_v53 = vand.u32 15, %v188_v30  ;;  %v978_v56 = vmul.f32 %v916_v40, %v219_v35  ;;  %v407_v57 = vmul.f32 1.442695, %v714_v15 }
  0x20   : > { %v347_v59 = vadd.f32 1.0, %v748_v54  ;;  %v750_v62 = vpop.eup %749  ;;  %v173_v63 = vadd.s32 %v876_v2, %v156_v39  ;;  %v236_v11 = vshra.s32 %v188_v30, 4  ;;  %v409_v12 = vmul.f32 1.442695, %v715_v31 }
  0x21   : > { %v348_v5 = vadd.f32 1.0, %v750_v62  ;;  %v752_v8 = vpop.eup %751  ;;  %v986_v62 = vmul.f32 %v922_v43, %v251_v37  ;;  %v157_v18 = vadd.s32 64, %v874_v1 }
  0x22   : > { %763 = vrcp.f32 %v347_v59  ;;  %v349_v13 = vadd.f32 1.0, %v752_v8  ;;  %v754_v16 = vpop.eup %753  ;;  %v983_v59 = vld [vmem:[%s1148_s1 + $0x4] ss:$0 sm:$0xff]  ;;  %v252_v27 = vcvt.s32.f32 %v236_v11 }
  0x23   : > { %765 = vrcp.f32 %v348_v5  ;;  %v756_v24 = vpop.eup %755  ;;  %v523_v29 = vmul.f32 %v754_v16, %v951_v17 }
  0x24   : > { %767 = vpow2.f32 %v683_v7  ;;  %v758_v28 = vpop.eup %757  ;;  %v524_v44 = vmul.f32 %v756_v24, %v951_v17 }
  0x25   : > { %769 = vrcp.f32 %v349_v13  ;;  %v350_v33 = vadd.f32 1.0, %v758_v28  ;;  %v760_v36 = vpop.eup %759  ;;  %v543_v49 = vmul.f32 %v908_v32, %v523_v29 }
  0x26   : > { %771 = vpow2.f32 %v401_v10  ;;  %v762_v42 = vpop.eup %761  ;;  %v351_v45 = vadd.f32 1.0, %v760_v36  ;;  %v544_v5 = vmul.f32 %v908_v32, %v524_v44  ;;  %v220_v10 = vcvt.s32.f32 %v204_v53  ;;  %v1023_v53 = vld [vmem:[%s888_s16 + $0x28] sm:$0xff]  }
  0x27   : > { %773 = vpow2.f32 %v684_v23  ;;  %v525_v7 = vmul.f32 %v762_v42, %v951_v17  ;;  %v174_v42 = vadd.s32 %v876_v2, %v157_v18 }
  0x28   : > { %775 = vpow2.f32 %v403_v19  ;;  %v437_v35 = vmul.f32 %v916_v40, %v220_v10 }
  0x29   : > { %777 = vrcp.f32 %v350_v33 }
  0x2a   : > { %779 = vpow2.f32 %v685_v41 }
  0x2b   : > { %781 = vrcp.f32 %v351_v45 }
  0x2c   : > { %v764_v48 = vpop.eup %763  ;;  %783 = vpow2.f32 %v405_v38 }
  0x2d   : > { %v447_v54 = vadd.f32 %v764_v48, %v926_v51  ;;  %v766_v58 = vpop.eup %765  ;;  %v718_v51 = vunpack.c.l.bf16 %v970_v47  ;;  %785 = vpow2.f32 %v407_v57 }
  0x2e   : > { %v768_v0 = vpop.eup %767  ;;  %v448_v4 = vadd.f32 %v766_v58, %v935_v60  ;;  %v189_v60 = vand.u32 255, %v173_v63  ;;  %v719_v58 = vunpack.c.h.bf16 %v970_v47 }
  0x2f   : > { %v483_v3 = vadd.f32 %v931_v55, %v447_v54  ;;  %v770_v8 = vpop.eup %769  ;;  %v352_v9 = vadd.f32 1.0, %v768_v0  ;;  %v686_v19 = vmul.f32 -1.442695, %v718_v51 }
  0x30   : > { %v772_v13 = vpop.eup %771  ;;  %v484_v15 = vadd.f32 %v938_v61, %v448_v4  ;;  %v449_v16 = vadd.f32 %v770_v8, %v944_v6  ;;  %v545_v61 = vmul.f32 %v908_v32, %v525_v7  ;;  %v205_v36 = vand.u32 15, %v189_v60 }
  0x31   : > { %v503_v14 = vmul.f32 %v983_v59, %v483_v3  ;;  %v774_v55 = vpop.eup %773  ;;  %787 = vrcp.f32 %v352_v9  ;;  %v526_v6 = vmul.f32 %v772_v13, %v951_v17  ;;  %v237_v57 = vshra.s32 %v189_v60, 4 }
  0x32   : > { %v776_v20 = vpop.eup %775  ;;  %v504_v23 = vmul.f32 %v983_v59, %v484_v15  ;;  %v485_v24 = vadd.f32 %v954_v21, %v449_v16  ;;  %v353_v26 = vadd.f32 1.0, %v774_v55  ;;  %789 = vpow2.f32 %v409_v12 }
  0x33   : > { %v564_v22 = vmul.f32 %v928_v52, %v503_v14  ;;  %v778_v28 = vpop.eup %777  ;;  %v546_v0 = vmul.f32 %v908_v32, %v526_v6  ;;  %v221_v3 = vcvt.s32.f32 %v205_v36  ;;  %v687_v7 = vmul.f32 -1.442695, %v719_v58 }
  0x34   : > { %v565_v30 = vmul.f32 %v928_v52, %v504_v23  ;;  %v505_v31 = vmul.f32 %v983_v59, %v485_v24  ;;  %791 = vrcp.f32 %v353_v26  ;;  %v780_v21 = vpop.eup %779  ;;  %v450_v33 = vadd.f32 %v778_v28, %v957_v25 }
  0x35   : > { %v580_v29 = vadd.f32 %v564_v22, %v543_v49  ;;  %793 = vpow2.f32 %v686_v19  ;;  %v782_v37 = vpop.eup %781  ;;  %v354_v41 = vadd.f32 1.0, %v780_v21  ;;  %v527_v25 = vmul.f32 %v776_v20, %v951_v17 }
  0x36   : > { %v581_v38 = vadd.f32 %v565_v30, %v544_v5  ;;  %v566_v39 = vmul.f32 %v928_v52, %v505_v31  ;;  %v784_v44 = vpop.eup %783  ;;  %v486_v45 = vadd.f32 %v962_v34, %v450_v33  ;;  %v451_v48 = vadd.f32 %v782_v37, %v967_v46 }
  0x37   : > { %596 = vst [vmem:[%s1007_s30] sm:$0xff] %v580_v29  ;;  %v473_v49 = vmul.f32 %v922_v43, %v252_v27  ;;  %795 = vrcp.f32 %v354_v41  ;;  %v786_v46 = vpop.eup %785  ;;  %v528_v4 = vmul.f32 %v784_v44, %v951_v17  ;;  %v190_v5 = vand.u32 255, %v174_v42  ;;  %v1057_v42 = vld [vmem:[%s888_s16 + $0x30] sm:$0xff]  }
  0x38   : > { %597 = vst [vmem:[%s1007_s30 + $0x8] sm:$0xff] %v581_v38  ;;  %v582_v54 = vadd.f32 %v566_v39, %v545_v61  ;;  %v506_v63 = vmul.f32 %v983_v59, %v486_v45  ;;  %v487_v34 = vadd.f32 %v974_v50, %v451_v48  ;;  %v722_v8 = vunpack.c.l.bf16 %v1023_v53 }
  0x39   : > { %v547_v12 = vmul.f32 %v908_v32, %v527_v25  ;;  %v411_v13 = vmul.f32 1.442695, %v718_v51  ;;  %v253_v14 = vcvt.s32.f32 %v237_v57  ;;  %v158_v15 = vadd.s32 72, %v874_v1 }
  0x3a   : > { %598 = vst [vmem:[%s1007_s30 + $0x10] sm:$0xff] %v582_v54  ;;  %v567_v10 = vmul.f32 %v928_v52, %v506_v63  ;;  %v507_v11 = vmul.f32 %v983_v59, %v487_v34  ;;  %797 = vpow2.f32 %v687_v7  ;;  %v438_v18 = vmul.f32 %v916_v40, %v221_v3 }
  0x3b   : > { %v788_v9 = vpop.eup %787  ;;  %v688_v19 = vmul.f32 -1.442695, %v722_v8  ;;  %v548_v47 = vmul.f32 %v908_v32, %v528_v4  ;;  %v206_v51 = vand.u32 15, %v190_v5  ;;  %v529_v61 = vmul.f32 %v786_v46, %v951_v17 }
  0x3c   : > { %v452_v50 = vadd.f32 %v788_v9, %v978_v56  ;;  %v790_v16 = vpop.eup %789  ;;  %v583_v55 = vadd.f32 %v567_v10, %v546_v0  ;;  %v568_v60 = vmul.f32 %v928_v52, %v507_v11  ;;  %v159_v56 = vadd.s32 80, %v874_v1 }
  0x3d   : > { %799 = vpow2.f32 %v411_v13  ;;  %v175_v28 = vadd.s32 %v876_v2, %v158_v15  ;;  %v413_v29 = vmul.f32 1.442695, %v719_v58  ;;  %v474_v30 = vmul.f32 %v922_v43, %v253_v14 }
  0x3e   : > { %v792_v20 = vpop.eup %791  ;;  %v488_v22 = vadd.f32 %v986_v62, %v452_v50  ;;  %599 = vst [vmem:[%s1007_s30 + $0x18] sm:$0xff] %v583_v55  ;;  %v584_v24 = vadd.f32 %v568_v60, %v547_v12  ;;  %v238_v31 = vshra.s32 %v190_v5, 4  ;;  %801 = vpow2.f32 %v688_v19 }
  0x3f   : > { %v794_v23 = vpop.eup %793  ;;  %v453_v26 = vadd.f32 %v792_v20, %v437_v35  ;;  %v530_v35 = vmul.f32 %v790_v16, %v951_v17  ;;  %v176_v36 = vadd.s32 %v876_v2, %v159_v56  ;;  %v549_v38 = vmul.f32 %v908_v32, %v529_v61 }
  0x40   : > { %v508_v6 = vmul.f32 %v983_v59, %v488_v22  ;;  %v355_v27 = vadd.f32 1.0, %v794_v23  ;;  %600 = vst [vmem:[%s1007_s30 + $0x20] sm:$0xff] %v584_v24  ;;  %v222_v41 = vcvt.s32.f32 %v206_v51  ;;  %v191_v45 = vand.u32 255, %v175_v28 }
  0x41   : > { %v489_v62 = vadd.f32 %v473_v49, %v453_v26  ;;  %v796_v21 = vpop.eup %795  ;;  %v415_v48 = vmul.f32 1.442695, %v722_v8  ;;  %v254_v54 = vcvt.s32.f32 %v238_v31  ;;  %v723_v57 = vunpack.c.h.bf16 %v1023_v53 }
  0x42   : > { %v569_v33 = vmul.f32 %v928_v52, %v508_v6  ;;  %803 = vrcp.f32 %v355_v27  ;;  %v454_v39 = vadd.f32 %v796_v21, %v438_v18  ;;  %v550_v63 = vmul.f32 %v908_v32, %v530_v35 }
  0x43   : > { %v509_v37 = vmul.f32 %v983_v59, %v489_v62  ;;  %805 = vpow2.f32 %v413_v29  ;;  %v192_v0 = vand.u32 255, %v176_v36  ;;  %v160_v34 = vadd.s32 88, %v874_v1  ;;  %v1077_v29 = vld [vmem:[%s888_s16 + $0x38] sm:$0xff]  }
  0x44   : > { %v585_v44 = vadd.f32 %v569_v33, %v548_v47  ;;  %v490_v49 = vadd.f32 %v474_v30, %v454_v39  ;;  %v798_v58 = vpop.eup %797  ;;  %v726_v3 = vunpack.c.l.bf16 %v1057_v42  ;;  %v689_v7 = vmul.f32 -1.442695, %v723_v57 }
  0x45   : > { %v570_v25 = vmul.f32 %v928_v52, %v509_v37  ;;  %v356_v5 = vadd.f32 1.0, %v798_v58  ;;  %v439_v8 = vmul.f32 %v916_v40, %v222_v41  ;;  %v207_v9 = vand.u32 15, %v191_v45 }
  0x46   : > { %601 = vst [vmem:[%s1007_s30 + $0x28] sm:$0xff] %v585_v44  ;;  %v510_v4 = vmul.f32 %v983_v59, %v490_v49  ;;  %807 = vpow2.f32 %v415_v48  ;;  %v239_v11 = vshra.s32 %v191_v45, 4  ;;  %v690_v12 = vmul.f32 -1.442695, %v726_v3 }
  0x47   : > { %v586_v46 = vadd.f32 %v570_v25, %v549_v38  ;;  %v800_v10 = vpop.eup %799  ;;  %809 = vrcp.f32 %v356_v5  ;;  %v208_v13 = vand.u32 15, %v192_v0  ;;  %v240_v50 = vshra.s32 %v192_v0, 4 }
  0x48   : > { %v571_v53 = vmul.f32 %v928_v52, %v510_v4  ;;  %811 = vpow2.f32 %v689_v7  ;;  %v727_v14 = vunpack.c.h.bf16 %v1057_v42  ;;  %v802_v15 = vpop.eup %801  ;;  %v475_v55 = vmul.f32 %v922_v43, %v254_v54 }
  0x49   : > { %602 = vst [vmem:[%s1007_s30 + $0x30] sm:$0xff] %v586_v46  ;;  %v177_v60 = vadd.s32 %v876_v2, %v160_v34  ;;  %v161_v18 = vadd.s32 96, %v874_v1  ;;  %v223_v20 = vcvt.s32.f32 %v207_v9  ;;  %v357_v22 = vadd.f32 1.0, %v802_v15 }
  0x4a   : > { %v587_v16 = vadd.f32 %v571_v53, %v550_v63  ;;  %v531_v51 = vmul.f32 %v800_v10, %v951_v17  ;;  %v255_v56 = vcvt.s32.f32 %v239_v11  ;;  %813 = vpow2.f32 %v690_v12 }
  0x4b   : > { %v224_v24 = vcvt.s32.f32 %v208_v13  ;;  %v256_v26 = vcvt.s32.f32 %v240_v50  ;;  %815 = vrcp.f32 %v357_v22  ;;  %v691_v61 = vmul.f32 -1.442695, %v727_v14 }
  0x4c   : > { %v804_v19 = vpop.eup %803  ;;  %603 = vst [vmem:[%s1007_s30 + $0x38] sm:$0xff] %v587_v16  ;;  %v193_v27 = vand.u32 255, %v177_v60  ;;  %v178_v28 = vadd.s32 %v876_v2, %v161_v18  ;;  %v440_v62 = vmul.f32 %v916_v40, %v223_v20  ;;  %v162_v30 = vadd.s32 104, %v874_v1 }
  0x4d   : > { %v455_v47 = vadd.f32 %v804_v19, %v439_v8  ;;  %v806_v23 = vpop.eup %805  ;;  %817 = vpow2.f32 %v691_v61  ;;  %v551_v21 = vmul.f32 %v908_v32, %v531_v51  ;;  %v417_v35 = vmul.f32 1.442695, %v723_v57 }
  0x4e   : > { %v532_v33 = vmul.f32 %v806_v23, %v951_v17  ;;  %v476_v37 = vmul.f32 %v922_v43, %v255_v56  ;;  %v441_v38 = vmul.f32 %v916_v40, %v224_v24  ;;  %v477_v39 = vmul.f32 %v922_v43, %v256_v26 }
  0x4f   : > { %v491_v6 = vadd.f32 %v475_v55, %v455_v47  ;;  %v730_v41 = vunpack.c.l.bf16 %v1077_v29  ;;  %v209_v45 = vand.u32 15, %v193_v27  ;;  %v241_v48 = vshra.s32 %v193_v27, 4 }
  0x50   : > { %v808_v36 = vpop.eup %807  ;;  %v194_v25 = vand.u32 255, %v178_v28  ;;  %v419_v58 = vmul.f32 1.442695, %v726_v3  ;;  %v179_v57 = vadd.s32 %v876_v2, %v162_v30  ;;  %v552_v34 = vmul.f32 %v908_v32, %v532_v33 }
  0x51   : > { %v511_v31 = vmul.f32 %v983_v59, %v491_v6  ;;  %v810_v42 = vpop.eup %809  ;;  %v692_v63 = vmul.f32 -1.442695, %v730_v41  ;;  %819 = vpow2.f32 %v417_v35  ;;  %v163_v5 = vadd.s32 112, %v874_v1 }
  0x52   : > { %v812_v49 = vpop.eup %811  ;;  %v456_v54 = vadd.f32 %v810_v42, %v440_v62  ;;  %v731_v7 = vunpack.c.h.bf16 %v1077_v29  ;;  %v533_v9 = vmul.f32 %v808_v36, %v951_v17  ;;  %v210_v3 = vand.u32 15, %v194_v25 }
  0x53   : > { %v572_v44 = vmul.f32 %v928_v52, %v511_v31  ;;  %v358_v46 = vadd.f32 1.0, %v812_v49  ;;  %821 = vpow2.f32 %v692_v63  ;;  %v421_v10 = vmul.f32 1.442695, %v727_v14 }
  0x54   : > { %v492_v4 = vadd.f32 %v476_v37, %v456_v54  ;;  %v814_v8 = vpop.eup %813  ;;  %v195_v13 = vand.u32 255, %v179_v57  ;;  %v225_v15 = vcvt.s32.f32 %v209_v45  ;;  %v257_v16 = vcvt.s32.f32 %v241_v48 }
  0x55   : > { %v588_v0 = vadd.f32 %v572_v44, %v551_v21  ;;  %823 = vrcp.f32 %v358_v46  ;;  %v816_v53 = vpop.eup %815  ;;  %v359_v12 = vadd.f32 1.0, %v814_v8  ;;  %v180_v18 = vadd.s32 %v876_v2, %v163_v5 }
  0x56   : > { %v512_v11 = vmul.f32 %v983_v59, %v492_v4  ;;  %825 = vpow2.f32 %v419_v58  ;;  %v457_v50 = vadd.f32 %v816_v53, %v441_v38  ;;  %v693_v19 = vmul.f32 -1.442695, %v731_v7 }
  0x57   : > { %604 = vst [vmem:[%s1007_s30 + $0x40] sm:$0xff] %v588_v0  ;;  %v818_v55 = vpop.eup %817  ;;  %827 = vrcp.f32 %v359_v12  ;;  %v242_v20 = vshra.s32 %v194_v25, 4  ;;  %v553_v51 = vmul.f32 %v908_v32, %v533_v9  ;;  %v226_v56 = vcvt.s32.f32 %v210_v3 }
  0x58   : > { %v573_v60 = vmul.f32 %v928_v52, %v512_v11  ;;  %v493_v14 = vadd.f32 %v477_v39, %v457_v50  ;;  %v360_v22 = vadd.f32 1.0, %v818_v55  ;;  %829 = vpow2.f32 %v421_v10 }
  0x59   : > { %v211_v23 = vand.u32 15, %v195_v13  ;;  %v243_v26 = vshra.s32 %v195_v13, 4  ;;  %v423_v61 = vmul.f32 1.442695, %v730_v41  ;;  %v442_v6 = vmul.f32 %v916_v40, %v225_v15 }
  0x5a   : > { %v589_v47 = vadd.f32 %v573_v60, %v552_v34  ;;  %v513_v24 = vmul.f32 %v983_v59, %v493_v14  ;;  %831 = vrcp.f32 %v360_v22  ;;  %v196_v27 = vand.u32 255, %v180_v18 }
  0x5b   : > { %v164_v28 = vadd.s32 120, %v874_v1  ;;  %833 = vpow2.f32 %v693_v19  ;;  %v820_v62 = vpop.eup %819  ;;  %v258_v31 = vcvt.s32.f32 %v242_v20  ;;  %v478_v33 = vmul.f32 %v922_v43, %v257_v16 }
  0x5c   : > { %605 = vst [vmem:[%s1007_s30 + $0x48] sm:$0xff] %v589_v47  ;;  %v574_v30 = vmul.f32 %v928_v52, %v513_v24  ;;  %v443_v35 = vmul.f32 %v916_v40, %v226_v56  ;;  %v227_v36 = vcvt.s32.f32 %v211_v23  ;;  %v259_v39 = vcvt.s32.f32 %v243_v26 }
  0x5d   : > { %v822_v21 = vpop.eup %821  ;;  %835 = vpow2.f32 %v423_v61  ;;  %v534_v1 = vmul.f32 %v820_v62, %v951_v17  ;;  %v212_v45 = vand.u32 15, %v196_v27  ;;  %v181_v48 = vadd.s32 %v876_v2, %v164_v28 }
  0x5e   : > { %v590_v38 = vadd.f32 %v574_v30, %v553_v51  ;;  %v361_v41 = vadd.f32 1.0, %v822_v21  ;;  %v479_v25 = vmul.f32 %v922_v43, %v258_v31  ;;  %v444_v58 = vmul.f32 %v916_v40, %v227_v36 }
  0x5f   : > { %v824_v37 = vpop.eup %823  ;;  %v244_v57 = vshra.s32 %v196_v27, 4  ;;  %v480_v46 = vmul.f32 %v922_v43, %v259_v39  ;;  %v425_v4 = vmul.f32 1.442695, %v731_v7  ;;  %v554_v5 = vmul.f32 %v908_v32, %v534_v1 }
  0x60   : > { %v826_v42 = vpop.eup %825  ;;  %v458_v44 = vadd.f32 %v824_v37, %v442_v6  ;;  %606 = vst [vmem:[%s1007_s30 + $0x50] sm:$0xff] %v590_v38  ;;  %837 = vrcp.f32 %v361_v41  ;;  %v228_v8 = vcvt.s32.f32 %v212_v45  ;;  %v197_v9 = vand.u32 255, %v181_v48 }
  0x61   : > { %v828_v49 = vpop.eup %827  ;;  %v535_v34 = vmul.f32 %v826_v42, %v951_v17  ;;  %v260_v50 = vcvt.s32.f32 %v244_v57  ;;  %839 = vpow2.f32 %v425_v4 }
  0x62   : > { %v494_v54 = vadd.f32 %v478_v33, %v458_v44  ;;  %v830_v63 = vpop.eup %829  ;;  %v459_v0 = vadd.f32 %v828_v49, %v443_v35  ;;  %v445_v60 = vmul.f32 %v916_v40, %v228_v8  ;;  %v213_v18 = vand.u32 15, %v197_v9 }
  0x63   : > { %v536_v13 = vmul.f32 %v830_v63, %v951_v17  ;;  %v555_v29 = vmul.f32 %v908_v32, %v535_v34  ;;  %v481_v47 = vmul.f32 %v922_v43, %v260_v50  ;;  %v245_v51 = vshra.s32 %v197_v9, 4 }
  0x64   : > { %v514_v2 = vmul.f32 %v983_v59, %v494_v54  ;;  %v832_v3 = vpop.eup %831  ;;  %v495_v10 = vadd.f32 %v479_v25, %v459_v0  ;;  %v229_v6 = vcvt.s32.f32 %v213_v18 }
  0x65   : > { %v834_v53 = vpop.eup %833  ;;  %v460_v12 = vadd.f32 %v832_v3, %v444_v58  ;;  %v556_v22 = vmul.f32 %v908_v32, %v536_v13  ;;  %v261_v62 = vcvt.s32.f32 %v245_v51 }
  0x66   : > { %v575_v11 = vmul.f32 %v928_v52, %v514_v2  ;;  %v515_v15 = vmul.f32 %v983_v59, %v495_v10  ;;  %v362_v7 = vadd.f32 1.0, %v834_v53  ;;  %v446_v21 = vmul.f32 %v916_v40, %v229_v6 }
  0x67   : > { %v496_v55 = vadd.f32 %v480_v46, %v460_v12  ;;  %v836_v19 = vpop.eup %835  ;;  %v482_v36 = vmul.f32 %v922_v43, %v261_v62 }
  0x68   : > { %v591_v16 = vadd.f32 %v575_v11, %v554_v5  ;;  %v576_v14 = vmul.f32 %v928_v52, %v515_v15  ;;  %841 = vrcp.f32 %v362_v7  ;;  %v537_v61 = vmul.f32 %v836_v19, %v951_v17 }
  0x69   : > { %v516_v20 = vmul.f32 %v983_v59, %v496_v55 }
  0x6a   : > { %607 = vst [vmem:[%s1007_s30 + $0x58] sm:$0xff] %v591_v16  ;;  %v838_v56 = vpop.eup %837  ;;  %v592_v23 = vadd.f32 %v576_v14, %v555_v29  ;;  %v557_v31 = vmul.f32 %v908_v32, %v537_v61 }
  0x6b   : > { %v577_v24 = vmul.f32 %v928_v52, %v516_v20  ;;  %v461_v26 = vadd.f32 %v838_v56, %v445_v60  ;;  %v840_v33 = vpop.eup %839 }
  0x6c   : > { %608 = vst [vmem:[%s1007_s30 + $0x60] sm:$0xff] %v592_v23  ;;  %v538_v41 = vmul.f32 %v840_v33, %v951_v17 }
  0x6d   : > { %v593_v27 = vadd.f32 %v577_v24, %v556_v22  ;;  %v497_v28 = vadd.f32 %v481_v47, %v461_v26 }
  0x6e   : > { %v558_v1 = vmul.f32 %v908_v32, %v538_v41 }
  0x6f   : > { %609 = vst [vmem:[%s1007_s30 + $0x68] sm:$0xff] %v593_v27  ;;  %v517_v30 = vmul.f32 %v983_v59, %v497_v28 }
  0x71   : > { %v578_v35 = vmul.f32 %v928_v52, %v517_v30 }
  0x72   : > { %v842_v37 = vpop.eup %841 }
  0x73   : > { %v594_v38 = vadd.f32 %v578_v35, %v557_v31  ;;  %v462_v39 = vadd.f32 %v842_v37, %v446_v21 }
  0x75   : > { %610 = vst [vmem:[%s1007_s30 + $0x70] sm:$0xff] %v594_v38  ;;  %v498_v42 = vadd.f32 %v482_v36, %v462_v39 }
  0x77   : > { %v518_v44 = vmul.f32 %v983_v59, %v498_v42 }
  0x79   : > { %v579_v45 = vmul.f32 %v928_v52, %v518_v44 }
  0x7b   : > { %v595_v48 = vadd.f32 %v579_v45, %v558_v1 }
  0x7d   : > { %611 = vst [vmem:[%s1007_s30 + $0x78] sm:$0xff] %v595_v48 }
  0x7e PF: > { %s12_s9 = sadd.s32 1, %s849_s9  }
  0x7f   : > { %p9_p4 = scmp.ge.s32.totalorder %s12_s9, 6  }
  0x81   :  { %11 = sbr.rel (!%p9_p4) target bundleno = 1 (0x1), region = 58 }

</bundles_post_ra>
